<compile_context>
chip_gen: v7x
topology: tpu7x:2x2x1
jax: 0.10.0
libtpu: 0.0.40
codegen_flags: <defaults>
</compile_context>

<pallas_src>
import jax
import jax.numpy as jnp
from jax.experimental import pallas as pl
from jax.experimental.pallas import tpu as pltpu

VMEM_SPEC = pl.BlockSpec(memory_space=pltpu.MemorySpace.VMEM)


# ----------------------------- fused Pallas kernel ---------------------------

def _make_fused_kernel(num_convs):
    """Entire JustConvNet forward in one kernel; feature-major, VMEM-resident."""

    def kernel(*refs):
        xt_ref, src_ref, dst_ref = refs[:3]
        o_ref = refs[-1]
        p = refs[3:-1]                      # flat list of weight / bias refs

        n = xt_ref.shape[1]
        e = src_ref.shape[1]

        def dot(a, b):
            return jnp.dot(a, b, preferred_element_type=jnp.float32)

        # One-hot endpoint matrices in [N, E] orientation (edges on lanes):
        #   S[n, e] = (src[e] == n),  D[n, e] = (dst[e] == n).
        # D doubles as both the x_i gather matrix and the aggregation mask.
        node_iota = jax.lax.broadcasted_iota(jnp.int32, (n, e), 0)
        S = (src_ref[...] == node_iota).astype(jnp.float32)            # [N, E]
        D = (dst_ref[...] == node_iota).astype(jnp.float32)            # [N, E]

        # ---- enc: Linear(3, C) in transposed form: X_t = We^T @ x^T + be
        we_t, be = p[0], p[1]
        x_t = dot(we_t[...], xt_ref[...]) + be[...]                    # [C, N]

        # ---- EdgeConv(nn=MLP([2C,32,32,C]), aggr='max') + ReLU, x num_convs
        for l in range(num_convs):
            w1t, b1, w2t, b2, w3t, b3 = p[2 + 6 * l: 2 + 6 * (l + 1)]
            c = x_t.shape[0]
            # gather endpoint features with one-hot MXU matmuls, edges on lanes
            x_i = dot(x_t, D)                                          # [C, E] targets
            x_j = dot(x_t, S)                                          # [C, E] sources
            # split-K: W1^T @ concat([x_i; x_j - x_i]) without ever forming the concat
            w1tv = w1t[...]                                            # [32, 2C]
            h = dot(w1tv[:, :c], x_i) + dot(w1tv[:, c:], x_j - x_i) + b1[...]
            h = jnp.maximum(h, 0.0)
            h = jnp.maximum(dot(w2t[...], h) + b2[...], 0.0)
            relu_msg = jnp.maximum(dot(w3t[...], h) + b3[...], 0.0)    # [C, E]
            # max-aggregate over incoming edges with a multiplicative 0/1 mask.
            # Exactly equals relu(segment_max(msg)) because ReLU is monotone and
            # follows the aggregation in the reference model; isolated nodes get
            # 0, matching segment_max(empty) -> -inf -> relu -> 0.
            # Broadcast is [C, N, E] with E on lanes; reduce over the lane axis.
            x_t = jnp.max(relu_msg[:, None, :] * D[None, :, :], axis=-1)  # [C, N]

        # ---- head MLP [C, 128, 128, 1]; only this lane-dense [1, N] hits HBM
        hw1t, hb1, hw2t, hb2, hw3t, hb3 = p[2 + 6 * num_convs:]
        h = jnp.maximum(dot(hw1t[...], x_t) + hb1[...], 0.0)
        h = jnp.maximum(dot(hw2t[...], h) + hb2[...], 0.0)
        o_ref[...] = dot(hw3t[...], h) + hb3[...]                      # [1, N]

    return kernel


# ----------------------------- wrapper ---------------------------------------

@jax.jit
def forward(x, edge_index, params):
    n = x.shape[0]
    e = edge_index.shape[1]
    src_row = edge_index[0].astype(jnp.int32).reshape(1, e)
    dst_row = edge_index[1].astype(jnp.int32).reshape(1, e)

    flat = []

    def push(wb):
        w, b = wb
        flat.append(w.T)                 # [out, in]  (layout plumbing, trivial)
        flat.append(b.reshape(-1, 1))    # [out, 1] column -> broadcasts on lanes

    push(params["enc"])
    for layer in params["convs"]:
        for wb in layer:
            push(wb)
    for wb in params["mlp"]:
        push(wb)

    kernel = _make_fused_kernel(len(params["convs"]))
    out_t = pl.pallas_call(
        kernel,
        out_shape=jax.ShapeDtypeStruct((1, n), jnp.float32),
        in_specs=[VMEM_SPEC] * (3 + len(flat)),
        out_specs=VMEM_SPEC,
    )(x.T, src_row, dst_row, *flat)
    return out_t.reshape(n, 1)


# ----------------------------- parameters ------------------------------------

def init_params(key, channels=8, conv_dims=(32, 32), mlp_dims=(128, 128), num_convs=2):
    keys = iter(jax.random.split(key, 64))

    def lin(fan_in, fan_out):
        w = jax.random.normal(next(keys), (fan_in, fan_out), jnp.float32) / jnp.sqrt(
            jnp.float32(fan_in))
        b = jax.random.normal(next(keys), (fan_out,), jnp.float32) * 0.01
        return w, b

    params = {"enc": lin(3, channels)}
    convs = []
    for _ in range(num_convs):
        dims = [2 * channels, *conv_dims, channels]
        convs.append([lin(dims[i], dims[i + 1]) for i in range(len(dims) - 1)])
    params["convs"] = convs
    mdims = [channels, *mlp_dims, 1]
    params["mlp"] = [lin(mdims[i], mdims[i + 1]) for i in range(len(mdims) - 1)]
    return params


# pure-JAX reference for a sanity check
def forward_ref(x, edge_index, params):
    def lin(v, wb, relu=False):
        w, b = wb
        y = v @ w + b
        return jnp.maximum(y, 0.0) if relu else y

    X = lin(x, params["enc"])
    src, dst = edge_index[0], edge_index[1]
    n = X.shape[0]
    for layer in params["convs"]:
        ef = jnp.concatenate([X[dst], X[src] - X[dst]], axis=1)
        h = lin(ef, layer[0], relu=True)
        h = lin(h, layer[1], relu=True)
        msg = lin(h, layer[2])
        agg = jax.ops.segment_max(msg, dst, num_segments=n)
        X = jnp.maximum(agg, 0.0)
    X = lin(X, params["mlp"][0], relu=True)
    X = lin(X, params["mlp"][1], relu=True)
    X = lin(X, params["mlp"][2])
    return X


# ----------------------------- main -------------------------------------------

if __name__ == "__main__":
    key = jax.random.PRNGKey(0)
    k_x, k_p = jax.random.split(key)

    # 8 independent bidirectional-ring graphs batched block-diagonally into one
    # call so the node/edge axes fill the 128-wide lanes: N = 128, E = 256.
    G, NPG = 8, 16
    N = G * NPG
    x = jax.random.normal(k_x, (N, 3), jnp.float32)        # data.x: [N, 3]

    idx = jnp.arange(NPG, dtype=jnp.int32)
    ring_src = jnp.concatenate([idx, (idx + 1) % NPG])
    ring_dst = jnp.concatenate([(idx + 1) % NPG, idx])
    offs = (jnp.arange(G, dtype=jnp.int32) * NPG)[:, None]
    src = (ring_src[None, :] + offs).reshape(-1)
    dst = (ring_dst[None, :] + offs).reshape(-1)
    edge_index = jnp.stack([src, dst])                      # data.edge_index: [2, E]

    params = init_params(k_p)

    out = forward(x, edge_index, params)
    out = jax.block_until_ready(out)
    assert out.shape == (N, 1), out.shape

    ref = jax.block_until_ready(forward_ref(x, edge_index, params))
    assert jnp.allclose(out, ref, rtol=1e-3, atol=1e-3), (out, ref)

    print("KERNEL_OK")
</pallas_src>

<mosaic_0001>
module attributes {stable_mosaic.version = 11 : i64} {
  func.func @kernel(%arg0: memref<3x128xf32, #tpu.memory_space<vmem>>, %arg1: memref<1x256xi32, #tpu.memory_space<vmem>>, %arg2: memref<1x256xi32, #tpu.memory_space<vmem>>, %arg3: memref<8x3xf32, #tpu.memory_space<vmem>>, %arg4: memref<8x1xf32, #tpu.memory_space<vmem>>, %arg5: memref<32x16xf32, #tpu.memory_space<vmem>>, %arg6: memref<32x1xf32, #tpu.memory_space<vmem>>, %arg7: memref<32x32xf32, #tpu.memory_space<vmem>>, %arg8: memref<32x1xf32, #tpu.memory_space<vmem>>, %arg9: memref<8x32xf32, #tpu.memory_space<vmem>>, %arg10: memref<8x1xf32, #tpu.memory_space<vmem>>, %arg11: memref<32x16xf32, #tpu.memory_space<vmem>>, %arg12: memref<32x1xf32, #tpu.memory_space<vmem>>, %arg13: memref<32x32xf32, #tpu.memory_space<vmem>>, %arg14: memref<32x1xf32, #tpu.memory_space<vmem>>, %arg15: memref<8x32xf32, #tpu.memory_space<vmem>>, %arg16: memref<8x1xf32, #tpu.memory_space<vmem>>, %arg17: memref<128x8xf32, #tpu.memory_space<vmem>>, %arg18: memref<128x1xf32, #tpu.memory_space<vmem>>, %arg19: memref<128x128xf32, #tpu.memory_space<vmem>>, %arg20: memref<128x1xf32, #tpu.memory_space<vmem>>, %arg21: memref<1x128xf32, #tpu.memory_space<vmem>>, %arg22: memref<1x1xf32, #tpu.memory_space<vmem>>, %arg23: memref<1x128xf32, #tpu.memory_space<vmem>>) attributes {dimension_semantics = [], scalar_prefetch = 0 : i64, scratch_operands = 0 : i64, tpu.core_type = #tpu.core_type<tc>} {
    %0 = tpu.iota {dimensions = array<i32: 0>} : vector<128x256xi32>
    %c0 = arith.constant 0 : index
    %c0_0 = arith.constant 0 : index
    %1 = vector.load %arg1[%c0, %c0_0] : memref<1x256xi32, #tpu.memory_space<vmem>>, vector<1x256xi32>
    %2 = vector.broadcast %1 : vector<1x256xi32> to vector<128x256xi32>
    %3 = arith.cmpi eq, %2, %0 : vector<128x256xi32>
    %4 = arith.extui %3 : vector<128x256xi1> to vector<128x256xi32>
    %5 = arith.sitofp %4 : vector<128x256xi32> to vector<128x256xf32>
    %c0_1 = arith.constant 0 : index
    %c0_2 = arith.constant 0 : index
    %6 = vector.load %arg2[%c0_1, %c0_2] : memref<1x256xi32, #tpu.memory_space<vmem>>, vector<1x256xi32>
    %7 = vector.broadcast %6 : vector<1x256xi32> to vector<128x256xi32>
    %8 = arith.cmpi eq, %7, %0 : vector<128x256xi32>
    %9 = arith.extui %8 : vector<128x256xi1> to vector<128x256xi32>
    %10 = arith.sitofp %9 : vector<128x256xi32> to vector<128x256xf32>
    %c0_3 = arith.constant 0 : index
    %c0_4 = arith.constant 0 : index
    %11 = vector.load %arg3[%c0_3, %c0_4] : memref<8x3xf32, #tpu.memory_space<vmem>>, vector<8x3xf32>
    %c0_5 = arith.constant 0 : index
    %c0_6 = arith.constant 0 : index
    %12 = vector.load %arg0[%c0_5, %c0_6] : memref<3x128xf32, #tpu.memory_space<vmem>>, vector<3x128xf32>
    %cst = arith.constant dense<0.000000e+00> : vector<8x128xf32>
    %13 = tpu.matmul %11, %12, %cst {dimension_numbers = #tpu.dot_dimension_numbers<[1], [0], [0], [1], [0, 0, 1, 1], [], []>} : vector<8x3xf32>, vector<3x128xf32>, vector<8x128xf32> -> vector<8x128xf32>
    %c0_7 = arith.constant 0 : index
    %c0_8 = arith.constant 0 : index
    %14 = vector.load %arg4[%c0_7, %c0_8] : memref<8x1xf32, #tpu.memory_space<vmem>>, vector<8x1xf32>
    %15 = vector.broadcast %14 : vector<8x1xf32> to vector<8x128xf32>
    %16 = arith.addf %13, %15 : vector<8x128xf32>
    %cst_9 = arith.constant dense<0.000000e+00> : vector<8x256xf32>
    %17 = tpu.matmul %16, %10, %cst_9 {dimension_numbers = #tpu.dot_dimension_numbers<[1], [0], [0], [1], [0, 0, 1, 1], [], []>} : vector<8x128xf32>, vector<128x256xf32>, vector<8x256xf32> -> vector<8x256xf32>
    %cst_10 = arith.constant dense<0.000000e+00> : vector<8x256xf32>
    %18 = tpu.matmul %16, %5, %cst_10 {dimension_numbers = #tpu.dot_dimension_numbers<[1], [0], [0], [1], [0, 0, 1, 1], [], []>} : vector<8x128xf32>, vector<128x256xf32>, vector<8x256xf32> -> vector<8x256xf32>
    %c0_11 = arith.constant 0 : index
    %c0_12 = arith.constant 0 : index
    %19 = vector.load %arg5[%c0_11, %c0_12] : memref<32x16xf32, #tpu.memory_space<vmem>>, vector<32x16xf32>
    %20 = vector.extract_strided_slice %19 {offsets = [0, 0], sizes = [32, 8], strides = [1, 1]} : vector<32x16xf32> to vector<32x8xf32>
    %cst_13 = arith.constant dense<0.000000e+00> : vector<32x256xf32>
    %21 = tpu.matmul %20, %17, %cst_13 {dimension_numbers = #tpu.dot_dimension_numbers<[1], [0], [0], [1], [0, 0, 1, 1], [], []>} : vector<32x8xf32>, vector<8x256xf32>, vector<32x256xf32> -> vector<32x256xf32>
    %22 = vector.extract_strided_slice %19 {offsets = [0, 8], sizes = [32, 8], strides = [1, 1]} : vector<32x16xf32> to vector<32x8xf32>
    %23 = arith.subf %18, %17 : vector<8x256xf32>
    %cst_14 = arith.constant dense<0.000000e+00> : vector<32x256xf32>
    %24 = tpu.matmul %22, %23, %cst_14 {dimension_numbers = #tpu.dot_dimension_numbers<[1], [0], [0], [1], [0, 0, 1, 1], [], []>} : vector<32x8xf32>, vector<8x256xf32>, vector<32x256xf32> -> vector<32x256xf32>
    %25 = arith.addf %21, %24 : vector<32x256xf32>
    %c0_15 = arith.constant 0 : index
    %c0_16 = arith.constant 0 : index
    %26 = vector.load %arg6[%c0_15, %c0_16] : memref<32x1xf32, #tpu.memory_space<vmem>>, vector<32x1xf32>
    %27 = vector.broadcast %26 : vector<32x1xf32> to vector<32x256xf32>
    %28 = arith.addf %25, %27 : vector<32x256xf32>
    %cst_17 = arith.constant 0.000000e+00 : f32
    %29 = vector.broadcast %cst_17 : f32 to vector<32x256xf32>
    %30 = arith.maximumf %28, %29 : vector<32x256xf32>
    %c0_18 = arith.constant 0 : index
    %c0_19 = arith.constant 0 : index
    %31 = vector.load %arg7[%c0_18, %c0_19] : memref<32x32xf32, #tpu.memory_space<vmem>>, vector<32x32xf32>
    %cst_20 = arith.constant dense<0.000000e+00> : vector<32x256xf32>
    %32 = tpu.matmul %31, %30, %cst_20 {dimension_numbers = #tpu.dot_dimension_numbers<[1], [0], [0], [1], [0, 0, 1, 1], [], []>} : vector<32x32xf32>, vector<32x256xf32>, vector<32x256xf32> -> vector<32x256xf32>
    %c0_21 = arith.constant 0 : index
    %c0_22 = arith.constant 0 : index
    %33 = vector.load %arg8[%c0_21, %c0_22] : memref<32x1xf32, #tpu.memory_space<vmem>>, vector<32x1xf32>
    %34 = vector.broadcast %33 : vector<32x1xf32> to vector<32x256xf32>
    %35 = arith.addf %32, %34 : vector<32x256xf32>
    %cst_23 = arith.constant 0.000000e+00 : f32
    %36 = vector.broadcast %cst_23 : f32 to vector<32x256xf32>
    %37 = arith.maximumf %35, %36 : vector<32x256xf32>
    %c0_24 = arith.constant 0 : index
    %c0_25 = arith.constant 0 : index
    %38 = vector.load %arg9[%c0_24, %c0_25] : memref<8x32xf32, #tpu.memory_space<vmem>>, vector<8x32xf32>
    %cst_26 = arith.constant dense<0.000000e+00> : vector<8x256xf32>
    %39 = tpu.matmul %38, %37, %cst_26 {dimension_numbers = #tpu.dot_dimension_numbers<[1], [0], [0], [1], [0, 0, 1, 1], [], []>} : vector<8x32xf32>, vector<32x256xf32>, vector<8x256xf32> -> vector<8x256xf32>
    %c0_27 = arith.constant 0 : index
    %c0_28 = arith.constant 0 : index
    %40 = vector.load %arg10[%c0_27, %c0_28] : memref<8x1xf32, #tpu.memory_space<vmem>>, vector<8x1xf32>
    %41 = vector.broadcast %40 : vector<8x1xf32> to vector<8x256xf32>
    %42 = arith.addf %39, %41 : vector<8x256xf32>
    %cst_29 = arith.constant 0.000000e+00 : f32
    %43 = vector.broadcast %cst_29 : f32 to vector<8x256xf32>
    %44 = arith.maximumf %42, %43 : vector<8x256xf32>
    %45 = vector.shape_cast %44 : vector<8x256xf32> to vector<8x1x256xf32>
    %46 = vector.shape_cast %10 : vector<128x256xf32> to vector<1x128x256xf32>
    %47 = vector.broadcast %45 : vector<8x1x256xf32> to vector<8x128x256xf32>
    %48 = vector.broadcast %46 : vector<1x128x256xf32> to vector<8x128x256xf32>
    %49 = arith.mulf %47, %48 : vector<8x128x256xf32>
    %cst_30 = arith.constant dense<0xFF800000> : vector<8x128xf32>
    %50 = vector.multi_reduction <maximumf>, %49, %cst_30 [2] : vector<8x128x256xf32> to vector<8x128xf32>
    %cst_31 = arith.constant dense<0.000000e+00> : vector<8x256xf32>
    %51 = tpu.matmul %50, %10, %cst_31 {dimension_numbers = #tpu.dot_dimension_numbers<[1], [0], [0], [1], [0, 0, 1, 1], [], []>} : vector<8x128xf32>, vector<128x256xf32>, vector<8x256xf32> -> vector<8x256xf32>
    %cst_32 = arith.constant dense<0.000000e+00> : vector<8x256xf32>
    %52 = tpu.matmul %50, %5, %cst_32 {dimension_numbers = #tpu.dot_dimension_numbers<[1], [0], [0], [1], [0, 0, 1, 1], [], []>} : vector<8x128xf32>, vector<128x256xf32>, vector<8x256xf32> -> vector<8x256xf32>
    %c0_33 = arith.constant 0 : index
    %c0_34 = arith.constant 0 : index
    %53 = vector.load %arg11[%c0_33, %c0_34] : memref<32x16xf32, #tpu.memory_space<vmem>>, vector<32x16xf32>
    %54 = vector.extract_strided_slice %53 {offsets = [0, 0], sizes = [32, 8], strides = [1, 1]} : vector<32x16xf32> to vector<32x8xf32>
    %cst_35 = arith.constant dense<0.000000e+00> : vector<32x256xf32>
    %55 = tpu.matmul %54, %51, %cst_35 {dimension_numbers = #tpu.dot_dimension_numbers<[1], [0], [0], [1], [0, 0, 1, 1], [], []>} : vector<32x8xf32>, vector<8x256xf32>, vector<32x256xf32> -> vector<32x256xf32>
    %56 = vector.extract_strided_slice %53 {offsets = [0, 8], sizes = [32, 8], strides = [1, 1]} : vector<32x16xf32> to vector<32x8xf32>
    %57 = arith.subf %52, %51 : vector<8x256xf32>
    %cst_36 = arith.constant dense<0.000000e+00> : vector<32x256xf32>
    %58 = tpu.matmul %56, %57, %cst_36 {dimension_numbers = #tpu.dot_dimension_numbers<[1], [0], [0], [1], [0, 0, 1, 1], [], []>} : vector<32x8xf32>, vector<8x256xf32>, vector<32x256xf32> -> vector<32x256xf32>
    %59 = arith.addf %55, %58 : vector<32x256xf32>
    %c0_37 = arith.constant 0 : index
    %c0_38 = arith.constant 0 : index
    %60 = vector.load %arg12[%c0_37, %c0_38] : memref<32x1xf32, #tpu.memory_space<vmem>>, vector<32x1xf32>
    %61 = vector.broadcast %60 : vector<32x1xf32> to vector<32x256xf32>
    %62 = arith.addf %59, %61 : vector<32x256xf32>
    %cst_39 = arith.constant 0.000000e+00 : f32
    %63 = vector.broadcast %cst_39 : f32 to vector<32x256xf32>
    %64 = arith.maximumf %62, %63 : vector<32x256xf32>
    %c0_40 = arith.constant 0 : index
    %c0_41 = arith.constant 0 : index
    %65 = vector.load %arg13[%c0_40, %c0_41] : memref<32x32xf32, #tpu.memory_space<vmem>>, vector<32x32xf32>
    %cst_42 = arith.constant dense<0.000000e+00> : vector<32x256xf32>
    %66 = tpu.matmul %65, %64, %cst_42 {dimension_numbers = #tpu.dot_dimension_numbers<[1], [0], [0], [1], [0, 0, 1, 1], [], []>} : vector<32x32xf32>, vector<32x256xf32>, vector<32x256xf32> -> vector<32x256xf32>
    %c0_43 = arith.constant 0 : index
    %c0_44 = arith.constant 0 : index
    %67 = vector.load %arg14[%c0_43, %c0_44] : memref<32x1xf32, #tpu.memory_space<vmem>>, vector<32x1xf32>
    %68 = vector.broadcast %67 : vector<32x1xf32> to vector<32x256xf32>
    %69 = arith.addf %66, %68 : vector<32x256xf32>
    %cst_45 = arith.constant 0.000000e+00 : f32
    %70 = vector.broadcast %cst_45 : f32 to vector<32x256xf32>
    %71 = arith.maximumf %69, %70 : vector<32x256xf32>
    %c0_46 = arith.constant 0 : index
    %c0_47 = arith.constant 0 : index
    %72 = vector.load %arg15[%c0_46, %c0_47] : memref<8x32xf32, #tpu.memory_space<vmem>>, vector<8x32xf32>
    %cst_48 = arith.constant dense<0.000000e+00> : vector<8x256xf32>
    %73 = tpu.matmul %72, %71, %cst_48 {dimension_numbers = #tpu.dot_dimension_numbers<[1], [0], [0], [1], [0, 0, 1, 1], [], []>} : vector<8x32xf32>, vector<32x256xf32>, vector<8x256xf32> -> vector<8x256xf32>
    %c0_49 = arith.constant 0 : index
    %c0_50 = arith.constant 0 : index
    %74 = vector.load %arg16[%c0_49, %c0_50] : memref<8x1xf32, #tpu.memory_space<vmem>>, vector<8x1xf32>
    %75 = vector.broadcast %74 : vector<8x1xf32> to vector<8x256xf32>
    %76 = arith.addf %73, %75 : vector<8x256xf32>
    %cst_51 = arith.constant 0.000000e+00 : f32
    %77 = vector.broadcast %cst_51 : f32 to vector<8x256xf32>
    %78 = arith.maximumf %76, %77 : vector<8x256xf32>
    %79 = vector.shape_cast %78 : vector<8x256xf32> to vector<8x1x256xf32>
    %80 = vector.shape_cast %10 : vector<128x256xf32> to vector<1x128x256xf32>
    %81 = vector.broadcast %79 : vector<8x1x256xf32> to vector<8x128x256xf32>
    %82 = vector.broadcast %80 : vector<1x128x256xf32> to vector<8x128x256xf32>
    %83 = arith.mulf %81, %82 : vector<8x128x256xf32>
    %cst_52 = arith.constant dense<0xFF800000> : vector<8x128xf32>
    %84 = vector.multi_reduction <maximumf>, %83, %cst_52 [2] : vector<8x128x256xf32> to vector<8x128xf32>
    %c0_53 = arith.constant 0 : index
    %c0_54 = arith.constant 0 : index
    %85 = vector.load %arg17[%c0_53, %c0_54] : memref<128x8xf32, #tpu.memory_space<vmem>>, vector<128x8xf32>
    %cst_55 = arith.constant dense<0.000000e+00> : vector<128x128xf32>
    %86 = tpu.matmul %85, %84, %cst_55 {dimension_numbers = #tpu.dot_dimension_numbers<[1], [0], [0], [1], [0, 0, 1, 1], [], []>} : vector<128x8xf32>, vector<8x128xf32>, vector<128x128xf32> -> vector<128x128xf32>
    %c0_56 = arith.constant 0 : index
    %c0_57 = arith.constant 0 : index
    %87 = vector.load %arg18[%c0_56, %c0_57] : memref<128x1xf32, #tpu.memory_space<vmem>>, vector<128x1xf32>
    %88 = vector.broadcast %87 : vector<128x1xf32> to vector<128x128xf32>
    %89 = arith.addf %86, %88 : vector<128x128xf32>
    %cst_58 = arith.constant 0.000000e+00 : f32
    %90 = vector.broadcast %cst_58 : f32 to vector<128x128xf32>
    %91 = arith.maximumf %89, %90 : vector<128x128xf32>
    %c0_59 = arith.constant 0 : index
    %c0_60 = arith.constant 0 : index
    %92 = vector.load %arg19[%c0_59, %c0_60] : memref<128x128xf32, #tpu.memory_space<vmem>>, vector<128x128xf32>
    %cst_61 = arith.constant dense<0.000000e+00> : vector<128x128xf32>
    %93 = tpu.matmul %92, %91, %cst_61 {dimension_numbers = #tpu.dot_dimension_numbers<[1], [0], [0], [1], [0, 0, 1, 1], [], []>} : vector<128x128xf32>, vector<128x128xf32>, vector<128x128xf32> -> vector<128x128xf32>
    %c0_62 = arith.constant 0 : index
    %c0_63 = arith.constant 0 : index
    %94 = vector.load %arg20[%c0_62, %c0_63] : memref<128x1xf32, #tpu.memory_space<vmem>>, vector<128x1xf32>
    %95 = vector.broadcast %94 : vector<128x1xf32> to vector<128x128xf32>
    %96 = arith.addf %93, %95 : vector<128x128xf32>
    %cst_64 = arith.constant 0.000000e+00 : f32
    %97 = vector.broadcast %cst_64 : f32 to vector<128x128xf32>
    %98 = arith.maximumf %96, %97 : vector<128x128xf32>
    %c0_65 = arith.constant 0 : index
    %c0_66 = arith.constant 0 : index
    %99 = vector.load %arg21[%c0_65, %c0_66] : memref<1x128xf32, #tpu.memory_space<vmem>>, vector<1x128xf32>
    %cst_67 = arith.constant dense<0.000000e+00> : vector<1x128xf32>
    %100 = tpu.matmul %99, %98, %cst_67 {dimension_numbers = #tpu.dot_dimension_numbers<[1], [0], [0], [1], [0, 0, 1, 1], [], []>} : vector<1x128xf32>, vector<128x128xf32>, vector<1x128xf32> -> vector<1x128xf32>
    %c0_68 = arith.constant 0 : index
    %c0_69 = arith.constant 0 : index
    %101 = vector.load %arg22[%c0_68, %c0_69] : memref<1x1xf32, #tpu.memory_space<vmem>>, vector<1x1xf32>
    %102 = vector.broadcast %101 : vector<1x1xf32> to vector<1x128xf32>
    %103 = arith.addf %100, %102 : vector<1x128xf32>
    %c0_70 = arith.constant 0 : index
    %c0_71 = arith.constant 0 : index
    %104 = vector.load %arg23[%c0_70, %c0_71] : memref<1x128xf32, #tpu.memory_space<vmem>>, vector<1x128xf32>
    tpu.vector_store %arg23[%c0_70, %c0_71], %103 {strides = array<i32>} : memref<1x128xf32, #tpu.memory_space<vmem>>, vector<1x128xf32>,
    return
  }
}

</mosaic_0001>

<bundles_post_ra>
// kernel: forward.1
= control target key start
LH: loop header
LB: loop body
LE: loop exit
PB: predicated region body
PF: predicated region fallthrough
CT: control target
= control target key end

     0   :  { %s10483_s0 = inlined_call_operand.vmem [shape: f32[3,128], index: 0, kind: input, shape index: {}]   ;;  %s10484_s1 = inlined_call_operand.vmem [shape: s32[1,256], index: 1, kind: input, shape index: {}]   ;;  %s10485_s2 = inlined_call_operand.vmem [shape: s32[1,256], index: 2, kind: input, shape index: {}]   ;;  %s10486_s3 = inlined_call_operand.vmem [shape: f32[8,3], index: 3, kind: input, shape index: {}]   ;;  %s10487_s4 = inlined_call_operand.vmem [shape: f32[8,1], index: 4, kind: input, shape index: {}]   ;;  %s10488_s5 = inlined_call_operand.vmem [shape: f32[32,16], index: 5, kind: input, shape index: {}]   ;;  %s10489_s6 = inlined_call_operand.vmem [shape: f32[32,1], index: 6, kind: input, shape index: {}]   ;;  %s10490_s7 = inlined_call_operand.vmem [shape: f32[32,32], index: 7, kind: input, shape index: {}]   ;;  %s10491_s8 = inlined_call_operand.vmem [shape: f32[32,1], index: 8, kind: input, shape index: {}]   ;;  %s10492_s9 = inlined_call_operand.vmem [shape: f32[8,32], index: 9, kind: input, shape index: {}]   ;;  %s10493_s10 = inlined_call_operand.vmem [shape: f32[8,1], index: 10, kind: input, shape index: {}]   ;;  %s10494_s11 = inlined_call_operand.vmem [shape: f32[32,16], index: 11, kind: input, shape index: {}]   ;;  %s10495_s12 = inlined_call_operand.vmem [shape: f32[32,1], index: 12, kind: input, shape index: {}]   ;;  %s10496_s13 = inlined_call_operand.vmem [shape: f32[32,32], index: 13, kind: input, shape index: {}]   ;;  %s10497_s14 = inlined_call_operand.vmem [shape: f32[32,1], index: 14, kind: input, shape index: {}]   ;;  %s10498_s15 = inlined_call_operand.vmem [shape: f32[8,32], index: 15, kind: input, shape index: {}]   ;;  %s10499_s16 = inlined_call_operand.vmem [shape: f32[8,1], index: 16, kind: input, shape index: {}]   ;;  %s10500_s17 = inlined_call_operand.vmem [shape: f32[128,8], index: 17, kind: input, shape index: {}]   ;;  %s10501_s18 = inlined_call_operand.vmem [shape: f32[128,1], index: 18, kind: input, shape index: {}]   ;;  %s10502_s19 = inlined_call_operand.vmem [shape: f32[128,128], index: 19, kind: input, shape index: {}]   ;;  %s10503_s20 = inlined_call_operand.vmem [shape: f32[128,1], index: 20, kind: input, shape index: {}]   ;;  %s10504_s21 = inlined_call_operand.vmem [shape: f32[1,128], index: 21, kind: input, shape index: {}]   ;;  %s10505_s22 = inlined_call_operand.<no memory space> [shape: f32[1,1], index: 22, kind: input, shape index: {}]   ;;  %s10506_s23 = inlined_call_operand.hbm [shape: f32[1,128], index: 23, kind: output, shape index: {}]  }
   0x1   :  { %10854 = sst [smem:[#allocation120_spill]] %s10483_s0  ;;  %v28_v0 = vstv %s10505_s22 }
   0x2   :  { %10855 = sst [smem:[#allocation121_spill]] %s10484_s1  ;;  %29 = vst [vmem:[#allocation2] sm:$0x1] %v28_v0 }
   0x3   :  { %10856 = sst [smem:[#allocation122_spill]] %s10485_s2 }
   0x4   :  { %10857 = sst [smem:[#allocation123_spill]] %s10486_s3 }
   0x5   :  { %10858 = sst [smem:[#allocation124_spill]] %s10487_s4 }
   0x6   :  { %10859 = sst [smem:[#allocation125_spill]] %s10488_s5 }
   0x7   :  { %10860 = sst [smem:[#allocation126_spill]] %s10489_s6 }
   0x8   :  { %10861 = sst [smem:[#allocation127_spill]] %s10490_s7 }
   0x9   :  { %s10862_s5 = sld [smem:[#allocation120_spill]]  ;;  %vm316_vm0 = vcmask 1042432   ;;  %s10863_s2 = sld [smem:[#allocation123_spill]]  ;;  %v10541_v3 = vlaneseq  ;;  %v10544_v4 = vmov 0.0   ;;  %vm10510_vm1 = vmmov 0  }
   0xa   :  { %5733 = vmatprep.subr.mxu0 %v10544_v4  ;;  %5735 = vmatprep.mubr.msk.f32.mxu0 %vm10510_vm1, %v10544_v4  ;;  %vm312_vm2 = vcmask 23552   ;;  %s10864_s27 = sld [smem:[#allocation124_spill]]  ;;  %v6125_v6 = vmov 0   ;;  %s10866_s29 = sld [smem:[#allocation125_spill]] }
   0xb   :  { %6097 = vset.pattern.permute.xlu0 %v6125_v6  ;;  %v6267_v7 = vshrl.u32 %v10541_v3, 7  ;;  %s10867_s4 = sld [smem:[#allocation122_spill]]  ;;  %s10868_s25 = sld [smem:[#allocation121_spill]]  ;;  %454 = vmatprep.mubr.f32.mxu1 %v10544_v4 }
   0xd   :  { %10865 = vst [vmem:[#allocation6_spill] sm:$0xff] %v6267_v7  ;;  %v6281_v11 = vadd.s32 8, %v6267_v7  ;;  %v6284_v12 = vsub.s32 1, %v6267_v7  ;;  %v6287_v13 = vsub.s32 0, %v6267_v7 }
   0xf   :  { %v305_v1 = vld [vmem:[%s10862_s5] sm:$0x7]  ;;  %10869 = vst [vmem:[#allocation7_spill] sm:$0xff] %v6284_v12  ;;  %10870 = vst [vmem:[#allocation8_spill] sm:$0xff] %v6287_v13 }
  0x10   :  { %v304_v2 = vld [vmem:[%s10863_s2] sm:$0xff]  ;;  %5734 = vmatpush3.msk.msra.mxu0 %vm316_vm0, %v305_v1  ;;  %v6272_v8 = vld [vmem:[%s10866_s29 + $0x10] sm:$0xff] }
  0x11   :  { %v306_v5 = vld [vmem:[%s10864_s27] sm:$0xff]  ;;  %5736 = vmatmul.mubr.msk.f32.vlgmr.msra.gmra.mrb[0].mxu0 %vm312_vm2, %v304_v2 }
  0x12   :  { %309 = vperm.xlu0 %6097, %v306_v5   ;;  %v199_v9 = vld [vmem:[%s10867_s4] sm:$0x3]  ;;  %525 = vmatprep.mubr.f32.mxu0 %v10544_v4 }
  0x13   :  { %v94_v10 = vld [vmem:[%s10868_s25] sm:$0x3] }
  0x14   :  { %30 = vsyncpa [#allocation4], 0  ;;  %6098 = vset.pattern.permute.xlu1 %v6125_v6  ;;  %v6292_v14 = vrot.slane %v199_v9, %v6284_v12  ;;  %v6295_v15 = vrot.slane %v94_v10, %v6287_v13  ;;  %v6298_v16 = vrot.slane %v94_v10, %v6284_v12  ;;  %v6301_v17 = vrot.slane %v199_v9, %v6287_v13  ;;  %s6126_s5 = smov 120   ;;  %v6314_v20 = vld [vmem:[%s10866_s29 + $0x8] sm:$0xff]  ;;  %s10877_s6 = sld [smem:[#allocation126_spill]]  ;;  %v792_v48 = vld [vmem:[%s10491_s8 + $0x18] sm:$0xff] }
  0x15   :  { %v6306_v18 = vadd.s32 16, %v6267_v7  ;;  %v6309_v19 = vadd.s32 24, %v6267_v7  ;;  %v10542_v22 = vmov 1.0|1.0   ;;  %v10873_v23 = vmov 0  ;;  %v790_v40 = vld [vmem:[%s10491_s8 + $0x8] sm:$0xff] }
  0x16   :  { %546 = vrot.lane.b32.xlu0 %v6272_v8, %s6126_s5  ;;  %vm10512_vm3 = vcmp.eq.s32.totalorder %v6292_v14, %v6267_v7  ;;  %vm10518_vm4 = vcmp.eq.s32.totalorder %v6292_v14, %v6281_v11  ;;  %vm104_vm5 = vcmp.eq.s32.totalorder %v6298_v16, %v6267_v7  ;;  %vm106_vm6 = vcmp.eq.s32.totalorder %v6298_v16, %v6281_v11  ;;  %v535_v10 = vld [vmem:[%s10866_s29 + $0x18] sm:$0xff] }
  0x17   :  { %vm6330_vm7 = vmpackc.low %vm10518_vm4, %vm10512_vm3  ;;  %vm10511_vm8 = vcmp.eq.s32.totalorder %v6301_v17, %v6267_v7  ;;  %vm10515_vm9 = vcmp.eq.s32.totalorder %v6301_v17, %v6281_v11  ;;  %vm103_vm11 = vcmp.eq.s32.totalorder %v6295_v15, %v6267_v7  ;;  %vm105_vm12 = vcmp.eq.s32.totalorder %v6295_v15, %v6281_v11  ;;  %548 = vrot.lane.b32.xlu1 %v535_v10, %s6126_s5 }
  0x18   :  { %5856 = vmatprep.subr.msk.bf16.mxu1 %vm6330_vm7, %v10542_v22  ;;  %vm6341_vm10 = vmpackc.low %vm106_vm6, %vm104_vm5  ;;  %v6350_v24 = vadd.s32 32, %v6267_v7  ;;  %v6353_v25 = vadd.s32 40, %v6267_v7  ;;  %vm10514_vm14 = vcmp.eq.s32.totalorder %v6292_v14, %v6306_v18  ;;  %vm10513_vm15 = vcmp.eq.s32.totalorder %v6292_v14, %v6309_v19 }
  0x19   :  { %v10874_v23 = vsel %vm6341_vm10, 4294967295, %v10873_v23  ;;  %5888 = vmatprep.subr.msk.bf16.mxu0 %vm6341_vm10, %v10542_v22  ;;  %vm6366_vm13 = vmpackc.low %vm10515_vm9, %vm10511_vm8  ;;  %vm108_vm0 = vcmp.eq.s32.totalorder %v6298_v16, %v6306_v18  ;;  %v10878_v28 = vmov 0  ;;  %vm110_vm5 = vcmp.eq.s32.totalorder %v6298_v16, %v6309_v19 }
  0x1a   :  { %544 = vrot.lane.b32.xlu0 %v6314_v20, %s6126_s5  ;;  %v746_v27 = vld [vmem:[%s10877_s6 + $0x8] sm:$0xff]  ;;  %5858 = vmatpush1.bf16.msk.msra.mxu1 %vm6366_vm13, %v10542_v22  ;;  %vm6382_vm2 = vmpackc.low %vm105_vm12, %vm103_vm11  ;;  %vm10517_vm6 = vcmp.eq.s32.totalorder %v6301_v17, %v6306_v18  ;;  %vm10516_vm12 = vcmp.eq.s32.totalorder %v6301_v17, %v6309_v19  ;;  %vm107_vm1 = vcmp.eq.s32.totalorder %v6295_v15, %v6306_v18  ;;  %v10882_v30 = vmov 0  ;;  %v748_v34 = vld [vmem:[%s10877_s6 + $0x18] sm:$0xff] }
  0x1b   :  { %v10879_v28 = vsel %vm6382_vm2, 4294967295, %v10878_v28  ;;  %5890 = vmatpush1.bf16.msk.msra.mxu0 %vm6382_vm2, %v10542_v22  ;;  %vm6399_vm11 = vmpackc.low %vm10513_vm15, %vm10514_vm14  ;;  %vm109_vm8 = vcmp.eq.s32.totalorder %v6295_v15, %v6309_v19  ;;  %vm10520_vm15 = vcmp.eq.s32.totalorder %v6292_v14, %v6350_v24  ;;  %vm10519_vm14 = vcmp.eq.s32.totalorder %v6292_v14, %v6353_v25  ;;  %v747_v3 = vld [vmem:[%s10877_s6 + $0x10] sm:$0xff] }
  0x1c   :  { %5860 = vmatprep.subr.msk.bf16.mxu1 %vm6399_vm11, %v10542_v22  ;;  %vm6412_vm3 = vmpackc.low %vm110_vm5, %vm108_vm0  ;;  %v6421_v31 = vadd.s32 48, %v6267_v7  ;;  %v6424_v32 = vadd.s32 56, %v6267_v7  ;;  %vm112_vm5 = vcmp.eq.s32.totalorder %v6298_v16, %v6350_v24  ;;  %vm114_vm9 = vcmp.eq.s32.totalorder %v6298_v16, %v6353_v25 }
  0x1d   :  { %v10883_v30 = vsel %vm6412_vm3, 4294967295, %v10882_v30  ;;  %5892 = vmatprep.subr.msk.bf16.mxu0 %vm6412_vm3, %v10542_v22  ;;  %vm6435_vm0 = vmpackc.low %vm10516_vm12, %vm10517_vm6  ;;  %v10886_v35 = vmov 0  ;;  %vm113_vm4 = vcmp.eq.s32.totalorder %v6295_v15, %v6353_v25  ;;  %v10890_v37 = vmov 0 }
  0x1e   :  { %756 = vperm.xlu0 %6097, %v746_v27   ;;  %5862 = vmatpush1.bf16.msk.msra.mxu1 %vm6435_vm0, %v10542_v22  ;;  %vm6452_vm12 = vmpackc.low %vm109_vm8, %vm107_vm1  ;;  %vm111_vm8 = vcmp.eq.s32.totalorder %v6295_v15, %v6350_v24  ;;  %v6489_v38 = vadd.s32 64, %v6267_v7  ;;  %v10896_v41 = vmov 0  ;;  %v6523_v42 = vadd.s32 72, %v6267_v7 }
  0x1f   :  { %v10887_v35 = vsel %vm6452_vm12, 4294967295, %v10886_v35  ;;  %5894 = vmatpush1.bf16.msk.msra.mxu0 %vm6452_vm12, %v10542_v22  ;;  %vm6469_vm1 = vmpackc.low %vm10519_vm14, %vm10520_vm15  ;;  %vm116_vm15 = vcmp.eq.s32.totalorder %v6298_v16, %v6421_v31  ;;  %vm118_vm14 = vcmp.eq.s32.totalorder %v6298_v16, %v6424_v32  ;;  %vm10898_vm3 = vcmp.eq.s32.totalorder %v6292_v14, %v6421_v31 }
  0x20   :  { %5864 = vmatprep.subr.msk.bf16.mxu1 %vm6469_vm1, %v10542_v22  ;;  %vm6480_vm6 = vmpackc.low %vm114_vm9, %vm112_vm5  ;;  %vm10892_vm9 = vcmp.eq.s32.totalorder %v6301_v17, %v6350_v24  ;;  %vm10893_vm5 = vcmp.eq.s32.totalorder %v6301_v17, %v6353_v25  ;;  %v10902_v44 = vmov 0  ;;  %v6554_v45 = vadd.s32 80, %v6267_v7 }
  0x21   :  { %v10891_v37 = vsel %vm6480_vm6, 4294967295, %v10890_v37  ;;  %5896 = vmatprep.subr.msk.bf16.mxu0 %vm6480_vm6, %v10542_v22  ;;  %vm6500_vm12 = vmpackc.low %vm10893_vm5, %vm10892_vm9  ;;  %vm117_vm9 = vcmp.eq.s32.totalorder %v6295_v15, %v6424_v32  ;;  %v10907_v46 = vmov 0  ;;  %v6574_v47 = vadd.s32 88, %v6267_v7 }
  0x22   :  { %766 = vperm.xlu0 %6097, %v748_v34   ;;  %5866 = vmatpush1.bf16.msk.msra.mxu1 %vm6500_vm12, %v10542_v22  ;;  %vm6514_vm6 = vmpackc.low %vm113_vm4, %vm111_vm8  ;;  %vm10899_vm4 = vcmp.eq.s32.totalorder %v6292_v14, %v6424_v32  ;;  %10904 = vst [vmem:[#allocation9_spill] sm:$0xff] %v6554_v45  ;;  %v10910_v49 = vmov 0  ;;  %vm10912_vm10 = vcmp.eq.s32.totalorder %v6292_v14, %v6489_v38  ;;  %v10914_v50 = vmov 0 }
  0x23   :  { %v10897_v41 = vsel %vm6514_vm6, 4294967295, %v10896_v41  ;;  %5898 = vmatpush1.bf16.msk.msra.mxu0 %vm6514_vm6, %v10542_v22  ;;  %vm6534_vm8 = vmpackc.low %vm10899_vm4, %vm10898_vm3  ;;  %vm120_vm4 = vcmp.eq.s32.totalorder %v6298_v16, %v6489_v38  ;;  %vm122_vm3 = vcmp.eq.s32.totalorder %v6298_v16, %v6523_v42  ;;  %vm121_vm2 = vcmp.eq.s32.totalorder %v6295_v15, %v6523_v42 }
  0x24   :  { %5868 = vmatprep.subr.msk.bf16.mxu1 %vm6534_vm8, %v10542_v22  ;;  %vm6545_vm6 = vmpackc.low %vm118_vm14, %vm116_vm15  ;;  %vm10905_vm14 = vcmp.eq.s32.totalorder %v6301_v17, %v6421_v31  ;;  %vm10906_vm15 = vcmp.eq.s32.totalorder %v6301_v17, %v6424_v32  ;;  %v10916_v51 = vmov 0  ;;  %v10920_v52 = vmov 0 }
  0x25   :  { %v10903_v44 = vsel %vm6545_vm6, 4294967295, %v10902_v44  ;;  %5900 = vmatprep.subr.msk.bf16.mxu0 %vm6545_vm6, %v10542_v22  ;;  %vm6565_vm5 = vmpackc.low %vm10906_vm15, %vm10905_vm14  ;;  %vm10909_vm14 = vcmp.eq.s32.totalorder %v6295_v15, %v6421_v31  ;;  %v6639_v53 = vadd.s32 96, %v6267_v7  ;;  %v6642_v54 = vadd.s32 104, %v6267_v7 }
  0x26   :  { %800 = vperm.xlu0 %6097, %v790_v40   ;;  %v10908_v46 = vsel %vm6565_vm5, 4294967295, %v10907_v46  ;;  %5870 = vmatpush1.bf16.msk.msra.mxu1 %vm6565_vm5, %v10542_v22  ;;  %vm6585_vm15 = vmpackc.low %vm117_vm9, %vm10909_vm14  ;;  %vm10913_vm5 = vcmp.eq.s32.totalorder %v6292_v14, %v6523_v42  ;;  %vm119_vm14 = vcmp.eq.s32.totalorder %v6295_v15, %v6489_v38  ;;  %v10923_v55 = vmov 0 }
  0x27   :  { %v10911_v49 = vsel %vm6585_vm15, 4294967295, %v10910_v49  ;;  %5902 = vmatpush1.bf16.msk.msra.mxu0 %vm6585_vm15, %v10542_v22  ;;  %vm6602_vm9 = vmpackc.low %vm10913_vm5, %vm10912_vm10  ;;  %vm10918_vm15 = vcmp.eq.s32.totalorder %v6301_v17, %v6489_v38  ;;  %vm124_vm10 = vcmp.eq.s32.totalorder %v6298_v16, %v6554_v45  ;;  %vm126_vm5 = vcmp.eq.s32.totalorder %v6298_v16, %v6574_v47  ;;  %10922 = vst [vmem:[#allocation10_spill] sm:$0xff] %v6642_v54 }
  0x28   :  { %v10915_v50 = vsel %vm6602_vm9, 4294967295, %v10914_v50  ;;  %5872 = vmatprep.subr.msk.bf16.mxu1 %vm6602_vm9, %v10542_v22  ;;  %vm6613_vm6 = vmpackc.low %vm122_vm3, %vm120_vm4  ;;  %vm10919_vm3 = vcmp.eq.s32.totalorder %v6301_v17, %v6523_v42  ;;  %vm10925_vm9 = vcmp.eq.s32.totalorder %v6292_v14, %v6554_v45  ;;  %v10927_v56 = vmov 0 }
  0x29   :  { %v10917_v51 = vsel %vm6613_vm6, 4294967295, %v10916_v51  ;;  %5904 = vmatprep.subr.msk.bf16.mxu0 %vm6613_vm6, %v10542_v22  ;;  %vm6630_vm4 = vmpackc.low %vm10919_vm3, %vm10918_vm15  ;;  %vm125_vm6 = vcmp.eq.s32.totalorder %v6295_v15, %v6574_v47  ;;  %v10929_v57 = vmov 0  ;;  %v6684_v58 = vadd.s32 112, %v6267_v7 }
  0x2a   :  { %810 = vperm.xlu0 %6097, %v792_v48   ;;  %v10921_v52 = vsel %vm6630_vm4, 4294967295, %v10920_v52  ;;  %5874 = vmatpush1.bf16.msk.msra.mxu1 %vm6630_vm4, %v10542_v22  ;;  %vm6647_vm15 = vmpackc.low %vm121_vm2, %vm119_vm14  ;;  %vm10926_vm4 = vcmp.eq.s32.totalorder %v6292_v14, %v6574_v47  ;;  %vm123_vm14 = vcmp.eq.s32.totalorder %v6295_v15, %v6554_v45  ;;  %v6687_v59 = vadd.s32 120, %v6267_v7  ;;  %v745_v48 = vld [vmem:[%s10877_s6] sm:$0xff]  ;;  %s10968_s6 = sld [smem:[#allocation127_spill]] }
  0x2b   :  { %v10924_v55 = vsel %vm6647_vm15, 4294967295, %v10923_v55  ;;  %5906 = vmatpush1.bf16.msk.msra.mxu0 %vm6647_vm15, %v10542_v22  ;;  %vm6664_vm2 = vmpackc.low %vm10926_vm4, %vm10925_vm9  ;;  %v10934_v60 = vmov 0  ;;  %vm128_vm4 = vcmp.eq.s32.totalorder %v6298_v16, %v6639_v53  ;;  %vm130_vm15 = vcmp.eq.s32.totalorder %v6298_v16, %v6642_v54 }
  0x2c   :  { %v10928_v56 = vsel %vm6664_vm2, 4294967295, %v10927_v56  ;;  %5876 = vmatprep.subr.msk.bf16.mxu1 %vm6664_vm2, %v10542_v22  ;;  %vm6675_vm3 = vmpackc.low %vm126_vm5, %vm124_vm10  ;;  %10931 = vst [vmem:[#allocation11_spill] sm:$0xff] %v6687_v59  ;;  %vm10932_vm10 = vcmp.eq.s32.totalorder %v6301_v17, %v6554_v45  ;;  %vm10933_vm5 = vcmp.eq.s32.totalorder %v6301_v17, %v6574_v47  ;;  %v10936_v61 = vmov 0 }
  0x2d   :  { %v10930_v57 = vsel %vm6675_vm3, 4294967295, %v10929_v57  ;;  %5908 = vmatprep.subr.msk.bf16.mxu0 %vm6675_vm3, %v10542_v22  ;;  %vm6698_vm9 = vmpackc.low %vm10933_vm5, %vm10932_vm10  ;;  %vm10938_vm2 = vcmp.eq.s32.totalorder %v6292_v14, %v6639_v53  ;;  %v10940_v62 = vmov 0  ;;  %vm129_vm5 = vcmp.eq.s32.totalorder %v6295_v15, %v6642_v54 }
  0x2e   :  { %v10935_v60 = vsel %vm6698_vm9, 4294967295, %v10934_v60  ;;  %5878 = vmatpush1.bf16.msk.msra.mxu1 %vm6698_vm9, %v10542_v22  ;;  %vm6709_vm3 = vmpackc.low %vm125_vm6, %vm123_vm14  ;;  %vm10939_vm9 = vcmp.eq.s32.totalorder %v6292_v14, %v6642_v54  ;;  %vm127_vm14 = vcmp.eq.s32.totalorder %v6295_v15, %v6639_v53  ;;  %v10942_v63 = vmov 0 }
  0x2f   :  { %v10937_v61 = vsel %vm6709_vm3, 4294967295, %v10936_v61  ;;  %5910 = vmatpush1.bf16.msk.msra.mxu0 %vm6709_vm3, %v10542_v22  ;;  %vm6726_vm6 = vmpackc.low %vm10939_vm9, %vm10938_vm2  ;;  %vm10944_vm3 = vcmp.eq.s32.totalorder %v6301_v17, %v6639_v53  ;;  %vm134_vm9 = vcmp.eq.s32.totalorder %v6298_v16, %v6687_v59  ;;  %v10948_v1 = vmov 0 }
  0x30   :  { %v10941_v62 = vsel %vm6726_vm6, 4294967295, %v10940_v62  ;;  %5880 = vmatprep.subr.msk.bf16.mxu1 %vm6726_vm6, %v10542_v22  ;;  %vm6737_vm10 = vmpackc.low %vm130_vm15, %vm128_vm4  ;;  %vm10945_vm6 = vcmp.eq.s32.totalorder %v6301_v17, %v6642_v54  ;;  %vm132_vm4 = vcmp.eq.s32.totalorder %v6298_v16, %v6684_v58 }
  0x31   :  { %v10943_v63 = vsel %vm6737_vm10, 4294967295, %v10942_v63  ;;  %5912 = vmatprep.subr.msk.bf16.mxu0 %vm6737_vm10, %v10542_v22  ;;  %vm6754_vm15 = vmpackc.low %vm10945_vm6, %vm10944_vm3  ;;  %vm10950_vm3 = vcmp.eq.s32.totalorder %v6292_v14, %v6684_v58  ;;  %vm10951_vm6 = vcmp.eq.s32.totalorder %v6292_v14, %v6687_v59 }
  0x32   :  { %5882 = vmatpush1.bf16.msk.msra.mxu1 %vm6754_vm15, %v10542_v22  ;;  %vm6765_vm2 = vmpackc.low %vm129_vm5, %vm127_vm14  ;;  %vm236_vm14 = vcmp.eq.s32.totalorder %v6301_v17, %v6684_v58 }
  0x33   :  { %v10949_v1 = vsel %vm6765_vm2, 4294967295, %v10948_v1  ;;  %5914 = vmatpush1.bf16.msk.msra.mxu0 %vm6765_vm2, %v10542_v22  ;;  %vm6778_vm10 = vmpackc.low %vm10951_vm6, %vm10950_vm3  ;;  %vm238_vm3 = vcmp.eq.s32.totalorder %v6301_v17, %v6687_v59  ;;  %vm131_vm6 = vcmp.eq.s32.totalorder %v6295_v15, %v6684_v58  ;;  %vm133_vm2 = vcmp.eq.s32.totalorder %v6295_v15, %v6687_v59  ;;  %v532_v15 = vld [vmem:[%s10866_s29] sm:$0xff] }
  0x34   :  { %5884 = vmatprep.subr.msk.bf16.mxu1 %vm6778_vm10, %v10542_v22  ;;  %vm6785_vm5 = vmpackc.low %vm134_vm9, %vm132_vm4  ;;  %542 = vrot.lane.b32.xlu1 %v532_v15, %s6126_s5 }
  0x35   :  { %5916 = vmatprep.subr.msk.bf16.mxu0 %vm6785_vm5, %v10542_v22  ;;  %vm6806_vm9 = vmpackc.low %vm238_vm3, %vm236_vm14 }
  0x36   :  { %5886 = vmatpush1.bf16.msk.msra.mxu1 %vm6806_vm9, %v10542_v22  ;;  %vm6813_vm4 = vmpackc.low %vm133_vm2, %vm131_vm6  ;;  %vm10686_vm2 = vcmask 64512   ;;  %vm10971_vm6 = vnez %v10883_v30 }
  0x37   :  { %5918 = vmatpush1.bf16.msk.msra.mxu0 %vm6813_vm4, %v10542_v22 }
  0x38   :  { %751 = vperm.xlu1 %6098, %v745_v48  }
  0x3c   :  { %761 = vperm.xlu1 %6098, %v747_v3  }
  0x91   :  { %v310_v16 = vpop.permute.xlu0 %309 }
  0xe4   :  { %v386_v27 = vpop.f32.mrb[0].mxu0 }
  0xe5   :  { %v387_v34 = vadd.f32 %v386_v27, %v310_v16  ;;  %v5737_v40 = vpop.f32.mrb[1].mxu0  ;;  %v789_v16 = vld [vmem:[%s10491_s8] sm:$0xff]  ;;  %v791_v27 = vld [vmem:[%s10491_s8 + $0x10] sm:$0xff] }
  0xe6   :  { %795 = vperm.xlu1 %6098, %v789_v16   ;;  %v549_v40 = vpop.permute.xlu1 %548  ;;  %v547_v16 = vpop.permute.xlu0 %546 }
  0xe7   :  { %455 = vmatmul.mubr.f32.vlgmr.msra.gmra.mrb[0].mxu1 %v387_v34  ;;  %526 = vmatmul.mubr.f32.vlgmr.msra.gmra.mrb[2].mxu0 %v387_v34  ;;  %v924_v34 = vld [vmem:[%s10493_s10] sm:$0xff]  ;;  %s6130_s10 = smov [#allocation3]  }
  0xe8   :  { %635 = vmatprep.mubr.f32.mxu1 %v10544_v4  ;;  %623 = vmatprep.mubr.f32.mxu0 %v10544_v4 }
  0xea   :  { %805 = vperm.xlu1 %6098, %v791_v27   ;;  %v543_v54 = vpop.permute.xlu1 %542  ;;  %v10960_v27 = vmov 0.0  }
  0xee   :  { %927 = vperm.xlu1 %6098, %v924_v34   ;;  %v10961_v34 = vmov 1.0|1.0   ;;  %v752_v39 = vpop.permute.xlu1 %751 }
 0x1ba   :  { %v456_v48 = vpop.f32.mrb[0].mxu1  ;;  %v527_v22 = vpop.f32.mrb[2].mxu0 }
 0x1bb   :  { %v536_v4 = vsub.f32 %v527_v22, %v456_v48  ;;  %v458_v3 = vpop.f32.mrb[1].mxu1  ;;  %v529_v45 = vpop.f32.mrb[3].mxu0 }
 0x1bc   :  { %v537_v59 = vsub.f32 %v529_v45, %v458_v3  ;;  %v545_v22 = vpop.permute.xlu0 %544 }
 0x1be   :  { %559 = vmatprep.subr.mxu0 %v537_v59  ;;  %6071 = vmatprep.subr.mxu1 %v537_v59 }
 0x1bf   :  { %560 = vmatpush1.msra.mxu0 %v536_v4  ;;  %6072 = vmatpush1.msra.mxu1 %v536_v4 }
 0x1c0   :  { %5561 = vmatmul.mubr.msk.f32.vlgmr.msra.gmra.mrb[2].mxu1 %vm10686_vm2, %v547_v16  ;;  %656 = vmatprep.subr.mxu1 %v458_v3 }
 0x1c1   :  { %657 = vmatpush1.msra.mxu1 %v456_v48  ;;  %641 = vmatprep.mubr.f32.mxu1 %v10960_v27 }
 0x1c2   :  { %5559 = vmatmul.mubr.msk.f32.vlgmr.msra.gmra.mrb[4].mxu0 %vm10686_vm2, %v543_v54  ;;  %5936 = vmatprep.subr.msk.bf16.mxu1 %vm6330_vm7, %v10961_v34  ;;  %vm10962_vm7 = vnez %v10908_v46 }
 0x1c3   :  { %629 = vmatprep.mubr.f32.mxu0 %v10960_v27 }
 0x1c4   :  { %5562 = vmatmul.mubr.msk.f32.gmra.mrb[4].mxu1 %vm10686_vm2, %v549_v40 }
 0x1c5   :  { %720 = vmatprep.mubr.f32.mxu1 %v10960_v27 }
 0x1c6   :  { %5560 = vmatmul.mubr.msk.f32.gmra.mrb[6].mxu0 %vm10686_vm2, %v545_v22 }
 0x1c7   :  { %890 = vmatprep.mubr.f32.mxu0 %v10960_v27 }
 0x1c8   :  { %5563 = vmatmul.mubr.msk.f32.vlgmr.msra.gmra.mrb[6].mxu1 %vm10686_vm2, %v532_v15 }
 0x1c9   :  { %726 = vmatprep.mubr.f32.mxu1 %v10960_v27  ;;  %5938 = vmatpush1.bf16.msk.msra.mxu1 %vm6366_vm13, %v10961_v34  ;;  %vm10963_vm13 = vnez %v10915_v50 }
 0x1ca   :  { %5940 = vmatprep.subr.msk.bf16.mxu1 %vm6399_vm11, %v10961_v34  ;;  %vm10964_vm11 = vnez %v10921_v52  ;;  %v757_v52 = vpop.permute.xlu0 %756 }
 0x1cc   :  { %5564 = vmatmul.mubr.msk.f32.gmra.mrb[8].mxu1 %vm10686_vm2, %v6314_v20 }
 0x1cd   :  { %732 = vmatprep.mubr.f32.mxu1 %v10960_v27  ;;  %5942 = vmatpush1.bf16.msk.msra.mxu1 %vm6435_vm0, %v10961_v34  ;;  %vm10966_vm0 = vnez %v10935_v60 }
 0x1ce   :  { %5944 = vmatprep.subr.msk.bf16.mxu1 %vm6469_vm1, %v10961_v34  ;;  %vm10967_vm1 = vnez %v10941_v62  ;;  %v767_v16 = vpop.permute.xlu0 %766 }
 0x1d0   :  { %5565 = vmatmul.mubr.msk.f32.gmra.mrb[2].mxu1 %vm10686_vm2, %v6272_v8 }
 0x1d1   :  { %738 = vmatprep.mubr.f32.mxu1 %v10960_v27  ;;  %5946 = vmatpush1.bf16.msk.msra.mxu1 %vm6500_vm12, %v10961_v34  ;;  %vm10965_vm12 = vnez %v10928_v56 }
 0x1d2   :  { %5948 = vmatprep.subr.msk.bf16.mxu1 %vm6534_vm8, %v10961_v34  ;;  %vm10668_vm8 = vcmask 261120  }
 0x1d4   :  { %5566 = vmatmul.mubr.msk.f32.gmra.mrb[4].mxu1 %vm10686_vm2, %v535_v10  ;;  %v762_v10 = vpop.permute.xlu1 %761  ;;  %vm10696_vm2 = vcmask 1041409  }
 0x1d5   :  { %5950 = vmatpush1.bf16.msk.msra.mxu1 %vm10962_vm7, %v10961_v34  ;;  %2649 = vmatprep.mubr.f32.mxu1 %v10960_v27  ;;  %vm10973_vm7 = vnez %v10891_v37 }
 0x1d6   :  { %5952 = vmatprep.subr.msk.bf16.mxu1 %vm10963_vm13, %v10961_v34  ;;  %vm10974_vm13 = vnez %v10897_v41 }
 0x1d9   :  { %5954 = vmatpush1.bf16.msk.msra.mxu1 %vm10964_vm11, %v10961_v34  ;;  %vm10975_vm11 = vnez %v10903_v44 }
 0x1da   :  { %5956 = vmatprep.subr.msk.bf16.mxu1 %vm10965_vm12, %v10961_v34  ;;  %vm10976_vm12 = vnez %v10911_v49 }
 0x1dd   :  { %5958 = vmatpush1.bf16.msk.msra.mxu1 %vm10966_vm0, %v10961_v34  ;;  %vm10977_vm0 = vnez %v10917_v51 }
 0x1de   :  { %5960 = vmatprep.subr.msk.bf16.mxu1 %vm10967_vm1, %v10961_v34  ;;  %vm10978_vm1 = vnez %v10924_v55 }
 0x1e1   :  { %5962 = vmatpush1.bf16.msk.msra.mxu1 %vm6754_vm15, %v10961_v34  ;;  %vm10970_vm15 = vnez %v10879_v28 }
 0x1e2   :  { %5964 = vmatprep.subr.msk.bf16.mxu1 %vm6778_vm10, %v10961_v34  ;;  %vm10969_vm10 = vnez %v10874_v23  ;;  %v6128_v23 = vmov 1966171168  }
 0x1e3   :  { %v1011_v28 = vunpack.c.l.s4 %v6128_v23 }
 0x1e5   :  { %5966 = vmatpush1.bf16.msk.msra.mxu1 %vm6806_vm9, %v10961_v34  ;;  %vm10972_vm9 = vnez %v10887_v35  ;;  %v1012_v37 = vunpack.c.0.s8 %v1011_v28 }
 0x295   :  { %v625_v4 = vpop.f32.mrb[4].mxu0 }
 0x296   :  { %v627_v8 = vpop.f32.mrb[5].mxu0 }
 0x299   :  { %v631_v20 = vpop.f32.mrb[6].mxu0 }
 0x29a   :  { %v633_v21 = vpop.f32.mrb[7].mxu0 }
 0x29b   :  { %v722_v26 = vpop.f32.mrb[6].mxu1 }
 0x29c   :  { %v723_v29 = vadd.f32 %v722_v26, %v625_v4  ;;  %v724_v33 = vpop.f32.mrb[7].mxu1 }
 0x29d   :  { %v725_v36 = vadd.f32 %v724_v33, %v627_v8 }
 0x29e   :  { %v769_v45 = vadd.f32 %v752_v39, %v723_v29 }
 0x29f   :  { %v728_v43 = vpop.f32.mrb[8].mxu1  ;;  %v770_v54 = vadd.f32 %v752_v39, %v725_v36 }
 0x2a0   :  { %v729_v46 = vadd.f32 %v728_v43, %v631_v20  ;;  %v730_v50 = vpop.f32.mrb[9].mxu1  ;;  %v777_v0 = vmax.f32 %v769_v45, 0.0 }
 0x2a1   :  { %v731_v56 = vadd.f32 %v730_v50, %v633_v21  ;;  %v778_v15 = vmax.f32 %v770_v54, 0.0  ;;  %v786_v50 = vld [vmem:[%s10968_s6 + $0x8] sm:$0xff]  ;;  %v788_v54 = vld [vmem:[%s10968_s6 + $0x18] sm:$0xff] }
 0x2a2   :  { %v771_v59 = vadd.f32 %v757_v52, %v729_v46  ;;  %v785_v46 = vld [vmem:[%s10968_s6] sm:$0xff] }
 0x2a3   :  { %v772_v60 = vadd.f32 %v757_v52, %v731_v56  ;;  %v734_v62 = vpop.f32.mrb[2].mxu1  ;;  %v787_v52 = vld [vmem:[%s10968_s6 + $0x10] sm:$0xff]  ;;  %s5421_s6 = sshll.u32 %s6130_s10, 4  ;;  %s5422_s6 = int_to_ptr.vmem [resolvable:$true] %s5421_s6 }
 0x2a4   :  { %v779_v2 = vmax.f32 %v771_v59, 0.0  ;;  %v736_v6 = vpop.f32.mrb[3].mxu1  ;;  %v773_v3 = vadd.f32 %v762_v10, %v734_v62  ;;  %s6099_s30 = scalar_lea.vmem %s5422_s6, 16  ;;  %p6104_p1 = scmp.lt.s32.totalorder %s5422_s6, %s5422_s6 }
 0x2a5   :  { %v780_v40 = vmax.f32 %v772_v60, 0.0  ;;  %v774_v22 = vadd.f32 %v762_v10, %v736_v6  ;;  %v796_v60 = vpop.permute.xlu1 %795  ;;  %p6100_p0 = scmp.ne.s32.totalorder %s5422_s6, %s6099_s30 }
 0x2a6   :  { %v5921_v48 = vpack.c.bf16 %v779_v2, %v777_v0  ;;  %v781_v21 = vmax.f32 %v773_v3, 0.0  ;;  %v801_v0 = vpop.permute.xlu0 %800 }
 0x2a7   :  { %v740_v4 = vpop.f32.mrb[4].mxu1  ;;  %v5919_v8 = vpack.c.bf16 %v780_v40, %v778_v15  ;;  %v782_v36 = vmax.f32 %v774_v22, 0.0 }
 0x2a8   :  { %v775_v20 = vadd.f32 %v767_v16, %v740_v4  ;;  %v742_v26 = vpop.f32.mrb[5].mxu1 }
 0x2a9   :  { %v776_v29 = vadd.f32 %v767_v16, %v742_v26  ;;  %5920 = vmatprep.subr.bf16.mxu0 %v5919_v8  ;;  %v806_v26 = vpop.permute.xlu1 %805 }
 0x2aa   :  { %v783_v33 = vmax.f32 %v775_v20, 0.0  ;;  %5922 = vmatpush1.bf16.msra.mxu0 %v5921_v48 }
 0x2ab   :  { %v784_v39 = vmax.f32 %v776_v29, 0.0 }
 0x2ac   :  { %v5925_v43 = vpack.c.bf16 %v783_v33, %v781_v21  ;;  %v811_v33 = vpop.permute.xlu0 %810 }
 0x2ad   :  { %v5923_v45 = vpack.c.bf16 %v784_v39, %v782_v36  ;;  %v928_v30 = vpop.permute.xlu1 %927 }
 0x2af   :  { %5924 = vmatprep.subr.bf16.mxu0 %v5923_v45 }
 0x2b0   :  { %5926 = vmatpush1.bf16.msra.mxu0 %v5925_v43 }
 0x2b3   :  { %5567 = vmatmul.mubr.msk.f32.vlgmr.msra.gmra.mrb[8].mxu0 %vm10668_vm8, %v785_v46 }
 0x2b4   :  { %896 = vmatprep.mubr.f32.mxu0 %v10960_v27 }
 0x2b7   :  { %5568 = vmatmul.mubr.msk.f32.gmra.mrb[10].mxu0 %vm10668_vm8, %v786_v50 }
 0x2b8   :  { %902 = vmatprep.mubr.f32.mxu0 %v10960_v27 }
 0x2bb   :  { %5569 = vmatmul.mubr.msk.f32.gmra.mrb[12].mxu0 %vm10668_vm8, %v787_v52 }
 0x2bc   :  { %908 = vmatprep.mubr.f32.mxu0 %v10960_v27 }
 0x2bf   :  { %5570 = vmatmul.mubr.msk.f32.gmra.mrb[14].mxu0 %vm10668_vm8, %v788_v54 }
 0x2c0   :  { %997 = vmatprep.mubr.f32.mxu0 %v10960_v27 }
 0x386   :  { %v892_v56 = vpop.f32.mrb[8].mxu0 }
 0x387   :  { %v894_v59 = vpop.f32.mrb[9].mxu0  ;;  %v893_v62 = vadd.f32 %v892_v56, %v796_v60 }
 0x388   :  { %v895_v2 = vadd.f32 %v894_v59, %v796_v60 }
 0x389   :  { %v915_v48 = vmax.f32 %v893_v62, 0.0  ;;  %v923_v62 = vld [vmem:[%s10492_s9] sm:$0xff] }
 0x38a   :  { %v898_v6 = vpop.f32.mrb[10].mxu0  ;;  %v916_v16 = vmax.f32 %v895_v2, 0.0 }
 0x38b   :  { %v899_v10 = vadd.f32 %v898_v6, %v801_v0  ;;  %v900_v15 = vpop.f32.mrb[11].mxu0 }
 0x38c   :  { %v901_v40 = vadd.f32 %v900_v15, %v801_v0 }
 0x38d   :  { %v917_v3 = vmax.f32 %v899_v10, 0.0 }
 0x38e   :  { %v918_v22 = vmax.f32 %v901_v40, 0.0  ;;  %v904_v4 = vpop.f32.mrb[12].mxu0 }
 0x38f   :  { %v5929_v8 = vpack.c.bf16 %v917_v3, %v915_v48  ;;  %v906_v20 = vpop.f32.mrb[13].mxu0  ;;  %v905_v21 = vadd.f32 %v904_v4, %v806_v26 }
 0x390   :  { %v5927_v29 = vpack.c.bf16 %v918_v22, %v916_v16  ;;  %v907_v36 = vadd.f32 %v906_v20, %v806_v26 }
 0x391   :  { %v919_v50 = vmax.f32 %v905_v21, 0.0 }
 0x392   :  { %v910_v39 = vpop.f32.mrb[14].mxu0  ;;  %5928 = vmatprep.subr.bf16.mxu0 %v5927_v29  ;;  %v920_v54 = vmax.f32 %v907_v36, 0.0 }
 0x393   :  { %v911_v43 = vadd.f32 %v910_v39, %v811_v33  ;;  %v912_v45 = vpop.f32.mrb[15].mxu0  ;;  %5930 = vmatpush1.bf16.msra.mxu0 %v5929_v8 }
 0x394   :  { %v913_v46 = vadd.f32 %v912_v45, %v811_v33 }
 0x395   :  { %v921_v52 = vmax.f32 %v911_v43, 0.0 }
 0x396   :  { %v922_v56 = vmax.f32 %v913_v46, 0.0 }
 0x397   :  { %v5933_v59 = vpack.c.bf16 %v921_v52, %v919_v50 }
 0x398   :  { %v5931_v60 = vpack.c.bf16 %v922_v56, %v920_v54 }
 0x39a   :  { %5932 = vmatprep.subr.bf16.mxu0 %v5931_v60 }
 0x39b   :  { %5934 = vmatpush1.bf16.msra.mxu0 %v5933_v59 }
 0x39c   :  { %5968 = vmatprep.subr.msk.bf16.mxu0 %vm10969_vm10, %v10961_v34  ;;  %vm10979_vm10 = vnez %v10930_v57  ;;  %v6985_v57 = vsub.s32 %v1012_v37, %v6267_v7 }
 0x39e   :  { %5571 = vmatmul.mubr.msk.f32.vlgmr.msra.gmra.mrb[16].mxu0 %vm10668_vm8, %v923_v62  ;;  %10983 = vst [vmem:[#allocation12_spill] sm:$0xff] %v6985_v57  ;;  %vm10698_vm8 = vcmask 1048512  }
 0x39f   :  { %5970 = vmatpush1.bf16.msk.msra.mxu0 %vm10970_vm15, %v10961_v34  ;;  %2720 = vmatprep.mubr.f32.mxu0 %v10960_v27  ;;  %vm10980_vm15 = vnez %v10937_v61 }
 0x3a0   :  { %5972 = vmatprep.subr.msk.bf16.mxu0 %vm10971_vm6, %v10961_v34  ;;  %vm10981_vm6 = vnez %v10943_v63 }
 0x3a3   :  { %5974 = vmatpush1.bf16.msk.msra.mxu0 %vm10972_vm9, %v10961_v34  ;;  %vm10982_vm9 = vnez %v10949_v1 }
 0x3a4   :  { %5976 = vmatprep.subr.msk.bf16.mxu0 %vm10973_vm7, %v10961_v34  ;;  %vm10988_vm7 = vcmp.eq.s32.totalorder %v6292_v14, %v6267_v7 }
 0x3a5   :  { %v7021_v10 = vsel %vm10988_vm7, 1.0, %v10960_v27  ;;  %vm11012_vm7 = vcmp.eq.s32.totalorder %v6292_v14, %v6489_v38 }
 0x3a6   :  { %10989 = vst [vmem:[#allocation15_spill] sm:$0xff] %v7021_v10 }
 0x3a7   :  { %5978 = vmatpush1.bf16.msk.msra.mxu0 %vm10974_vm13, %v10961_v34  ;;  %vm10990_vm13 = vcmp.eq.s32.totalorder %v6301_v17, %v6267_v7  ;;  %v11046_v7 = vld [vmem:[#allocation9_spill] sm:$0xff] }
 0x3a8   :  { %5980 = vmatprep.subr.msk.bf16.mxu0 %vm10975_vm11, %v10961_v34  ;;  %v7027_v15 = vsel %vm10990_vm13, 1.0, %v10960_v27  ;;  %vm10992_vm11 = vcmp.eq.s32.totalorder %v6292_v14, %v6306_v18  ;;  %vm11014_vm13 = vcmp.eq.s32.totalorder %v6301_v17, %v6489_v38 }
 0x3a9   :  { %10991 = vst [vmem:[#allocation16_spill] sm:$0xff] %v7027_v15 }
 0x3ab   :  { %5982 = vmatpush1.bf16.msk.msra.mxu0 %vm10976_vm12, %v10961_v34  ;;  %vm10994_vm12 = vcmp.eq.s32.totalorder %v6301_v17, %v6306_v18 }
 0x3ac   :  { %5984 = vmatprep.subr.msk.bf16.mxu0 %vm10977_vm0, %v10961_v34  ;;  %v7043_v48 = vsel %vm10994_vm12, 1.0, %v10960_v27  ;;  %vm10996_vm0 = vcmp.eq.s32.totalorder %v6292_v14, %v6350_v24  ;;  %vm11018_vm12 = vcmp.eq.s32.totalorder %v6301_v17, %v6424_v32 }
 0x3ad   :  { %10995 = vst [vmem:[#allocation18_spill] sm:$0xff] %v7043_v48  ;;  %v7049_v3 = vsel %vm10996_vm0, 1.0, %v10960_v27  ;;  %v7167_v38 = vsel %vm11018_vm12, 1.0, %v10960_v27  ;;  %vm11020_vm0 = vcmp.eq.s32.totalorder %v6292_v14, %v6523_v42  ;;  %vm1924_vm12 = vcmask 195712  }
 0x3ae   :  { %10997 = vst [vmem:[#allocation19_spill] sm:$0xff] %v7049_v3  ;;  %11019 = vst [vmem:[#allocation30_spill] sm:$0xff] %v7167_v38 }
 0x3af   :  { %5986 = vmatpush1.bf16.msk.msra.mxu0 %vm10978_vm1, %v10961_v34  ;;  %vm10998_vm1 = vcmp.eq.s32.totalorder %v6301_v17, %v6350_v24 }
 0x3b0   :  { %5988 = vmatprep.subr.msk.bf16.mxu0 %vm10979_vm10, %v10961_v34  ;;  %v7055_v16 = vsel %vm10998_vm1, 1.0, %v10960_v27  ;;  %vm11000_vm10 = vcmp.eq.s32.totalorder %v6292_v14, %v6309_v19  ;;  %vm11022_vm1 = vcmp.eq.s32.totalorder %v6301_v17, %v6523_v42  ;;  %v7207_v42 = vsel %vm236_vm14, 1.0, %v10960_v27 }
 0x3b1   :  { %10999 = vst [vmem:[#allocation20_spill] sm:$0xff] %v7055_v16  ;;  %v7065_v4 = vsel %vm11000_vm10, 1.0, %v10960_v27  ;;  %vm11024_vm10 = vcmp.eq.s32.totalorder %v6292_v14, %v6574_v47  ;;  %11030 = vst [vmem:[#allocation36_spill] sm:$0xff] %v7207_v42 }
 0x3b2   :  { %11001 = vst [vmem:[#allocation21_spill] sm:$0xff] %v7065_v4 }
 0x3b3   :  { %5990 = vmatpush1.bf16.msk.msra.mxu0 %vm10980_vm15, %v10961_v34  ;;  %vm11002_vm15 = vcmp.eq.s32.totalorder %v6301_v17, %v6309_v19 }
 0x3b4   :  { %5992 = vmatprep.subr.msk.bf16.mxu0 %vm10981_vm6, %v10961_v34  ;;  %v7071_v8 = vsel %vm11002_vm15, 1.0, %v10960_v27  ;;  %vm11004_vm6 = vcmp.eq.s32.totalorder %v6292_v14, %v6353_v25  ;;  %vm11026_vm15 = vcmp.eq.s32.totalorder %v6301_v17, %v6574_v47 }
 0x3b5   :  { %11003 = vst [vmem:[#allocation22_spill] sm:$0xff] %v7071_v8  ;;  %v7105_v59 = vsel %vm11004_vm6, 1.0, %v10960_v27  ;;  %vm11028_vm6 = vcmp.eq.s32.totalorder %v6292_v14, %v6684_v58 }
 0x3b6   :  { %11005 = vst [vmem:[#allocation23_spill] sm:$0xff] %v7105_v59 }
 0x3b7   :  { %5994 = vmatpush1.bf16.msk.msra.mxu0 %vm10982_vm9, %v10961_v34  ;;  %vm11006_vm9 = vcmp.eq.s32.totalorder %v6301_v17, %v6353_v25 }
 0x3b8   :  { %5996 = vmatprep.subr.msk.bf16.mxu0 %vm6785_vm5, %v10961_v34  ;;  %vm10984_vm5 = vcmp.eq.s32.totalorder %v6292_v14, %v6281_v11  ;;  %v7111_v60 = vsel %vm11006_vm9, 1.0, %v10960_v27  ;;  %vm11031_vm9 = vcmp.eq.s32.totalorder %v6292_v14, %v6639_v53 }
 0x3b9   :  { %v7009_v2 = vsel %vm10984_vm5, 1.0, %v10960_v27  ;;  %11007 = vst [vmem:[#allocation24_spill] sm:$0xff] %v7111_v60  ;;  %vm11008_vm5 = vcmp.eq.s32.totalorder %v6292_v14, %v6421_v31 }
 0x3ba   :  { %10985 = vst [vmem:[#allocation13_spill] sm:$0xff] %v7009_v2  ;;  %v7117_v62 = vsel %vm11008_vm5, 1.0, %v10960_v27  ;;  %vm11036_vm5 = vcmp.eq.s32.totalorder %v6301_v17, %v6639_v53 }
 0x3bb   :  { %5998 = vmatpush1.bf16.msk.msra.mxu0 %vm6813_vm4, %v10961_v34  ;;  %vm10986_vm4 = vcmp.eq.s32.totalorder %v6301_v17, %v6281_v11  ;;  %v7037_v11 = vsel %vm10992_vm11, 1.0, %v10960_v27  ;;  %11009 = vst [vmem:[#allocation25_spill] sm:$0xff] %v7117_v62  ;;  %vm11016_vm11 = vcmp.eq.s32.totalorder %v6292_v14, %v6424_v32  ;;  %v7183_v32 = vsel %vm11022_vm1, 1.0, %v10960_v27 }
 0x3bc   :  { %v7015_v6 = vsel %vm10986_vm4, 1.0, %v10960_v27  ;;  %10993 = vst [vmem:[#allocation17_spill] sm:$0xff] %v7037_v11  ;;  %vm11010_vm4 = vcmp.eq.s32.totalorder %v6301_v17, %v6421_v31  ;;  %11023 = vst [vmem:[#allocation32_spill] sm:$0xff] %v7183_v32  ;;  %vm1938_vm1 = vcmask 326912  }
 0x3bd   :  { %10987 = vst [vmem:[#allocation14_spill] sm:$0xff] %v7015_v6  ;;  %v7127_v25 = vsel %vm11010_vm4, 1.0, %v10960_v27 }
 0x3be   :  { %11011 = vst [vmem:[#allocation26_spill] sm:$0xff] %v7127_v25 }
 0x471   :  { %v999_v35 = vpop.f32.mrb[16].mxu0 }
 0x472   :  { %v1000_v41 = vadd.f32 %v999_v35, %v928_v30  ;;  %v1001_v44 = vpop.f32.mrb[17].mxu0 }
 0x473   :  { %v1002_v49 = vadd.f32 %v1001_v44, %v928_v30 }
 0x474   :  { %v1004_v51 = vmax.f32 %v1000_v41, 0.0 }
 0x475   :  { %v1005_v55 = vmax.f32 %v1002_v49, 0.0 }
 0x477   :  { %v1008_v61 = vcombine.low %v1004_v51, %v1005_v55  ;;  %v1009_v63 = vcombine.high %v1004_v51, %v1005_v55 }
 0x479   :  { %v6988_v1 = vrot.slane %v1008_v61, %v6985_v57  ;;  %v6995_v9 = vrot.slane %v1009_v63, %v6985_v57  ;;  %v7145_v63 = vsel %vm11012_vm7, 1.0, %v10960_v27  ;;  %vm11047_vm7 = vcmp.eq.s32.totalorder %v6292_v14, %v11046_v7 }
 0x47a   :  { %11013 = vst [vmem:[#allocation27_spill] sm:$0xff] %v7145_v63 }
 0x47b   :  { %v6992_v5 = vrot.slane %v6988_v1, %v6985_v57  ;;  %v7031_v40 = vrot.slane %v6995_v9, %v6985_v57 }
 0x47d   :  { %v6999_v34 = vrot.slane %v6992_v5, %v6287_v13  ;;  %v7003_v0 = vrot.slane %v6992_v5, %v6284_v12  ;;  %v7079_v26 = vrot.slane %v7031_v40, %v6287_v13  ;;  %v7087_v19 = vrot.slane %v7031_v40, %v6284_v12 }
 0x47f   :  { %v1140_v22 = vmul.f32 %v7015_v6, %v6999_v34  ;;  %v1141_v18 = vmul.f32 %v7009_v2, %v7003_v0  ;;  %v1138_v24 = vmul.f32 %v7027_v15, %v6999_v34  ;;  %v1139_v20 = vmul.f32 %v7021_v10, %v7003_v0 }
 0x480   :  { %v1142_v21 = vmul.f32 %v7043_v48, %v6999_v34  ;;  %v1143_v33 = vmul.f32 %v7037_v11, %v7003_v0  ;;  %v1146_v39 = vmul.f32 %v7055_v16, %v6999_v34  ;;  %v1147_v43 = vmul.f32 %v7049_v3, %v7003_v0 }
 0x481   :  { %v1397_v29 = vmax.f32 %v1140_v22, %v1141_v18  ;;  %v1394_v36 = vmax.f32 %v1138_v24, %v1139_v20  ;;  %v1144_v46 = vmul.f32 %v7071_v8, %v6999_v34  ;;  %v1145_v50 = vmul.f32 %v7065_v4, %v7003_v0 }
 0x482   :  { %v1400_v45 = vmax.f32 %v1142_v21, %v1143_v33  ;;  %v1406_v52 = vmax.f32 %v1146_v39, %v1147_v43  ;;  %v1266_v54 = vmul.f32 %v7027_v15, %v7079_v26  ;;  %v1267_v56 = vmul.f32 %v7021_v10, %v7087_v19 }
 0x483   :  { %1398 = vmax.xlane.f32.xlu1 %v1397_v29  ;;  %1395 = vmax.xlane.f32.xlu0 %v1394_v36  ;;  %v1403_v23 = vmax.f32 %v1144_v46, %v1145_v50  ;;  %v1268_v28 = vmul.f32 %v7015_v6, %v7079_v26  ;;  %v1269_v30 = vmul.f32 %v7009_v2, %v7087_v19  ;;  %v7151_v22 = vsel %vm11014_vm13, 1.0, %v10960_v27 }
 0x484   :  { %v1586_v35 = vmax.f32 %v1266_v54, %v1267_v56  ;;  %v1148_v37 = vmul.f32 %v7111_v60, %v6999_v34  ;;  %v1149_v41 = vmul.f32 %v7105_v59, %v7003_v0  ;;  %v1150_v49 = vmul.f32 %v7127_v25, %v6999_v34  ;;  %11015 = vst [vmem:[#allocation28_spill] sm:$0xff] %v7151_v22 }
 0x485   :  { %v1589_v44 = vmax.f32 %v1268_v28, %v1269_v30  ;;  %v1151_v51 = vmul.f32 %v7117_v62, %v7003_v0  ;;  %v1270_v31 = vmul.f32 %v7043_v48, %v7079_v26  ;;  %v1271_v61 = vmul.f32 %v7037_v11, %v7087_v19  ;;  %v11033_v28 = vld [vmem:[#allocation10_spill] sm:$0xff] }
 0x486   :  { %v1409_v55 = vmax.f32 %v1148_v37, %v1149_v41  ;;  %v7157_v18 = vsel %vm11016_vm11, 1.0, %v10960_v27  ;;  %v1272_v20 = vmul.f32 %v7071_v8, %v7079_v26  ;;  %v1273_v29 = vmul.f32 %v7065_v4, %v7087_v19  ;;  %v11038_v37 = vld [vmem:[#allocation11_spill] sm:$0xff] }
 0x487   :  { %1401 = vmax.xlane.f32.xlu1 %v1400_v45  ;;  %1407 = vmax.xlane.f32.xlu0 %v1406_v52  ;;  %11017 = vst [vmem:[#allocation29_spill] sm:$0xff] %v7157_v18  ;;  %v1412_v24 = vmax.f32 %v1150_v49, %v1151_v51  ;;  %v1592_v21 = vmax.f32 %v1270_v31, %v1271_v61  ;;  %v7177_v39 = vsel %vm11020_vm0, 1.0, %v10960_v27  ;;  %v7189_v43 = vsel %vm11024_vm10, 1.0, %v10960_v27 }
 0x488   :  { %v1154_v33 = vmul.f32 %v7151_v22, %v6999_v34  ;;  %v1155_v36 = vmul.f32 %v7145_v63, %v7003_v0  ;;  %11021 = vst [vmem:[#allocation31_spill] sm:$0xff] %v7177_v39  ;;  %11025 = vst [vmem:[#allocation33_spill] sm:$0xff] %v7189_v43  ;;  %v7195_v45 = vsel %vm11026_vm15, 1.0, %v10960_v27  ;;  %v7201_v46 = vsel %vm11028_vm6, 1.0, %v10960_v27 }
 0x489   :  { %11027 = vst [vmem:[#allocation34_spill] sm:$0xff] %v7195_v45  ;;  %11029 = vst [vmem:[#allocation35_spill] sm:$0xff] %v7201_v46  ;;  %v1595_v50 = vmax.f32 %v1272_v20, %v1273_v29  ;;  %v1152_v52 = vmul.f32 %v7167_v38, %v6999_v34  ;;  %v1153_v47 = vmul.f32 %v7157_v18, %v7003_v0  ;;  %v7217_v54 = vsel %vm11031_vm9, 1.0, %v10960_v27 }
 0x48a   :  { %11032 = vst [vmem:[#allocation37_spill] sm:$0xff] %v7217_v54  ;;  %v1418_v56 = vmax.f32 %v1154_v33, %v1155_v36  ;;  %v1277_v58 = vmul.f32 %v7105_v59, %v7087_v19  ;;  %vm11034_vm14 = vcmp.eq.s32.totalorder %v6292_v14, %v11033_v28  ;;  %vm11039_vm4 = vcmp.eq.s32.totalorder %v6292_v14, %v11038_v37 }
 0x48b   :  { %1404 = vmax.xlane.f32.xlu1 %v1403_v23  ;;  %1587 = vmax.xlane.f32.xlu0 %v1586_v35  ;;  %v1276_v23 = vmul.f32 %v7111_v60, %v7079_v26  ;;  %v7227_v30 = vsel %vm11034_vm14, 1.0, %v10960_v27  ;;  %v7233_v35 = vsel %vm11036_vm5, 1.0, %v10960_v27  ;;  %v7239_v41 = vsel %vm11039_vm4, 1.0, %v10960_v27 }
 0x48c   :  { %11035 = vst [vmem:[#allocation10_spill] sm:$0xff] %v7227_v30  ;;  %11037 = vst [vmem:[#allocation38_spill] sm:$0xff] %v7233_v35  ;;  %v1274_v49 = vmul.f32 %v7055_v16, %v7079_v26  ;;  %v1275_v53 = vmul.f32 %v7049_v3, %v7087_v19  ;;  %v7253_v51 = vmul.f32 %v7207_v42, %v6999_v34  ;;  %vm1917_vm11 = vcmask 130112  }
 0x48d   :  { %11040 = vst [vmem:[#allocation11_spill] sm:$0xff] %v7239_v41  ;;  %v1415_v61 = vmax.f32 %v1152_v52, %v1153_v47  ;;  %v7269_v20 = vmul.f32 %v7195_v45, %v7079_v26  ;;  %v1601_v29 = vmax.f32 %v1276_v23, %v1277_v58  ;;  %v7277_v36 = vmul.f32 %v7189_v43, %v7087_v19 }
 0x48e   :  { %v1054_v52 = vcombine.high %v6992_v5, %v6992_v5  ;;  %v1598_v23 = vmax.f32 %v1274_v49, %v1275_v53  ;;  %v1294_v58 = vmul.f32 %v7207_v42, %v7079_v26  ;;  %v7297_v5 = vmul.f32 %v7233_v35, %v7079_v26 }
 0x48f   :  { %1590 = vmax.xlane.f32.xlu1 %v1589_v44  ;;  %1410 = vmax.xlane.f32.xlu0 %v1409_v55  ;;  %v7245_v44 = vsel %vm238_vm3, 1.0, %v10960_v27  ;;  %v7257_v55 = vmul.f32 %v7201_v46, %v7003_v0  ;;  %vm11042_vm3 = vcmp.eq.s32.totalorder %v6301_v17, %v11033_v28  ;;  %v1295_v28 = vmul.f32 %v7201_v46, %v7087_v19 }
 0x490   :  { %11041 = vst [vmem:[#allocation39_spill] sm:$0xff] %v7245_v44  ;;  %v7263_v31 = vsel %vm11042_vm3, 1.0, %v10960_v27  ;;  %v7285_v47 = vmul.f32 %v7245_v44, %v6999_v34  ;;  %v1278_v37 = vmul.f32 %v7127_v25, %v7079_v26  ;;  %v7307_v49 = vmul.f32 %v7217_v54, %v7087_v19 }
 0x491   :  { %11043 = vst [vmem:[#allocation40_spill] sm:$0xff] %v7263_v31  ;;  %v7317_v33 = vmul.f32 %v7227_v30, %v7087_v19  ;;  %vm11049_vm13 = vcmp.eq.s32.totalorder %v6301_v17, %v11046_v7  ;;  %v7337_v8 = vrot.slane %v1054_v52, %v6287_v13  ;;  %v7342_v2 = vrot.slane %v1054_v52, %v6284_v12 }
 0x492   :  { %v1628_v7 = vmax.f32 %v1294_v58, %v1295_v28  ;;  %v1296_v17 = vmul.f32 %v7245_v44, %v7079_v26  ;;  %vm1931_vm0 = vcmask 261312   ;;  %vm10699_vm10 = vcmask 392512  }
 0x493   :  { %1413 = vmax.xlane.f32.xlu1 %v1412_v24  ;;  %1593 = vmax.xlane.f32.xlu0 %v1592_v21  ;;  %v1156_v24 = vmul.f32 %v7183_v32, %v6999_v34  ;;  %v1157_v21 = vmul.f32 %v7177_v39, %v7003_v0  ;;  %11045 = vst [vmem:[#allocation42_spill] sm:$0xff] %v7317_v33  ;;  %vm1952_vm15 = vcmask 458112   ;;  %vm1959_vm6 = vcmask 523712  }
 0x494   :  { %v1202_v28 = vmul.f32 %v7027_v15, %v7337_v8  ;;  %v1203_v14 = vmul.f32 %v7021_v10, %v7342_v2  ;;  %v1161_v33 = vmul.f32 %v7189_v43, %v7003_v0  ;;  %vm1966_vm9 = vcmask 589312  }
 0x495   :  { %v1421_v53 = vmax.f32 %v1156_v24, %v1157_v21  ;;  %v7329_v24 = vsel %vm11049_vm13, 1.0, %v10960_v27  ;;  %vm1973_vm14 = vcmask 654912   ;;  %vm10703_vm5 = vcmask 720512  }
 0x496   :  { %11050 = vst [vmem:[#allocation43_spill] sm:$0xff] %v7329_v24  ;;  %v1490_v6 = vmax.f32 %v1202_v28, %v1203_v14  ;;  %vm10702_vm4 = vcmask 786112   ;;  %vm1994_vm3 = vcmask 851712   ;;  %vm2008_vm13 = vcmask 982912  }
 0x497   :  { %1596 = vmax.xlane.f32.xlu1 %v1595_v50  ;;  %1419 = vmax.xlane.f32.xlu0 %v1418_v56  ;;  %v1024_v50 = vcombine.high %v6988_v1, %v6988_v1  ;;  %v7289_v56 = vmul.f32 %v7239_v41, %v7003_v0  ;;  %v7313_v1 = vmul.f32 %v7263_v31, %v7079_v26 }
 0x499   :  { %11044 = vst [vmem:[#allocation41_spill] sm:$0xff] %v7313_v1  ;;  %v7334_v4 = vrot.slane %v1024_v50, %v6985_v57  ;;  %v1158_v50 = vmul.f32 %v7329_v24, %v6999_v34 }
 0x49b   :  { %1416 = vmax.xlane.f32.xlu1 %v1415_v61  ;;  %1602 = vmax.xlane.f32.xlu0 %v1601_v29  ;;  %v1279_v29 = vmul.f32 %v7117_v62, %v7087_v19  ;;  %v7323_v61 = vsel %vm11047_vm7, 1.0, %v10960_v27  ;;  %v7354_v52 = vrot.slane %v7334_v4, %v6287_v13  ;;  %v1207_v27 = vmul.f32 %v7037_v11, %v7342_v2 }
 0x49c   :  { %11048 = vst [vmem:[#allocation9_spill] sm:$0xff] %v7323_v61  ;;  %vm2001_vm7 = vcmask 917312  }
 0x49d   :  { %v1604_v21 = vmax.f32 %v1278_v37, %v1279_v29  ;;  %v7362_v37 = vrot.slane %v7334_v4, %v6284_v12  ;;  %v7380_v1 = vmul.f32 %v7263_v31, %v7354_v52  ;;  %v1178_v28 = vmul.f32 %v7055_v16, %v7354_v52 }
 0x49f   :  { %1599 = vmax.xlane.f32.xlu1 %v1598_v23  ;;  %1422 = vmax.xlane.f32.xlu0 %v1421_v53  ;;  %v1297_v23 = vmul.f32 %v7239_v41, %v7087_v19  ;;  %v1159_v53 = vmul.f32 %v7323_v61, %v7003_v0  ;;  %11051 = vst [vmem:[#allocation44_spill] sm:$0xff] %v7380_v1 }
 0x4a0   :  { %v1181_v1 = vmul.f32 %v7105_v59, %v7362_v37 }
 0x4a1   :  { %v1631_v58 = vmax.f32 %v1296_v17, %v1297_v23  ;;  %v1424_v29 = vmax.f32 %v1158_v50, %v1159_v53  ;;  %v1025_v17 = vcombine.high %v6995_v9, %v6995_v9  ;;  %v1206_v23 = vmul.f32 %v7043_v48, %v7337_v8 }
 0x4a2   :  { %v1160_v50 = vmul.f32 %v7195_v45, %v6999_v34  ;;  %v7384_v9 = vmul.f32 %v7227_v30, %v7362_v37 }
 0x4a3   :  { %1629 = vmax.xlane.f32.xlu1 %v1628_v7  ;;  %1605 = vmax.xlane.f32.xlu0 %v1604_v21  ;;  %v1280_v7 = vmul.f32 %v7167_v38, %v7079_v26  ;;  %v1281_v21 = vmul.f32 %v7157_v18, %v7087_v19  ;;  %v1496_v14 = vmax.f32 %v1206_v23, %v1207_v27 }
 0x4a4   :  { %11052 = vst [vmem:[#allocation45_spill] sm:$0xff] %v7384_v9  ;;  %v7405_v27 = vmul.f32 %v7207_v42, %v7354_v52  ;;  %v1427_v23 = vmax.f32 %v1160_v50, %v1161_v33  ;;  %v1180_v50 = vmul.f32 %v7111_v60, %v7354_v52 }
 0x4a5   :  { %v1607_v53 = vmax.f32 %v1280_v7, %v1281_v21  ;;  %v7395_v7 = vmul.f32 %v7127_v25, %v7354_v52  ;;  %v1179_v21 = vmul.f32 %v7049_v3, %v7362_v37 }
 0x4a6   :  { %11055 = vst [vmem:[#allocation48_spill] sm:$0xff] %v7405_v27 }
 0x4a7   :  { %1632 = vmax.xlane.f32.xlu1 %v1631_v58  ;;  %1425 = vmax.xlane.f32.xlu0 %v1424_v29  ;;  %v7387_v58 = vrot.slane %v1025_v17, %v6985_v57  ;;  %11053 = vst [vmem:[#allocation46_spill] sm:$0xff] %v7395_v7  ;;  %v7401_v17 = vmul.f32 %v7117_v62, %v7362_v37 }
 0x4a8   :  { %v1283_v29 = vmul.f32 %v7145_v63, %v7087_v19  ;;  %v1454_v9 = vmax.f32 %v1178_v28, %v1179_v21  ;;  %v1163_v7 = vmul.f32 %v7217_v54, %v7003_v0  ;;  %v1284_v54 = vmul.f32 %v7183_v32, %v7079_v26 }
 0x4a9   :  { %11054 = vst [vmem:[#allocation47_spill] sm:$0xff] %v7401_v17  ;;  %v7417_v57 = vrot.slane %v7387_v58, %v6287_v13  ;;  %v7425_v33 = vrot.slane %v7387_v58, %v6284_v12  ;;  %v1162_v17 = vmul.f32 %v7233_v35, %v6999_v34  ;;  %v1286_v28 = vmul.f32 %v7329_v24, %v7079_v26 }
 0x4ab   :  { %1491 = vmax.xlane.f32.xlu1 %v1490_v6  ;;  %1608 = vmax.xlane.f32.xlu0 %v1607_v53  ;;  %v7409_v6 = vmul.f32 %v7201_v46, %v7362_v37  ;;  %v1282_v53 = vmul.f32 %v7151_v22, %v7079_v26  ;;  %11057 = vst [vmem:[#allocation50_spill] sm:$0xff] %v7417_v57  ;;  %11058 = vst [vmem:[#allocation51_spill] sm:$0xff] %v7425_v33 }
 0x4ac   :  { %v7431_v46 = vmul.f32 %v7245_v44, %v7354_v52  ;;  %v1457_v44 = vmax.f32 %v1180_v50, %v1181_v1  ;;  %v1430_v42 = vmax.f32 %v1162_v17, %v1163_v7  ;;  %v1213_v7 = vmul.f32 %v7105_v59, %v7342_v2 }
 0x4ad   :  { %11056 = vst [vmem:[#allocation49_spill] sm:$0xff] %v7409_v6  ;;  %v7441_v6 = vmul.f32 %v7167_v38, %v7354_v52  ;;  %v1610_v27 = vmax.f32 %v1282_v53, %v1283_v29  ;;  %v1298_v29 = vmul.f32 %v7027_v15, %v7417_v57  ;;  %v1299_v53 = vmul.f32 %v7021_v10, %v7425_v33 }
 0x4ae   :  { %v1164_v50 = vmul.f32 %v7263_v31, %v6999_v34 }
 0x4af   :  { %1497 = vmax.xlane.f32.xlu1 %v1496_v14  ;;  %1428 = vmax.xlane.f32.xlu0 %v1427_v23  ;;  %v7435_v14 = vmul.f32 %v7239_v41, %v7362_v37  ;;  %v7445_v23 = vmul.f32 %v7157_v18, %v7362_v37  ;;  %v1055_v41 = vcombine.high %v7031_v40, %v7031_v40 }
 0x4b0   :  { %v1634_v1 = vmax.f32 %v1298_v29, %v1299_v53 }
 0x4b1   :  { %11059 = vst [vmem:[#allocation52_spill] sm:$0xff] %v7445_v23  ;;  %v7466_v21 = vrot.slane %v1055_v41, %v6287_v13  ;;  %v7469_v40 = vrot.slane %v1055_v41, %v6284_v12 }
 0x4b3   :  { %1455 = vmax.xlane.f32.xlu1 %v1454_v9  ;;  %1611 = vmax.xlane.f32.xlu0 %v1610_v27  ;;  %v1285_v9 = vmul.f32 %v7177_v39, %v7087_v19  ;;  %v1212_v27 = vmul.f32 %v7111_v60, %v7337_v8  ;;  %v1330_v41 = vmul.f32 %v7027_v15, %v7466_v21 }
 0x4b4   :  { %v1331_v29 = vmul.f32 %v7021_v10, %v7469_v40  ;;  %v1335_v26 = vmul.f32 %v7037_v11, %v7469_v40 }
 0x4b5   :  { %v1613_v17 = vmax.f32 %v1284_v54, %v1285_v9  ;;  %v1287_v54 = vmul.f32 %v7323_v61, %v7087_v19  ;;  %v1215_v9 = vmul.f32 %v7117_v62, %v7342_v2  ;;  %v11060_v19 = vmax.f32 %v7253_v51, %v7257_v55 }
 0x4b6   :  { %v1682_v34 = vmax.f32 %v1330_v41, %v1331_v29  ;;  %v1306_v41 = vmul.f32 %v7055_v16, %v7417_v57  ;;  %v1307_v51 = vmul.f32 %v7049_v3, %v7425_v33  ;;  %v11062_v55 = vmax.f32 %v7285_v47, %v7289_v56 }
 0x4b7   :  { %1458 = vmax.xlane.f32.xlu1 %v1457_v44  ;;  %1431 = vmax.xlane.f32.xlu0 %v1430_v42  ;;  %v1165_v44 = vmul.f32 %v7227_v30, %v7003_v0  ;;  %v1505_v42 = vmax.f32 %v1212_v27, %v1213_v7  ;;  %v1214_v0 = vmul.f32 %v7127_v25, %v7337_v8 }
 0x4b8   :  { %v1334_v7 = vmul.f32 %v7043_v48, %v7466_v21  ;;  %v1646_v29 = vmax.f32 %v1306_v41, %v1307_v51  ;;  %v11063_v47 = vmax.f32 %v7297_v5, %v7307_v49  ;;  %v1191_v5 = vmul.f32 %v7323_v61, %v7362_v37  ;;  %v11064_v49 = vld [vmem:[#allocation41_spill] sm:$0xff] }
 0x4b9   :  { %v1433_v53 = vmax.f32 %v1164_v50, %v1165_v44  ;;  %v1508_v27 = vmax.f32 %v1214_v0, %v1215_v9  ;;  %v1186_v50 = vmul.f32 %v7151_v22, %v7354_v52  ;;  %v11061_v44 = vmax.f32 %v7269_v20, %v7277_v36 }
 0x4ba   :  { %v1189_v20 = vmul.f32 %v7177_v39, %v7362_v37  ;;  %v1056_v36 = vcombine.high %v7334_v4, %v7334_v4  ;;  %v1057_v0 = vcombine.high %v7387_v58, %v7387_v58  ;;  %v1170_v9 = vmul.f32 %v7027_v15, %v7354_v52 }
 0x4bb   :  { %1635 = vmax.xlane.f32.xlu1 %v1634_v1  ;;  %1614 = vmax.xlane.f32.xlu0 %v1613_v17  ;;  %v1616_v1 = vmax.f32 %v1286_v28, %v1287_v54  ;;  %v1688_v17 = vmax.f32 %v1334_v7, %v1335_v26  ;;  %v1187_v28 = vmul.f32 %v7145_v63, %v7362_v37  ;;  %v11065_v26 = vld [vmem:[#allocation42_spill] sm:$0xff] }
 0x4bc   :  { %v1308_v54 = vmul.f32 %v7111_v60, %v7417_v57  ;;  %v1171_v4 = vmul.f32 %v7021_v10, %v7362_v37  ;;  %v1190_v7 = vmul.f32 %v7329_v24, %v7354_v52  ;;  %v11066_v58 = vmax.f32 %v11064_v49, %v11065_v26 }
 0x4bd   :  { %v1174_v41 = vmul.f32 %v7043_v48, %v7354_v52  ;;  %v1175_v51 = vmul.f32 %v7037_v11, %v7362_v37  ;;  %v7573_v49 = vrot.slane %v1057_v0, %v6287_v13 }
 0x4bf   :  { %1506 = vmax.xlane.f32.xlu1 %v1505_v42  ;;  %1434 = vmax.xlane.f32.xlu0 %v1433_v53  ;;  %v1466_v42 = vmax.f32 %v1186_v50, %v1187_v28  ;;  %v1188_v53 = vmul.f32 %v7183_v32, %v7354_v52  ;;  %v11068_v50 = vld [vmem:[#allocation13_spill] sm:$0xff] }
 0x4c0   :  { %v1173_v28 = vmul.f32 %v11068_v50, %v7362_v37 }
 0x4c1   :  { %v1469_v56 = vmax.f32 %v1188_v53, %v1189_v20  ;;  %v7558_v53 = vrot.slane %v1056_v36, %v6284_v12  ;;  %v1442_v20 = vmax.f32 %v1170_v9, %v1171_v4  ;;  %v1472_v9 = vmax.f32 %v1190_v7, %v1191_v5  ;;  %v11073_v7 = vld [vmem:[#allocation21_spill] sm:$0xff] }
 0x4c2   :  { %v1177_v5 = vmul.f32 %v11073_v7, %v7362_v37 }
 0x4c3   :  { %1683 = vmax.xlane.f32.xlu1 %v1682_v34  ;;  %1617 = vmax.xlane.f32.xlu0 %v1616_v1  ;;  %v1309_v34 = vmul.f32 %v7105_v59, %v7425_v33  ;;  %v7532_v1 = vrot.slane %v1056_v36, %v6287_v13  ;;  %v7576_v36 = vrot.slane %v1057_v0, %v6284_v12  ;;  %v11071_v13 = vld [vmem:[#allocation37_spill] sm:$0xff] }
 0x4c4   :  { %v7586_v23 = vmul.f32 %v11071_v13, %v7558_v53 }
 0x4c5   :  { %v7648_v12 = vmul.f32 %v7111_v60, %v7532_v1 }
 0x4c6   :  { %11072 = vst [vmem:[#allocation42_spill] sm:$0xff] %v7586_v23  ;;  %v1220_v23 = vmul.f32 %v7183_v32, %v7337_v8 }
 0x4c7   :  { %1509 = vmax.xlane.f32.xlu1 %v1508_v27  ;;  %1437 = vmax.xlane.f32.xlu0 %v11060_v19  ;;  %v1649_v27 = vmax.f32 %v1308_v54, %v1309_v34  ;;  %v11067_v19 = vld [vmem:[#allocation14_spill] sm:$0xff]  ;;  %v1205_v34 = vmul.f32 %v11068_v50, %v7342_v2  ;;  %11086 = vst [vmem:[#allocation63_spill] sm:$0xff] %v7648_v12 }
 0x4c8   :  { %v1204_v54 = vmul.f32 %v11067_v19, %v7337_v8 }
 0x4cb   :  { %1689 = vmax.xlane.f32.xlu1 %v1688_v17  ;;  %1620 = vmax.xlane.f32.xlu0 %v11061_v44  ;;  %v1172_v17 = vmul.f32 %v11067_v19, %v7354_v52  ;;  %v1310_v44 = vmul.f32 %v7127_v25, %v7417_v57  ;;  %v11069_v25 = vld [vmem:[#allocation22_spill] sm:$0xff] }
 0x4cd   :  { %v1445_v4 = vmax.f32 %v1172_v17, %v1173_v28  ;;  %v1194_v17 = vmul.f32 %v7233_v35, %v7354_v52  ;;  %v1195_v28 = vmul.f32 %v11071_v13, %v7362_v37 }
 0x4cf   :  { %1467 = vmax.xlane.f32.xlu1 %v1466_v42  ;;  %1440 = vmax.xlane.f32.xlu0 %v11062_v55  ;;  %v1311_v42 = vmul.f32 %v7117_v62, %v7425_v33  ;;  %v1192_v55 = vmul.f32 %v7195_v45, %v7354_v52  ;;  %v1493_v62 = vmax.f32 %v1204_v54, %v1205_v34 }
 0x4d0   :  { %v7626_v54 = vmul.f32 %v7177_v39, %v7576_v36  ;;  %v7630_v34 = vmul.f32 %v7055_v16, %v7532_v1 }
 0x4d1   :  { %v1652_v26 = vmax.f32 %v1310_v44, %v1311_v42  ;;  %v7600_v42 = vmul.f32 %v7263_v31, %v7532_v1 }
 0x4d2   :  { %11079 = vst [vmem:[#allocation58_spill] sm:$0xff] %v7626_v54  ;;  %11080 = vst [vmem:[#allocation59_spill] sm:$0xff] %v7630_v34  ;;  %v7680_v34 = vmul.f32 %v7263_v31, %v7573_v49  ;;  %v7724_v54 = vmul.f32 %v11071_v13, %v7576_v36 }
 0x4d3   :  { %1647 = vmax.xlane.f32.xlu1 %v1646_v29  ;;  %1623 = vmax.xlane.f32.xlu0 %v11063_v47  ;;  %v1193_v29 = vmul.f32 %v7189_v43, %v7362_v37  ;;  %v7566_v47 = vmul.f32 %v7167_v38, %v7417_v57  ;;  %v1176_v38 = vmul.f32 %v11069_v25, %v7354_v52 }
 0x4d4   :  { %11074 = vst [vmem:[#allocation53_spill] sm:$0xff] %v7600_v42  ;;  %v1208_v52 = vmul.f32 %v11069_v25, %v7337_v8  ;;  %v1209_v37 = vmul.f32 %v11073_v7, %v7342_v2  ;;  %11092 = vst [vmem:[#allocation69_spill] sm:$0xff] %v7680_v34 }
 0x4d5   :  { %11103 = vst [vmem:[#allocation78_spill] sm:$0xff] %v7724_v54  ;;  %v1451_v34 = vmax.f32 %v1176_v38, %v1177_v5  ;;  %v1314_v38 = vmul.f32 %v7151_v22, %v7417_v57  ;;  %v1315_v5 = vmul.f32 %v7145_v63, %v7425_v33 }
 0x4d7   :  { %1470 = vmax.xlane.f32.xlu1 %v1469_v56  ;;  %1626 = vmax.xlane.f32.xlu0 %v11066_v58  ;;  %v7570_v56 = vmul.f32 %v7157_v18, %v7425_v33  ;;  %v1448_v58 = vmax.f32 %v1174_v41, %v1175_v51  ;;  %v7582_v18 = vmul.f32 %v7233_v35, %v7532_v1 }
 0x4d8   :  { %v7604_v41 = vmul.f32 %v7227_v30, %v7558_v53  ;;  %v7608_v51 = vmul.f32 %v7027_v15, %v7532_v1 }
 0x4d9   :  { %11070 = vst [vmem:[#allocation41_spill] sm:$0xff] %v7582_v18  ;;  %v1655_v0 = vmax.f32 %v7566_v47, %v7570_v56  ;;  %v7634_v47 = vmul.f32 %v7049_v3, %v7558_v53  ;;  %v7656_v56 = vmul.f32 %v7105_v59, %v7558_v53  ;;  %v1221_v18 = vmul.f32 %v7177_v39, %v7342_v2 }
 0x4da   :  { %11075 = vst [vmem:[#allocation54_spill] sm:$0xff] %v7604_v41  ;;  %11076 = vst [vmem:[#allocation55_spill] sm:$0xff] %v7608_v51  ;;  %v7670_v41 = vmul.f32 %v7027_v15, %v7573_v49  ;;  %v7684_v51 = vmul.f32 %v7227_v30, %v7576_v36  ;;  %v7714_v15 = vmul.f32 %v7189_v43, %v7576_v36 }
 0x4db   :  { %1650 = vmax.xlane.f32.xlu1 %v1649_v27  ;;  %1443 = vmax.xlane.f32.xlu0 %v1442_v20  ;;  %v1475_v27 = vmax.f32 %v1192_v55, %v1193_v29  ;;  %v7616_v55 = vmul.f32 %v7021_v10, %v7558_v53  ;;  %v7620_v29 = vmul.f32 %v7183_v32, %v7573_v49  ;;  %v11084_v20 = vld [vmem:[#allocation35_spill] sm:$0xff] }
 0x4dc   :  { %11081 = vst [vmem:[#allocation60_spill] sm:$0xff] %v7634_v47  ;;  %v7644_v44 = vmul.f32 %v11084_v20, %v7558_v53  ;;  %11087 = vst [vmem:[#allocation64_spill] sm:$0xff] %v7656_v56  ;;  %v11096_v47 = vld [vmem:[#allocation11_spill] sm:$0xff] }
 0x4dd   :  { %11077 = vst [vmem:[#allocation56_spill] sm:$0xff] %v7616_v55  ;;  %11078 = vst [vmem:[#allocation57_spill] sm:$0xff] %v7620_v29  ;;  %v7660_v55 = vmul.f32 %v7329_v24, %v7573_v49  ;;  %v7696_v56 = vmul.f32 %v11096_v47, %v7558_v53 }
 0x4de   :  { %11085 = vst [vmem:[#allocation62_spill] sm:$0xff] %v7644_v44  ;;  %11090 = vst [vmem:[#allocation67_spill] sm:$0xff] %v7670_v41  ;;  %v11094_v44 = vld [vmem:[#allocation39_spill] sm:$0xff]  ;;  %v1210_v41 = vmul.f32 %v7055_v16, %v7337_v8 }
 0x4df   :  { %1473 = vmax.xlane.f32.xlu1 %v1472_v9  ;;  %1446 = vmax.xlane.f32.xlu0 %v1445_v4  ;;  %v11082_v9 = vld [vmem:[#allocation36_spill] sm:$0xff]  ;;  %11088 = vst [vmem:[#allocation65_spill] sm:$0xff] %v7660_v55  ;;  %11093 = vst [vmem:[#allocation70_spill] sm:$0xff] %v7684_v51  ;;  %v7728_v51 = vmul.f32 %v11094_v44, %v7573_v49  ;;  %v1478_v55 = vmax.f32 %v1194_v17, %v1195_v28 }
 0x4e0   :  { %v7640_v4 = vmul.f32 %v11082_v9, %v7532_v1  ;;  %11097 = vst [vmem:[#allocation72_spill] sm:$0xff] %v7696_v56  ;;  %v7700_v12 = vmul.f32 %v11082_v9, %v7573_v49  ;;  %11101 = vst [vmem:[#allocation76_spill] sm:$0xff] %v7714_v15  ;;  %v1300_v17 = vmul.f32 %v11067_v19, %v7417_v57 }
 0x4e1   :  { %11104 = vst [vmem:[#allocation79_spill] sm:$0xff] %v7728_v51  ;;  %v1301_v28 = vmul.f32 %v11068_v50, %v7425_v33  ;;  %v1304_v51 = vmul.f32 %v11069_v25, %v7417_v57 }
 0x4e2   :  { %11083 = vst [vmem:[#allocation61_spill] sm:$0xff] %v7640_v4  ;;  %v7688_v4 = vmul.f32 %v11094_v44, %v7532_v1  ;;  %11098 = vst [vmem:[#allocation73_spill] sm:$0xff] %v7700_v12  ;;  %v1219_v12 = vmul.f32 %v7145_v63, %v7342_v2 }
 0x4e3   :  { %1653 = vmax.xlane.f32.xlu1 %v1652_v26  ;;  %1449 = vmax.xlane.f32.xlu0 %v1448_v58  ;;  %v7666_v58 = vmul.f32 %v7323_v61, %v7576_v36  ;;  %v7674_v26 = vmul.f32 %v7021_v10, %v7576_v36  ;;  %v7710_v10 = vmul.f32 %v7195_v45, %v7573_v49 }
 0x4e4   :  { %11095 = vst [vmem:[#allocation71_spill] sm:$0xff] %v7688_v4  ;;  %v1637_v4 = vmax.f32 %v1300_v17, %v1301_v28  ;;  %v1318_v17 = vmul.f32 %v7329_v24, %v7417_v57 }
 0x4e5   :  { %11089 = vst [vmem:[#allocation66_spill] sm:$0xff] %v7666_v58  ;;  %11091 = vst [vmem:[#allocation68_spill] sm:$0xff] %v7674_v26  ;;  %v7736_v26 = vmul.f32 %v11096_v47, %v7576_v36  ;;  %v1499_v58 = vmax.f32 %v1208_v52, %v1209_v37  ;;  %v1316_v52 = vmul.f32 %v7183_v32, %v7417_v57 }
 0x4e6   :  { %11100 = vst [vmem:[#allocation75_spill] sm:$0xff] %v7710_v10  ;;  %v1317_v37 = vmul.f32 %v7177_v39, %v7425_v33 }
 0x4e7   :  { %1476 = vmax.xlane.f32.xlu1 %v1475_v27  ;;  %1494 = vmax.xlane.f32.xlu0 %v1493_v62  ;;  %v7706_v27 = vmul.f32 %v11084_v20, %v7576_v36  ;;  %v7720_v62 = vmul.f32 %v7233_v35, %v7573_v49  ;;  %11105 = vst [vmem:[#allocation80_spill] sm:$0xff] %v7736_v26  ;;  %v11106_v26 = vld [vmem:[#allocation44_spill] sm:$0xff] }
 0x4e9   :  { %11099 = vst [vmem:[#allocation74_spill] sm:$0xff] %v7706_v27  ;;  %11102 = vst [vmem:[#allocation77_spill] sm:$0xff] %v7720_v62  ;;  %v1218_v27 = vmul.f32 %v7151_v22, %v7337_v8 }
 0x4eb   :  { %1656 = vmax.xlane.f32.xlu1 %v1655_v0  ;;  %1452 = vmax.xlane.f32.xlu0 %v1451_v34  ;;  %v1211_v0 = vmul.f32 %v7049_v3, %v7342_v2  ;;  %v1658_v34 = vmax.f32 %v1314_v38, %v1315_v5  ;;  %v1302_v38 = vmul.f32 %v7043_v48, %v7417_v57 }
 0x4ec   :  { %v1303_v5 = vmul.f32 %v7037_v11, %v7425_v33 }
 0x4ed   :  { %v1502_v56 = vmax.f32 %v1210_v41, %v1211_v0  ;;  %v1661_v41 = vmax.f32 %v1316_v52, %v1317_v37  ;;  %v11110_v0 = vld [vmem:[#allocation47_spill] sm:$0xff]  ;;  %v1333_v52 = vmul.f32 %v11068_v50, %v7469_v40  ;;  %v11112_v37 = vld [vmem:[#allocation48_spill] sm:$0xff] }
 0x4ee   :  { %v1640_v28 = vmax.f32 %v1302_v38, %v1303_v5  ;;  %v1321_v38 = vmul.f32 %v7189_v43, %v7425_v33  ;;  %v11115_v5 = vlaneseq }
 0x4ef   :  { %1479 = vmax.xlane.f32.xlu1 %v1478_v55  ;;  %1500 = vmax.xlane.f32.xlu0 %v1499_v58  ;;  %v11107_v55 = vld [vmem:[#allocation45_spill] sm:$0xff] }
 0x4f0   :  { %v11108_v58 = vmax.f32 %v11106_v26, %v11107_v55  ;;  %v1319_v26 = vmul.f32 %v7323_v61, %v7425_v33  ;;  %v11113_v55 = vld [vmem:[#allocation49_spill] sm:$0xff] }
 0x4f3   :  { %1659 = vmax.xlane.f32.xlu1 %v1658_v34  ;;  %1503 = vmax.xlane.f32.xlu0 %v1502_v56  ;;  %v11109_v56 = vld [vmem:[#allocation46_spill] sm:$0xff] }
 0x4f4   :  { %v11111_v34 = vmax.f32 %v11109_v56, %v11110_v0  ;;  %v1320_v0 = vmul.f32 %v7195_v45, %v7417_v57 }
 0x4f7   :  { %1482 = vmax.xlane.f32.xlu1 %v11108_v58  ;;  %1638 = vmax.xlane.f32.xlu0 %v1637_v4  ;;  %v1332_v4 = vmul.f32 %v11067_v19, %v7466_v21  ;;  %v11114_v58 = vmax.f32 %v11112_v37, %v11113_v55  ;;  %v1305_v37 = vmul.f32 %v11073_v7, %v7425_v33 }
 0x4f8   :  { %v1667_v55 = vmax.f32 %v1320_v0, %v1321_v38  ;;  %v1355_v0 = vmul.f32 %v11071_v13, %v7469_v40 }
 0x4f9   :  { %v1685_v56 = vmax.f32 %v1332_v4, %v1333_v52  ;;  %v1322_v4 = vmul.f32 %v7233_v35, %v7417_v57  ;;  %v1323_v52 = vmul.f32 %v11071_v13, %v7425_v33 }
 0x4fb   :  { %1662 = vmax.xlane.f32.xlu1 %v1661_v41  ;;  %1461 = vmax.xlane.f32.xlu0 %v11111_v34  ;;  %v1664_v41 = vmax.f32 %v1318_v17, %v1319_v26  ;;  %v7784_v34 = vand.u32 127, %v11115_v5  ;;  %v11116_v17 = vmax.f32 %v7431_v46, %v7435_v14  ;;  %v11117_v26 = vld [vmem:[#allocation52_spill] sm:$0xff]  ;;  %v11120_v46 = vld [vmem:[#allocation29_spill] sm:$0xff] }
 0x4fc   :  { %v1217_v14 = vmul.f32 %v11120_v46, %v7342_v2 }
 0x4ff   :  { %1485 = vmax.xlane.f32.xlu1 %v11114_v58  ;;  %1641 = vmax.xlane.f32.xlu0 %v1640_v28  ;;  %v11118_v28 = vmax.f32 %v7441_v6, %v11117_v26  ;;  %v1912_v58 = vadd.s32 4294967288, %v7784_v34  ;;  %v1670_v6 = vmax.f32 %v1322_v4, %v1323_v52  ;;  %v1337_v4 = vmul.f32 %v11073_v7, %v7469_v40 }
 0x503   :  { %1665 = vmax.xlane.f32.xlu1 %v1664_v41  ;;  %1686 = vmax.xlane.f32.xlu0 %v1685_v56  ;;  %v1643_v41 = vmax.f32 %v1304_v51, %v1305_v37  ;;  %v11119_v56 = vld [vmem:[#allocation30_spill] sm:$0xff]  ;;  %v1919_v51 = vadd.s32 4294967280, %v7784_v34 }
 0x504   :  { %v1216_v5 = vmul.f32 %v11119_v56, %v7337_v8 }
 0x506   :  { %v1511_v38 = vmax.f32 %v1216_v5, %v1217_v14  ;;  %v1357_v5 = vmul.f32 %v7227_v30, %v7469_v40 }
 0x507   :  { %1488 = vmax.xlane.f32.xlu1 %v11116_v17  ;;  %1464 = vmax.xlane.f32.xlu0 %v11118_v28  ;;  %v11121_v17 = vld [vmem:[#allocation6_spill] sm:$0xff]  ;;  %v1354_v28 = vmul.f32 %v7233_v35, %v7466_v21 }
 0x508   :  { %v7806_v26 = vsub.s32 %v1912_v58, %v11121_v17  ;;  %v7815_v37 = vsub.s32 %v7784_v34, %v11121_v17  ;;  %v1933_v58 = vadd.s32 4294967264, %v7784_v34  ;;  %v7828_v15 = vsub.s32 %v1919_v51, %v11121_v17 }
 0x509   :  { %v1718_v62 = vmax.f32 %v1354_v28, %v1355_v0 }
 0x50a   :  { %11122 = vst [vmem:[#allocation44_spill] sm:$0xff] %v7806_v26  ;;  %11123 = vst [vmem:[#allocation45_spill] sm:$0xff] %v7815_v37  ;;  %v7838_v0 = vsub.s32 %v1933_v58, %v11121_v17  ;;  %v1339_v58 = vmul.f32 %v7049_v3, %v7469_v40 }
 0x50b   :  { %1668 = vmax.xlane.f32.xlu1 %v1667_v55  ;;  %1644 = vmax.xlane.f32.xlu0 %v1643_v41  ;;  %v1336_v55 = vmul.f32 %v11069_v25, %v7466_v21  ;;  %v1356_v41 = vmul.f32 %v7263_v31, %v7466_v21  ;;  %11124 = vst [vmem:[#allocation46_spill] sm:$0xff] %v7828_v15 }
 0x50c   :  { %11125 = vst [vmem:[#allocation47_spill] sm:$0xff] %v7838_v0 }
 0x50d   :  { %v1691_v10 = vmax.f32 %v1336_v55, %v1337_v4  ;;  %v1721_v51 = vmax.f32 %v1356_v41, %v1357_v5  ;;  %v1328_v4 = vmul.f32 %v11094_v44, %v7417_v57  ;;  %v1940_v41 = vadd.s32 4294967256, %v7784_v34 }
 0x50e   :  { %v1238_v57 = vmul.f32 %v7043_v48, %v7532_v1 }
 0x50f   :  { %1671 = vmax.xlane.f32.xlu1 %v1670_v6  ;;  %1512 = vmax.xlane.f32.xlu0 %v1511_v38  ;;  %v1926_v6 = vadd.s32 4294967272, %v7784_v34 }
 0x510   :  { %v1399_v52 = vpop.xlane.xlu1 %1398  ;;  %v1396_v54 = vpop.xlane.xlu0 %1395 }
 0x511   :  { %v1916_v14 = vrot.slane %v1399_v52, %v7806_v26  ;;  %v1911_v38 = vrot.slane %v1396_v54, %v7815_v37  ;;  %v7842_v55 = vsub.s32 %v1926_v6, %v11121_v17 }
 0x513   :  { %1719 = vmax.xlane.f32.xlu1 %v1718_v62  ;;  %v1918_v29 = vsel %vm1917_vm11, %v1916_v14, %v1911_v38  ;;  %1692 = vmax.xlane.f32.xlu0 %v1691_v10  ;;  %11126 = vst [vmem:[#allocation48_spill] sm:$0xff] %v7842_v55  ;;  %v1329_v62 = vmul.f32 %v11096_v47, %v7425_v33 }
 0x514   :  { %v1402_v28 = vpop.xlane.xlu1 %1401  ;;  %v1408_v54 = vpop.xlane.xlu0 %1407  ;;  %v1514_v14 = vmax.f32 %v1218_v27, %v1219_v12  ;;  %v1338_v10 = vmul.f32 %v7055_v16, %v7466_v21  ;;  %v1236_v38 = vmul.f32 %v11067_v19, %v7532_v1  ;;  %v1237_v12 = vmul.f32 %v11068_v50, %v7558_v53 }
 0x515   :  { %v1923_v52 = vrot.slane %v1402_v28, %v7828_v15  ;;  %v1679_v42 = vmax.f32 %v1328_v4, %v1329_v62 }
 0x516   :  { %v1541_v62 = vmax.f32 %v1236_v38, %v1237_v12  ;;  %v1341_v38 = vmul.f32 %v7105_v59, %v7469_v40 }
 0x517   :  { %v1925_v5 = vsel %vm1924_vm12, %v1923_v52, %v1918_v29  ;;  %1722 = vmax.xlane.f32.xlu1 %v1721_v51  ;;  %1515 = vmax.xlane.f32.xlu0 %v1514_v14  ;;  %v1947_v29 = vadd.s32 4294967248, %v7784_v34  ;;  %v1937_v51 = vrot.slane %v1408_v54, %v7838_v0  ;;  %v1694_v52 = vmax.f32 %v1338_v10, %v1339_v58 }
 0x518   :  { %v1405_v6 = vpop.xlane.xlu1 %1404  ;;  %v1588_v28 = vpop.xlane.xlu0 %1587  ;;  %v7864_v14 = vsub.s32 %v1940_v41, %v11121_v17 }
 0x519   :  { %v1930_v27 = vrot.slane %v1405_v6, %v7842_v55  ;;  %v2257_v54 = vrot.slane %v1588_v28, %v7815_v37  ;;  %v7875_v41 = vsub.s32 %v1947_v29, %v11121_v17 }
 0x51a   :  { %11127 = vst [vmem:[#allocation49_spill] sm:$0xff] %v7864_v14 }
 0x51b   :  { %v1932_v33 = vsel %vm1931_vm0, %v1930_v27, %v1925_v5  ;;  %1680 = vmax.xlane.f32.xlu1 %v1679_v42  ;;  %1695 = vmax.xlane.f32.xlu0 %v1694_v52  ;;  %11128 = vst [vmem:[#allocation52_spill] sm:$0xff] %v7875_v41  ;;  %v1239_v42 = vmul.f32 %v7037_v11, %v7558_v53 }
 0x51c   :  { %v1591_v6 = vpop.xlane.xlu1 %1590  ;;  %v1939_v4 = vsel %vm1938_vm1, %v1937_v51, %v1932_v33  ;;  %v1411_v58 = vpop.xlane.xlu0 %1410  ;;  %v1517_v27 = vmax.f32 %v1220_v23, %v1221_v18  ;;  %v1340_v33 = vmul.f32 %v7111_v60, %v7466_v21  ;;  %v1240_v51 = vmul.f32 %v11069_v25, %v7532_v1 }
 0x51d   :  { %v2261_v10 = vrot.slane %v1591_v6, %v7806_v26  ;;  %v1944_v5 = vrot.slane %v1411_v58, %v7864_v14  ;;  %v1241_v18 = vmul.f32 %v11073_v7, %v7558_v53  ;;  %v1544_v6 = vmax.f32 %v1238_v57, %v1239_v42  ;;  %v11129_v26 = vld [vmem:[#allocation26_spill] sm:$0xff] }
 0x51e   :  { %v1961_v58 = vadd.s32 4294967232, %v7784_v34  ;;  %v1342_v37 = vmul.f32 %v11129_v26, %v7466_v21 }
 0x51f   :  { %v2262_v12 = vsel %vm1917_vm11, %v2261_v10, %v2257_v54  ;;  %1542 = vmax.xlane.f32.xlu1 %v1541_v62  ;;  %v1946_v28 = vsel %vm10699_vm10, %v1944_v5, %v1939_v4  ;;  %1518 = vmax.xlane.f32.xlu0 %v1517_v27  ;;  %v1954_v54 = vadd.s32 4294967240, %v7784_v34  ;;  %v1697_v4 = vmax.f32 %v1340_v33, %v1341_v38 }
 0x520   :  { %v1414_v29 = vpop.xlane.xlu1 %1413  ;;  %v1594_v52 = vpop.xlane.xlu0 %1593  ;;  %v1222_v10 = vmul.f32 %v7329_v24, %v7337_v8  ;;  %v1223_v5 = vmul.f32 %v7323_v61, %v7342_v2  ;;  %v1547_v42 = vmax.f32 %v1240_v51, %v1241_v18  ;;  %v7913_v51 = vsub.s32 %v1961_v58, %v11121_v17 }
 0x521   :  { %v1951_v23 = vrot.slane %v1414_v29, %v7875_v41  ;;  %v2266_v62 = vrot.slane %v1594_v52, %v7828_v15  ;;  %v11130_v52 = vld [vmem:[#allocation25_spill] sm:$0xff]  ;;  %v7906_v47 = vsub.s32 %v1954_v54, %v11121_v17 }
 0x522   :  { %v1343_v33 = vmul.f32 %v11130_v52, %v7469_v40  ;;  %11132 = vst [vmem:[#allocation81_spill] sm:$0xff] %v7913_v51  ;;  %v1520_v18 = vmax.f32 %v1222_v10, %v1223_v5  ;;  %v1247_v58 = vmul.f32 %v11130_v52, %v7558_v53 }
 0x523   :  { %v1953_v27 = vsel %vm1952_vm15, %v1951_v23, %v1946_v28  ;;  %1545 = vmax.xlane.f32.xlu1 %v1544_v6  ;;  %v2267_v29 = vsel %vm1924_vm12, %v2266_v62, %v2262_v12  ;;  %1698 = vmax.xlane.f32.xlu0 %v1697_v4  ;;  %11131 = vst [vmem:[#allocation6_spill] sm:$0xff] %v7906_v47  ;;  %v1968_v23 = vadd.s32 4294967224, %v7784_v34 }
 0x524   :  { %v1597_v57 = vpop.xlane.xlu1 %1596  ;;  %v1420_v15 = vpop.xlane.xlu0 %1419  ;;  %v1364_v28 = vmul.f32 %v11067_v19, %v7573_v49  ;;  %v1365_v12 = vmul.f32 %v11068_v50, %v7576_v36  ;;  %v1700_v54 = vmax.f32 %v1342_v37, %v1343_v33  ;;  %v1246_v50 = vmul.f32 %v11129_v26, %v7532_v1 }
 0x525   :  { %v2271_v38 = vrot.slane %v1597_v57, %v7842_v55  ;;  %v1965_v10 = vrot.slane %v1420_v15, %v7913_v51  ;;  %v7924_v5 = vsub.s32 %v1968_v23, %v11121_v17  ;;  %v1225_v37 = vmul.f32 %v7189_v43, %v7342_v2 }
 0x526   :  { %v1733_v19 = vmax.f32 %v1364_v28, %v1365_v12  ;;  %v1344_v15 = vmul.f32 %v11119_v56, %v7466_v21  ;;  %v1345_v28 = vmul.f32 %v11120_v46, %v7469_v40  ;;  %v1556_v23 = vmax.f32 %v1246_v50, %v1247_v58 }
 0x527   :  { %v2272_v6 = vsel %vm1931_vm0, %v2271_v38, %v2267_v29  ;;  %1548 = vmax.xlane.f32.xlu1 %v1547_v42  ;;  %1521 = vmax.xlane.f32.xlu0 %v1520_v18  ;;  %11133 = vst [vmem:[#allocation82_spill] sm:$0xff] %v7924_v5  ;;  %v1224_v29 = vmul.f32 %v7195_v45, %v7337_v8 }
 0x528   :  { %v1417_v62 = vpop.xlane.xlu1 %1416  ;;  %v1603_v57 = vpop.xlane.xlu0 %1602 }
 0x529   :  { %v1958_v4 = vrot.slane %v1417_v62, %v7906_v47  ;;  %v1366_v62 = vmul.f32 %v7043_v48, %v7573_v49 }
 0x52b   :  { %v1960_v42 = vsel %vm1959_vm6, %v1958_v4, %v1953_v27  ;;  %1734 = vmax.xlane.f32.xlu1 %v1733_v19  ;;  %1701 = vmax.xlane.f32.xlu0 %v1700_v54  ;;  %v1367_v19 = vmul.f32 %v7037_v11, %v7576_v36  ;;  %v2281_v27 = vrot.slane %v1603_v57, %v7864_v14 }
 0x52c   :  { %v1600_v33 = vpop.xlane.xlu1 %1599  ;;  %v1967_v38 = vsel %vm1966_vm9, %v1965_v10, %v1960_v42  ;;  %v1423_v18 = vpop.xlane.xlu0 %1422  ;;  %v1523_v4 = vmax.f32 %v1224_v29, %v1225_v37  ;;  %v1975_v10 = vadd.s32 4294967216, %v7784_v34  ;;  %v1248_v57 = vmul.f32 %v11119_v56, %v7532_v1 }
 0x52d   :  { %v2276_v12 = vrot.slane %v1600_v33, %v7838_v0  ;;  %v1972_v54 = vrot.slane %v1423_v18, %v7924_v5  ;;  %v1703_v0 = vmax.f32 %v1344_v15, %v1345_v28  ;;  %v1736_v11 = vmax.f32 %v1366_v62, %v1367_v19 }
 0x52e   :  { %v1249_v29 = vmul.f32 %v11120_v46, %v7558_v53  ;;  %v1346_v18 = vmul.f32 %v7151_v22, %v7466_v21  ;;  %v1347_v62 = vmul.f32 %v7145_v63, %v7469_v40  ;;  %v1368_v19 = vmul.f32 %v11069_v25, %v7573_v49 }
 0x52f   :  { %v2277_v42 = vsel %vm1938_vm1, %v2276_v12, %v2272_v6  ;;  %1557 = vmax.xlane.f32.xlu1 %v1556_v23  ;;  %v1974_v33 = vsel %vm1973_vm14, %v1972_v54, %v1967_v38  ;;  %1524 = vmax.xlane.f32.xlu0 %v1523_v4  ;;  %v7955_v6 = vsub.s32 %v1975_v10, %v11121_v17  ;;  %v1982_v54 = vadd.s32 4294967208, %v7784_v34 }
 0x530   :  { %v7946_v50 = vpop.xlane.xlu1 %1629  ;;  %v2282_v58 = vsel %vm10699_vm10, %v2281_v27, %v2277_v42  ;;  %v1606_v48 = vpop.xlane.xlu0 %1605  ;;  %v1226_v38 = vmul.f32 %v7233_v35, %v7337_v8  ;;  %v1227_v12 = vmul.f32 %v11071_v13, %v7342_v2  ;;  %v1559_v23 = vmax.f32 %v1248_v57, %v1249_v29 }
 0x531   :  { %v2286_v37 = vrot.slane %v1606_v48, %v7875_v41  ;;  %11134 = vst [vmem:[#allocation83_spill] sm:$0xff] %v7955_v6  ;;  %v1250_v29 = vmul.f32 %v7151_v22, %v7532_v1  ;;  %v1230_v13 = vmul.f32 %v11082_v9, %v7337_v8 }
 0x533   :  { %1737 = vmax.xlane.f32.xlu1 %v1736_v11  ;;  %v2287_v15 = vsel %vm1952_vm15, %v2286_v37, %v2282_v58  ;;  %1704 = vmax.xlane.f32.xlu0 %v1703_v0  ;;  %v1369_v11 = vmul.f32 %v11073_v7, %v7576_v36  ;;  %v1526_v0 = vmax.f32 %v1226_v38, %v1227_v12 }
 0x534   :  { %v7962_v28 = vpop.xlane.xlu1 %1632  ;;  %v1426_v48 = vpop.xlane.xlu0 %1425  ;;  %v1706_v58 = vmax.f32 %v1346_v18, %v1347_v62  ;;  %v1251_v37 = vmul.f32 %v7145_v63, %v7558_v53  ;;  %v7983_v38 = vsub.s32 %v1982_v54, %v11121_v17  ;;  %v1229_v12 = vmul.f32 %v7227_v30, %v7342_v2 }
 0x535   :  { %v1979_v27 = vrot.slane %v1426_v48, %v7955_v6  ;;  %v1739_v57 = vmax.f32 %v1368_v19, %v1369_v11  ;;  %v1348_v11 = vmul.f32 %v7183_v32, %v7466_v21 }
 0x536   :  { %11135 = vst [vmem:[#allocation84_spill] sm:$0xff] %v7983_v38  ;;  %v1562_v19 = vmax.f32 %v1250_v29, %v1251_v37 }
 0x537   :  { %1560 = vmax.xlane.f32.xlu1 %v1559_v23  ;;  %v1981_v4 = vsel %vm10703_vm5, %v1979_v27, %v1974_v33  ;;  %1527 = vmax.xlane.f32.xlu0 %v1526_v0  ;;  %v1228_v33 = vmul.f32 %v7263_v31, %v7337_v8  ;;  %v1370_v27 = vmul.f32 %v7055_v16, %v7573_v49 }
 0x538   :  { %v7975_v10 = vpop.xlane.xlu1 %1491  ;;  %v1609_v42 = vpop.xlane.xlu0 %1608  ;;  %v1371_v0 = vmul.f32 %v7049_v3, %v7576_v36 }
 0x539   :  { %v2291_v48 = vrot.slane %v1609_v42, %v7906_v47  ;;  %v1529_v42 = vmax.f32 %v1228_v33, %v1229_v12  ;;  %v1253_v33 = vmul.f32 %v7177_v39, %v7558_v53 }
 0x53b   :  { %1740 = vmax.xlane.f32.xlu1 %v1739_v57  ;;  %v2292_v18 = vsel %vm1959_vm6, %v2291_v48, %v2287_v15  ;;  %1707 = vmax.xlane.f32.xlu0 %v1706_v58  ;;  %v1349_v15 = vmul.f32 %v7177_v39, %v7469_v40  ;;  %v1989_v58 = vadd.s32 4294967200, %v7784_v34  ;;  %v1742_v48 = vmax.f32 %v1370_v27, %v1371_v0 }
 0x53c   :  { %v7990_v23 = vpop.xlane.xlu1 %1497  ;;  %v1429_v62 = vpop.xlane.xlu0 %1428 }
 0x53d   :  { %v1986_v54 = vrot.slane %v1429_v62, %v7983_v38  ;;  %v1252_v62 = vmul.f32 %v7183_v32, %v7532_v1  ;;  %v1709_v35 = vmax.f32 %v1348_v11, %v1349_v15  ;;  %v1351_v11 = vmul.f32 %v7323_v61, %v7469_v40 }
 0x53e   :  { %v1372_v15 = vmul.f32 %v7111_v60, %v7573_v49  ;;  %v1254_v60 = vmul.f32 %v7329_v24, %v7532_v1 }
 0x53f   :  { %1563 = vmax.xlane.f32.xlu1 %v1562_v19  ;;  %v1988_v57 = vsel %vm10702_vm4, %v1986_v54, %v1981_v4  ;;  %1530 = vmax.xlane.f32.xlu0 %v1529_v42  ;;  %v8013_v19 = vsub.s32 %v1989_v58, %v11121_v17  ;;  %v1231_v4 = vmul.f32 %v11084_v20, %v7342_v2 }
 0x540   :  { %v8003_v29 = vpop.xlane.xlu1 %1455  ;;  %v1612_v37 = vpop.xlane.xlu0 %1611  ;;  %v1350_v54 = vmul.f32 %v7329_v24, %v7466_v21  ;;  %v1565_v39 = vmax.f32 %v1252_v62, %v1253_v33  ;;  %v1373_v58 = vmul.f32 %v7105_v59, %v7576_v36  ;;  %v1255_v59 = vmul.f32 %v7323_v61, %v7558_v53  ;;  %v11140_v61 = vld [vmem:[#allocation51_spill] sm:$0xff] }
 0x541   :  { %v2296_v12 = vrot.slane %v1612_v37, %v7913_v51  ;;  %11136 = vst [vmem:[#allocation85_spill] sm:$0xff] %v8013_v19  ;;  %v1996_v37 = vadd.s32 4294967192, %v7784_v34  ;;  %v1359_v24 = vmul.f32 %v11084_v20, %v7469_v40 }
 0x542   :  { %v1712_v33 = vmax.f32 %v1350_v54, %v1351_v11  ;;  %v1745_v32 = vmax.f32 %v1372_v15, %v1373_v58  ;;  %v1568_v58 = vmax.f32 %v1254_v60, %v1255_v59 }
 0x543   :  { %1743 = vmax.xlane.f32.xlu1 %v1742_v48  ;;  %v2297_v27 = vsel %vm1966_vm9, %v2296_v12, %v2292_v18  ;;  %1710 = vmax.xlane.f32.xlu0 %v1709_v35  ;;  %v1532_v35 = vmax.f32 %v1230_v13, %v1231_v4  ;;  %v8039_v13 = vsub.s32 %v1996_v37, %v11121_v17 }
 0x544   :  { %v8018_v0 = vpop.xlane.xlu1 %1458  ;;  %v1432_v42 = vpop.xlane.xlu0 %1431 }
 0x545   :  { %v1993_v18 = vrot.slane %v1432_v42, %v8013_v19  ;;  %11137 = vst [vmem:[#allocation86_spill] sm:$0xff] %v8039_v13 }
 0x547   :  { %1566 = vmax.xlane.f32.xlu1 %v1565_v39  ;;  %v1995_v48 = vsel %vm1994_vm3, %v1993_v18, %v1988_v57  ;;  %1533 = vmax.xlane.f32.xlu0 %v1532_v35  ;;  %v1232_v39 = vmul.f32 %v11094_v44, %v7337_v8  ;;  %v11138_v57 = vld [vmem:[#allocation11_spill] sm:$0xff]  ;;  %v1374_v18 = vmul.f32 %v11129_v26, %v7573_v49 }
 0x548   :  { %v8031_v12 = vpop.xlane.xlu1 %1635  ;;  %v1615_v62 = vpop.xlane.xlu0 %1614  ;;  %v1233_v4 = vmul.f32 %v11138_v57, %v7342_v2  ;;  %v1375_v35 = vmul.f32 %v11130_v52, %v7576_v36  ;;  %v1352_v2 = vmul.f32 %v7195_v45, %v7466_v21 }
 0x549   :  { %v2301_v42 = vrot.slane %v1615_v62, %v7924_v5 }
 0x54a   :  { %v1535_v37 = vmax.f32 %v1232_v39, %v1233_v4  ;;  %v1748_v62 = vmax.f32 %v1374_v18, %v1375_v35  ;;  %v11139_v4 = vld [vmem:[#allocation50_spill] sm:$0xff] }
 0x54b   :  { %1746 = vmax.xlane.f32.xlu1 %v1745_v32  ;;  %v8046_v54 = vsel %vm1973_vm14, %v2301_v42, %v2297_v27  ;;  %1713 = vmax.xlane.f32.xlu0 %v1712_v33  ;;  %v1353_v32 = vmul.f32 %v7189_v43, %v7469_v40  ;;  %v1256_v33 = vmul.f32 %v7195_v45, %v7532_v1 }
 0x54c   :  { %v8048_v11 = vpop.xlane.xlu1 %1506  ;;  %v1435_v15 = vpop.xlane.xlu0 %1434  ;;  %v1257_v42 = vmul.f32 %v7189_v43, %v7558_v53  ;;  %v1376_v1 = vmul.f32 %v11119_v56, %v7573_v49  ;;  %v1377_v53 = vmul.f32 %v11120_v46, %v7576_v36  ;;  %v11178_v43 = vld [vmem:[#allocation72_spill] sm:$0xff] }
 0x54d   :  { %v2000_v8 = vrot.slane %v1435_v15, %v8039_v13  ;;  %v1715_v39 = vmax.f32 %v1352_v2, %v1353_v32  ;;  %v1324_v15 = vmul.f32 %v7263_v31, %v11139_v4  ;;  %v1327_v2 = vmul.f32 %v11084_v20, %v11140_v61 }
 0x54e   :  { %v1571_v18 = vmax.f32 %v1256_v33, %v1257_v42  ;;  %v1358_v42 = vmul.f32 %v11082_v9, %v7466_v21 }
 0x54f   :  { %1569 = vmax.xlane.f32.xlu1 %v1568_v58  ;;  %v8060_v27 = vsel %vm2001_vm7, %v2000_v8, %v1995_v48  ;;  %1536 = vmax.xlane.f32.xlu0 %v1535_v37  ;;  %v1325_v58 = vmul.f32 %v7227_v30, %v11140_v61  ;;  %v1326_v37 = vmul.f32 %v11082_v9, %v11139_v4  ;;  %v2940_v9 = vld [vmem:[%s10495_s12 + $0x8] sm:$0xff] }
 0x550   :  { %v8062_v59 = vpop.xlane.xlu1 %1683  ;;  %v1618_v60 = vpop.xlane.xlu0 %1617  ;;  %v1378_v61 = vmul.f32 %v7151_v22, %v7573_v49 }
 0x551   :  { %v1673_v35 = vmax.f32 %v1324_v15, %v1325_v58  ;;  %v1676_v33 = vmax.f32 %v1326_v37, %v1327_v2  ;;  %v1379_v58 = vmul.f32 %v7145_v63, %v7576_v36  ;;  %v11141_v37 = vld [vmem:[#allocation41_spill] sm:$0xff]  ;;  %v11142_v2 = vld [vmem:[#allocation42_spill] sm:$0xff]  ;;  %v2306_v36 = vrot.slane %v1618_v60, %v7955_v6 }
 0x553   :  { %1749 = vmax.xlane.f32.xlu1 %v1748_v62  ;;  %1716 = vmax.xlane.f32.xlu0 %v1715_v39  ;;  %v1751_v39 = vmax.f32 %v1376_v1, %v1377_v53  ;;  %v1360_v1 = vmul.f32 %v11094_v44, %v7466_v21  ;;  %v1361_v53 = vmul.f32 %v11138_v57, %v7469_v40 }
 0x554   :  { %v8072_v48 = vpop.xlane.xlu1 %1509  ;;  %v8074_v8 = vpop.xlane.xlu0 %1437  ;;  %v2307_v60 = vsel %vm10703_vm5, %v2306_v36, %v8046_v54 }
 0x555   :  { %v1727_v30 = vmax.f32 %v1360_v1, %v1361_v53  ;;  %v11146_v53 = vld [vmem:[#allocation53_spill] sm:$0xff] }
 0x557   :  { %1572 = vmax.xlane.f32.xlu1 %v1571_v18  ;;  %1674 = vmax.xlane.f32.xlu0 %v1673_v35  ;;  %v1724_v18 = vmax.f32 %v1358_v42, %v1359_v24  ;;  %v2003_v35 = vadd.s32 4294967184, %v7784_v34  ;;  %v1754_v42 = vmax.f32 %v1378_v61, %v1379_v58 }
 0x558   :  { %v8084_v32 = vpop.xlane.xlu1 %1689  ;;  %v1621_v62 = vpop.xlane.xlu0 %1620 }
 0x559   :  { %v2311_v21 = vrot.slane %v1621_v62, %v7983_v38  ;;  %v8112_v40 = vsub.s32 %v2003_v35, %v11121_v17  ;;  %v11147_v35 = vld [vmem:[#allocation54_spill] sm:$0xff] }
 0x55b   :  { %1752 = vmax.xlane.f32.xlu1 %v1751_v39  ;;  %1677 = vmax.xlane.f32.xlu0 %v1676_v33  ;;  %v11143_v39 = vmax.f32 %v11141_v37, %v11142_v2  ;;  %v2010_v33 = vadd.s32 4294967176, %v7784_v34  ;;  %11144 = vst [vmem:[#allocation50_spill] sm:$0xff] %v8112_v40  ;;  %v2312_v61 = vsel %vm10702_vm4, %v2311_v21, %v2307_v60  ;;  %v11149_v2 = vld [vmem:[#allocation55_spill] sm:$0xff]  ;;  %v11154_v21 = vld [vmem:[#allocation58_spill] sm:$0xff] }
 0x55c   :  { %v8090_v15 = vpop.xlane.xlu1 %1467  ;;  %v8092_v4 = vpop.xlane.xlu0 %1440  ;;  %v2326_v58 = vrot.slane %v7946_v50, %v8112_v40 }
 0x55d   :  { %v8116_v37 = vsub.s32 %v2010_v33, %v11121_v17  ;;  %v11148_v17 = vmax.f32 %v11146_v53, %v11147_v35  ;;  %v11159_v53 = vld [vmem:[#allocation61_spill] sm:$0xff]  ;;  %v11160_v35 = vld [vmem:[#allocation62_spill] sm:$0xff]  ;;  %v2059_v56 = vrot.slane %v8090_v15, %v7913_v51 }
 0x55f   :  { %1575 = vmax.xlane.f32.xlu1 %v11143_v39  ;;  %1725 = vmax.xlane.f32.xlu0 %v1724_v18  ;;  %11145 = vst [vmem:[#allocation51_spill] sm:$0xff] %v8116_v37  ;;  %v11150_v39 = vld [vmem:[#allocation56_spill] sm:$0xff] }
 0x560   :  { %v8107_v49 = vpop.xlane.xlu1 %1647  ;;  %v1624_v24 = vpop.xlane.xlu0 %1623  ;;  %v11151_v33 = vmax.f32 %v11149_v2, %v11150_v39 }
 0x561   :  { %v2316_v31 = vrot.slane %v1624_v24, %v8013_v19 }
 0x563   :  { %1755 = vmax.xlane.f32.xlu1 %v1754_v42  ;;  %1728 = vmax.xlane.f32.xlu0 %v1727_v30  ;;  %v2317_v1 = vsel %vm1994_vm3, %v2316_v31, %v2312_v61  ;;  %v2331_v30 = vrot.slane %v7962_v28, %v8116_v37  ;;  %v11153_v42 = vld [vmem:[#allocation57_spill] sm:$0xff]  ;;  %v11156_v28 = vld [vmem:[#allocation59_spill] sm:$0xff] }
 0x564   :  { %v8118_v34 = vpop.xlane.xlu1 %1470  ;;  %v1627_v18 = vpop.xlane.xlu0 %1626  ;;  %v11155_v60 = vmax.f32 %v11153_v42, %v11154_v21  ;;  %v11168_v21 = vld [vmem:[#allocation67_spill] sm:$0xff] }
 0x565   :  { %v2321_v62 = vrot.slane %v1627_v18, %v8039_v13  ;;  %v11157_v18 = vld [vmem:[#allocation60_spill] sm:$0xff]  ;;  %v2064_v22 = vrot.slane %v8118_v34, %v7924_v5 }
 0x566   :  { %v11158_v61 = vmax.f32 %v11156_v28, %v11157_v18 }
 0x567   :  { %1578 = vmax.xlane.f32.xlu1 %v11148_v17  ;;  %v2322_v54 = vsel %vm2001_vm7, %v2321_v62, %v2317_v1  ;;  %1539 = vmax.xlane.f32.xlu0 %v11151_v33  ;;  %v11161_v17 = vmax.f32 %v11159_v53, %v11160_v35  ;;  %v11165_v33 = vld [vmem:[#allocation65_spill] sm:$0xff] }
 0x568   :  { %v8136_v36 = vpop.xlane.xlu1 %1650  ;;  %v2327_v50 = vsel %vm2008_vm13, %v2326_v58, %v2322_v54  ;;  %v1444_v31 = vpop.xlane.xlu0 %1443  ;;  %v11162_v58 = vld [vmem:[#allocation63_spill] sm:$0xff]  ;;  %v11163_v54 = vld [vmem:[#allocation64_spill] sm:$0xff]  ;;  %v11171_v53 = vld [vmem:[#allocation45_spill] sm:$0xff] }
 0x569   :  { %v8140_v24 = vsel %vm10698_vm8, %v2331_v30, %v2327_v50  ;;  %v11164_v2 = vmax.f32 %v11162_v58, %v11163_v54  ;;  %v11166_v50 = vld [vmem:[#allocation66_spill] sm:$0xff]  ;;  %v2099_v35 = vrot.slane %v7975_v10, %v11171_v53 }
 0x56a   :  { %11152 = vst [vmem:[#allocation41_spill] sm:$0xff] %v8140_v24  ;;  %v11167_v42 = vmax.f32 %v11165_v33, %v11166_v50  ;;  %v11174_v50 = vld [vmem:[#allocation69_spill] sm:$0xff] }
 0x56b   :  { %1758 = vmax.xlane.f32.xlu1 %v11155_v60  ;;  %1551 = vmax.xlane.f32.xlu0 %v11158_v61  ;;  %v11169_v60 = vld [vmem:[#allocation68_spill] sm:$0xff] }
 0x56c   :  { %v8148_v62 = vpop.xlane.xlu1 %1473  ;;  %v1447_v1 = vpop.xlane.xlu0 %1446  ;;  %v11170_v28 = vmax.f32 %v11168_v21, %v11169_v60  ;;  %v2020_v21 = vrot.slane %v1444_v31, %v11171_v53 }
 0x56f   :  { %1581 = vmax.xlane.f32.xlu1 %v11161_v17  ;;  %1554 = vmax.xlane.f32.xlu0 %v11164_v2  ;;  %v11172_v17 = vld [vmem:[#allocation44_spill] sm:$0xff]  ;;  %v11173_v2 = vld [vmem:[#allocation46_spill] sm:$0xff] }
 0x570   :  { %v8156_v30 = vpop.xlane.xlu1 %1653  ;;  %v1450_v39 = vpop.xlane.xlu0 %1449  ;;  %v2024_v58 = vrot.slane %v1447_v1, %v11172_v17  ;;  %v2108_v57 = vrot.slane %v7990_v23, %v11173_v2 }
 0x571   :  { %v2029_v33 = vrot.slane %v1450_v39, %v11173_v2 }
 0x572   :  { %v2025_v23 = vsel %vm1917_vm11, %v2024_v58, %v2020_v21 }
 0x573   :  { %1761 = vmax.xlane.f32.xlu1 %v11167_v42  ;;  %1731 = vmax.xlane.f32.xlu0 %v11170_v28  ;;  %v11175_v42 = vld [vmem:[#allocation70_spill] sm:$0xff]  ;;  %v11177_v28 = vld [vmem:[#allocation71_spill] sm:$0xff]  ;;  %v2030_v31 = vsel %vm1924_vm12, %v2029_v33, %v2025_v23  ;;  %v11187_v33 = vld [vmem:[#allocation77_spill] sm:$0xff] }
 0x574   :  { %v8164_v18 = vpop.xlane.xlu1 %1476  ;;  %v1495_v61 = vpop.xlane.xlu0 %1494  ;;  %v11176_v44 = vmax.f32 %v11174_v50, %v11175_v42  ;;  %v11179_v10 = vmax.f32 %v11177_v28, %v11178_v43  ;;  %v11180_v50 = vld [vmem:[#allocation47_spill] sm:$0xff]  ;;  %v2044_v43 = vrot.slane %v8018_v0, %v7864_v14  ;;  %v11188_v23 = vld [vmem:[#allocation78_spill] sm:$0xff] }
 0x575   :  { %v2103_v54 = vrot.slane %v1495_v61, %v11172_v17 }
 0x577   :  { %1770 = vmax.xlane.f32.xlu1 %v11176_v44  ;;  %v2104_v60 = vsel %vm1917_vm11, %v2103_v54, %v2099_v35  ;;  %1584 = vmax.xlane.f32.xlu0 %v11179_v10  ;;  %v2039_v44 = vrot.slane %v8003_v29, %v11180_v50  ;;  %v11181_v35 = vld [vmem:[#allocation73_spill] sm:$0xff]  ;;  %v11182_v54 = vld [vmem:[#allocation74_spill] sm:$0xff] }
 0x578   :  { %v8181_v1 = vpop.xlane.xlu1 %1656  ;;  %v1453_v61 = vpop.xlane.xlu0 %1452  ;;  %v8184_v45 = vsel %vm1924_vm12, %v2108_v57, %v2104_v60  ;;  %v11183_v42 = vmax.f32 %v11181_v35, %v11182_v54  ;;  %v11184_v57 = vld [vmem:[#allocation75_spill] sm:$0xff]  ;;  %v11185_v60 = vld [vmem:[#allocation76_spill] sm:$0xff]  ;;  %v11189_v35 = vmax.f32 %v11187_v33, %v11188_v23 }
 0x579   :  { %v2034_v39 = vrot.slane %v1453_v61, %v7842_v55  ;;  %v11186_v10 = vmax.f32 %v11184_v57, %v11185_v60  ;;  %v8230_v33 = vld [vmem:[%s10494_s11 + $0x10] sm:$0xff] }
 0x57a   :  { %11194 = vst [vmem:[#allocation53_spill] sm:$0xff] %v8230_v33 }
 0x57b   :  { %1773 = vmax.xlane.f32.xlu1 %v11183_v42  ;;  %v2035_v28 = vsel %vm1931_vm0, %v2034_v39, %v2030_v31  ;;  %1764 = vmax.xlane.f32.xlu0 %v11186_v10  ;;  %v11190_v39 = vld [vmem:[#allocation79_spill] sm:$0xff]  ;;  %v11191_v31 = vld [vmem:[#allocation80_spill] sm:$0xff] }
 0x57c   :  { %v1480_v58 = vpop.xlane.xlu1 %1479  ;;  %v2040_v21 = vsel %vm1938_vm1, %v2039_v44, %v2035_v28  ;;  %v8201_v61 = vpop.xlane.xlu0 %1500  ;;  %v11192_v42 = vmax.f32 %v11190_v39, %v11191_v31  ;;  %v8241_v39 = vld [vmem:[%s10494_s11 + $0x18] sm:$0xff] }
 0x57d   :  { %v2045_v29 = vsel %vm10699_vm10, %v2044_v43, %v2040_v21  ;;  %v8221_v43 = vld [vmem:[%s10494_s11] sm:$0xff]  ;;  %11195 = vst [vmem:[#allocation54_spill] sm:$0xff] %v8241_v39 }
 0x57e   :  { %11193 = vst [vmem:[#allocation42_spill] sm:$0xff] %v8221_v43 }
 0x57f   :  { %1767 = vmax.xlane.f32.xlu0 %v11189_v35 }
 0x580   :  { %v8207_v54 = vpop.xlane.xlu1 %1659  ;;  %v8209_v0 = vpop.xlane.xlu0 %1503 }
 0x583   :  { %1776 = vmax.xlane.f32.xlu0 %v11192_v42 }
 0x584   :  { %v1483_v57 = vpop.xlane.xlu1 %1482  ;;  %v8214_v60 = vpop.xlane.xlu0 %1638 }
 0x588   :  { %v8216_v44 = vpop.xlane.xlu1 %1662  ;;  %v1462_v28 = vpop.xlane.xlu0 %1461 }
 0x589   :  { %v2049_v31 = vrot.slane %v1462_v28, %v7875_v41  ;;  %v8256_v28 = vld [vmem:[%s10494_s11 + $0x8] sm:$0xff] }
 0x58a   :  { %11196 = vst [vmem:[#allocation55_spill] sm:$0xff] %v8256_v28 }
 0x58b   :  { %v2050_v63 = vsel %vm1952_vm15, %v2049_v31, %v2045_v29  ;;  %v2942_v29 = vld [vmem:[%s10495_s12 + $0x18] sm:$0xff]  ;;  %v2074_v31 = vrot.slane %v8164_v18, %v7983_v38 }
 0x58c   :  { %v1486_v10 = vpop.xlane.xlu1 %1485  ;;  %2737 = vrot.lane.b32.xlu1 %v8221_v43, %s6126_s5  ;;  %v8225_v21 = vpop.xlane.xlu0 %1641 }
 0x590   :  { %v8232_v23 = vpop.xlane.xlu1 %1665  ;;  %2741 = vrot.lane.b32.xlu1 %v8230_v33, %s6126_s5  ;;  %v8236_v35 = vpop.xlane.xlu0 %1686 }
 0x594   :  { %v1489_v42 = vpop.xlane.xlu1 %1488  ;;  %2743 = vrot.lane.b32.xlu1 %v8241_v39, %s6126_s5  ;;  %v1465_v20 = vpop.xlane.xlu0 %1464 }
 0x595   :  { %v2054_v46 = vrot.slane %v1465_v20, %v7906_v47  ;;  %v2069_v20 = vrot.slane %v8148_v62, %v7955_v6  ;;  %v2084_v62 = vrot.slane %v1483_v57, %v8039_v13 }
 0x597   :  { %v2055_v52 = vsel %vm1959_vm6, %v2054_v46, %v2050_v63  ;;  %v2007_v63 = vrot.slane %v8074_v8, %v8112_v40  ;;  %v2939_v46 = vld [vmem:[%s10495_s12] sm:$0xff]  ;;  %v2089_v8 = vrot.slane %v1486_v10, %v8112_v40  ;;  %v2941_v10 = vld [vmem:[%s10495_s12 + $0x10] sm:$0xff] }
 0x598   :  { %v8261_v26 = vpop.xlane.xlu1 %1668  ;;  %2950 = vperm.xlu1 %6098, %v2940_v9   ;;  %v2060_v15 = vsel %vm1966_vm9, %v2059_v56, %v2055_v52  ;;  %v8266_v7 = vpop.xlane.xlu0 %1644  ;;  %v2079_v9 = vrot.slane %v1480_v58, %v8013_v19  ;;  %v2014_v52 = vrot.slane %v8092_v4, %v8116_v37 }
 0x599   :  { %v2065_v34 = vsel %vm1973_vm14, %v2064_v22, %v2060_v15  ;;  %2739 = vrot.lane.b32.xlu0 %v8256_v28, %s6126_s5  ;;  %v2009_v57 = vsel %vm2008_vm13, %v2007_v63, %v8060_v27  ;;  %v2983_v63 = vld [vmem:[%s10497_s14] sm:$0xff]  ;;  %v2113_v28 = vrot.slane %v8201_v61, %v7842_v55 }
 0x59a   :  { %v2070_v56 = vsel %vm10703_vm5, %v2069_v20, %v2065_v34  ;;  %v2984_v20 = vld [vmem:[%s10497_s14 + $0x8] sm:$0xff]  ;;  %v2094_v34 = vrot.slane %v1489_v42, %v8116_v37 }
 0x59b   :  { %v2075_v22 = vsel %vm10702_vm4, %v2074_v31, %v2070_v56  ;;  %v2016_v31 = vsel %vm10698_vm8, %v2014_v52, %v2009_v57  ;;  %v2114_v24 = vsel %vm1931_vm0, %v2113_v28, %v8184_v45 }
 0x59c   :  { %v8287_v18 = vpop.xlane.xlu1 %1671  ;;  %2960 = vperm.xlu1 %6098, %v2942_v29   ;;  %v2080_v58 = vsel %vm1994_vm3, %v2079_v9, %v2075_v22  ;;  %v8291_v15 = vpop.xlane.xlu0 %1512  ;;  %v2985_v22 = vld [vmem:[%s10497_s14 + $0x10] sm:$0xff] }
 0x59d   :  { %2945 = vperm.xlu0 %6097, %v2939_v46   ;;  %v2085_v4 = vsel %vm2001_vm7, %v2084_v62, %v2080_v58  ;;  %v2986_v46 = vld [vmem:[%s10497_s14 + $0x18] sm:$0xff] }
 0x59e   :  { %v2090_v29 = vsel %vm2008_vm13, %v2089_v8, %v2085_v4 }
 0x59f   :  { %v2095_v42 = vsel %vm10698_vm8, %v2094_v34, %v2090_v29 }
 0x5a0   :  { %v8305_v9 = vpop.xlane.xlu1 %1719  ;;  %2994 = vperm.xlu1 %6098, %v2984_v20   ;;  %v8308_v56 = vpop.xlane.xlu0 %1692  ;;  %v8314_v27 = vsel %vm10696_vm2, %v2095_v42, %v2016_v31  ;;  %v3117_v20 = vld [vmem:[%s10499_s16] sm:$0xff]  ;;  %vm10697_vm2 = vcmask 1042434  }
 0x5a1   :  { %2955 = vperm.xlu0 %6097, %v2941_v10  }
 0x5a4   :  { %v8319_v52 = vpop.xlane.xlu1 %1722  ;;  %3004 = vperm.xlu1 %6098, %v2986_v46   ;;  %v1516_v62 = vpop.xlane.xlu0 %1515 }
 0x5a5   :  { %11197 = vst [vmem:[#allocation56_spill] sm:$0xff] %v8319_v52  ;;  %2989 = vperm.xlu0 %6097, %v2983_v63   ;;  %v2118_v52 = vrot.slane %v8209_v0, %v11180_v50  ;;  %v2128_v0 = vrot.slane %v8072_v48, %v7875_v41  ;;  %v2138_v45 = vrot.slane %v1516_v62, %v7913_v51 }
 0x5a8   :  { %v8324_v8 = vpop.xlane.xlu1 %1680  ;;  %v8326_v58 = vpop.xlane.xlu0 %1695 }
 0x5a9   :  { %11198 = vst [vmem:[#allocation57_spill] sm:$0xff] %v8324_v8  ;;  %2999 = vperm.xlu0 %6097, %v2985_v22  }
 0x5ac   :  { %v8331_v34 = vpop.xlane.xlu1 %1542  ;;  %v1519_v4 = vpop.xlane.xlu0 %1518 }
 0x5ad   :  { %3120 = vperm.xlu0 %6097, %v3117_v20  }
 0x5b0   :  { %v8333_v57 = vpop.xlane.xlu1 %1545  ;;  %v8335_v10 = vpop.xlane.xlu0 %1698 }
 0x5b4   :  { %v8337_v29 = vpop.xlane.xlu1 %1548  ;;  %v1522_v31 = vpop.xlane.xlu0 %1521 }
 0x5b8   :  { %v8339_v42 = vpop.xlane.xlu1 %1734  ;;  %v8341_v46 = vpop.xlane.xlu0 %1701 }
 0x5b9   :  { %11199 = vst [vmem:[#allocation58_spill] sm:$0xff] %v8339_v42 }
 0x5bc   :  { %v8343_v63 = vpop.xlane.xlu1 %1557  ;;  %v1525_v22 = vpop.xlane.xlu0 %1524 }
 0x5bd   :  { %11200 = vst [vmem:[#allocation59_spill] sm:$0xff] %v8343_v63 }
 0x5c0   :  { %v8345_v25 = vpop.xlane.xlu1 %1737  ;;  %v8347_v3 = vpop.xlane.xlu0 %1704 }
 0x5c1   :  { %11201 = vst [vmem:[#allocation60_spill] sm:$0xff] %v8345_v25 }
 0x5c4   :  { %v8349_v16 = vpop.xlane.xlu1 %1560  ;;  %v1528_v20 = vpop.xlane.xlu0 %1527 }
 0x5c5   :  { %11202 = vst [vmem:[#allocation61_spill] sm:$0xff] %v8349_v16  ;;  %v2119_v16 = vsel %vm1938_vm1, %v2118_v52, %v2114_v24  ;;  %v2143_v24 = vrot.slane %v1519_v4, %v7924_v5 }
 0x5c8   :  { %v8351_v39 = vpop.xlane.xlu1 %1740  ;;  %v8353_v33 = vpop.xlane.xlu0 %1707 }
 0x5c9   :  { %11203 = vst [vmem:[#allocation62_spill] sm:$0xff] %v8351_v39  ;;  %v2123_v39 = vrot.slane %v8048_v11, %v7864_v14 }
 0x5cb   :  { %v2124_v61 = vsel %vm10699_vm10, %v2123_v39, %v2119_v16  ;;  %v2153_v16 = vrot.slane %v1525_v22, %v7983_v38  ;;  %v2340_v22 = vrot.slane %v8214_v60, %v11172_v17 }
 0x5cc   :  { %v8357_v43 = vpop.xlane.xlu1 %1563  ;;  %v1531_v8 = vpop.xlane.xlu0 %1530  ;;  %v2129_v52 = vsel %vm1952_vm15, %v2128_v0, %v2124_v61 }
 0x5cd   :  { %11204 = vst [vmem:[#allocation63_spill] sm:$0xff] %v8357_v43  ;;  %v2133_v43 = vrot.slane %v8291_v15, %v7906_v47  ;;  %v2163_v4 = vrot.slane %v1531_v8, %v8039_v13  ;;  %v2336_v8 = vrot.slane %v8031_v12, %v11171_v53 }
 0x5cf   :  { %v2134_v11 = vsel %vm1959_vm6, %v2133_v43, %v2129_v52  ;;  %v2345_v52 = vrot.slane %v8225_v21, %v11173_v2 }
 0x5d0   :  { %v8363_v25 = vpop.xlane.xlu1 %1743  ;;  %v8366_v63 = vpop.xlane.xlu0 %1710  ;;  %v2139_v15 = vsel %vm1966_vm9, %v2138_v45, %v2134_v11 }
 0x5d1   :  { %11205 = vst [vmem:[#allocation64_spill] sm:$0xff] %v8363_v25  ;;  %v2148_v25 = vrot.slane %v1522_v31, %v7955_v6  ;;  %v2144_v62 = vsel %vm1973_vm14, %v2143_v24, %v2139_v15 }
 0x5d3   :  { %v2149_v61 = vsel %vm10703_vm5, %v2148_v25, %v2144_v62 }
 0x5d4   :  { %v8373_v42 = vpop.xlane.xlu1 %1566  ;;  %v1534_v28 = vpop.xlane.xlu0 %1533  ;;  %v2154_v43 = vsel %vm10702_vm4, %v2153_v16, %v2149_v61  ;;  %v2341_v16 = vsel %vm1917_vm11, %v2340_v22, %v2336_v8  ;;  %v2375_v8 = vrot.slane %v8207_v54, %v7913_v51  ;;  %v2415_v54 = vrot.slane %v8062_v59, %v11171_v53 }
 0x5d5   :  { %11206 = vst [vmem:[#allocation65_spill] sm:$0xff] %v8373_v42  ;;  %v2158_v42 = vrot.slane %v1528_v20, %v8013_v19  ;;  %v2168_v31 = vrot.slane %v1534_v28, %v8112_v40  ;;  %v2350_v28 = vrot.slane %v8266_v7, %v7842_v55  ;;  %v2346_v62 = vsel %vm1924_vm12, %v2345_v52, %v2341_v16 }
 0x5d6   :  { %v2355_v7 = vrot.slane %v8107_v49, %v11180_v50  ;;  %v2419_v16 = vrot.slane %v8236_v35, %v11172_v17 }
 0x5d7   :  { %v2159_v45 = vsel %vm1994_vm3, %v2158_v42, %v2154_v43  ;;  %v2351_v12 = vsel %vm1931_vm0, %v2350_v28, %v2346_v62  ;;  %v2360_v43 = vrot.slane %v8136_v36, %v7864_v14 }
 0x5d8   :  { %v8383_v39 = vpop.xlane.xlu1 %1746  ;;  %v8387_v48 = vpop.xlane.xlu0 %1713  ;;  %v2164_v24 = vsel %vm2001_vm7, %v2163_v4, %v2159_v45  ;;  %v2420_v35 = vsel %vm1917_vm11, %v2419_v16, %v2415_v54 }
 0x5d9   :  { %v2169_v11 = vsel %vm2008_vm13, %v2168_v31, %v2164_v24  ;;  %v2356_v31 = vsel %vm1938_vm1, %v2355_v7, %v2351_v12  ;;  %v2370_v24 = vrot.slane %v8181_v1, %v7906_v47  ;;  %v2385_v7 = vrot.slane %v8232_v23, %v7955_v6 }
 0x5da   :  { %v2361_v22 = vsel %vm10699_vm10, %v2360_v43, %v2356_v31  ;;  %v2182_v31 = vrot.slane %v8331_v34, %v11172_v17  ;;  %v2424_v23 = vrot.slane %v8084_v32, %v11173_v2  ;;  %v2390_v34 = vrot.slane %v8261_v26, %v7983_v38 }
 0x5db   :  { %v2444_v32 = vrot.slane %v8341_v46, %v7875_v41  ;;  %v2454_v46 = vrot.slane %v8353_v33, %v7913_v51 }
 0x5dc   :  { %v8394_v0 = vpop.xlane.xlu1 %1569  ;;  %v1537_v20 = vpop.xlane.xlu0 %1536 }
 0x5dd   :  { %v2173_v25 = vrot.slane %v1537_v20, %v8116_v37  ;;  %v2365_v20 = vrot.slane %v8156_v30, %v7875_v41 }
 0x5df   :  { %v2174_v60 = vsel %vm10698_vm8, %v2173_v25, %v2169_v11  ;;  %v2366_v49 = vsel %vm1952_vm15, %v2365_v20, %v2361_v22  ;;  %v2429_v20 = vrot.slane %v8308_v56, %v7842_v55  ;;  %v2192_v56 = vrot.slane %v8337_v29, %v7842_v55 }
 0x5e0   :  { %v8409_v42 = vpop.xlane.xlu1 %1749  ;;  %v8414_v21 = vsel %vm10697_vm2, %v2174_v60, %v8314_v27  ;;  %v8416_v15 = vpop.xlane.xlu0 %1716  ;;  %v2371_v36 = vsel %vm1959_vm6, %v2370_v24, %v2366_v49  ;;  %v2380_v60 = vrot.slane %v8216_v44, %v7924_v5  ;;  %v2187_v44 = vrot.slane %v8333_v57, %v11173_v2 }
 0x5e1   :  { %v2376_v30 = vsel %vm1966_vm9, %v2375_v8, %v2371_v36  ;;  %v2434_v57 = vrot.slane %v8326_v58, %v11180_v50  ;;  %v2439_v8 = vrot.slane %v8335_v10, %v7864_v14  ;;  %v2395_v58 = vrot.slane %v8287_v18, %v8013_v19 }
 0x5e2   :  { %v2381_v62 = vsel %vm1973_vm14, %v2380_v60, %v2376_v30  ;;  %v2425_v60 = vsel %vm1924_vm12, %v2424_v23, %v2420_v35  ;;  %v2449_v10 = vrot.slane %v8347_v3, %v7906_v47  ;;  %vm10701_vm2 = vcmask 1043459  }
 0x5e3   :  { %v2386_v22 = vsel %vm10703_vm5, %v2385_v7, %v2381_v62  ;;  %v2430_v16 = vsel %vm1931_vm0, %v2429_v20, %v2425_v60  ;;  %vm10700_vm8 = vcmask 1044484  }
 0x5e4   :  { %v8422_v4 = vpop.xlane.xlu1 %1572  ;;  %v8424_v61 = vpop.xlane.xlu0 %1674  ;;  %v2391_v30 = vsel %vm10702_vm4, %v2390_v34, %v2386_v22  ;;  %v2435_v54 = vsel %vm1938_vm1, %v2434_v57, %v2430_v16  ;;  %v11208_v22 = vld [vmem:[#allocation59_spill] sm:$0xff]  ;;  %v11209_v34 = vld [vmem:[#allocation60_spill] sm:$0xff] }
 0x5e5   :  { %v2440_v18 = vsel %vm10699_vm10, %v2439_v8, %v2435_v54  ;;  %v2207_v20 = vrot.slane %v11208_v22, %v7875_v41  ;;  %v2503_v57 = vrot.slane %v11209_v34, %v11173_v2  ;;  %v11214_v54 = vld [vmem:[#allocation65_spill] sm:$0xff]  ;;  %v11284_v2 = vld [vmem:[#allocation43_spill] sm:$0xff] }
 0x5e6   :  { %v2445_v35 = vsel %vm1952_vm15, %v2444_v32, %v2440_v18 }
 0x5e7   :  { %v2450_v23 = vsel %vm1959_vm6, %v2449_v10, %v2445_v35  ;;  %v11213_v10 = vld [vmem:[#allocation64_spill] sm:$0xff]  ;;  %v2227_v35 = vrot.slane %v8394_v0, %v7955_v6 }
 0x5e8   :  { %v8429_v27 = vpop.xlane.xlu1 %1752  ;;  %v8432_v45 = vpop.xlane.xlu0 %1677 }
 0x5ec   :  { %v8437_v52 = vpop.xlane.xlu1 %1575  ;;  %v8441_v25 = vpop.xlane.xlu0 %1725 }
 0x5f0   :  { %v8446_v28 = vpop.xlane.xlu1 %1755  ;;  %v8448_v11 = vpop.xlane.xlu0 %1728 }
 0x5f4   :  { %v8455_v1 = vpop.xlane.xlu1 %1578  ;;  %v1540_v12 = vpop.xlane.xlu0 %1539 }
 0x5f5   :  { %v2178_v43 = vrot.slane %v1540_v12, %v11171_v53  ;;  %v2474_v12 = vrot.slane %v8305_v9, %v8013_v19 }
 0x5f7   :  { %v2183_v59 = vsel %vm1917_vm11, %v2182_v31, %v2178_v43  ;;  %v8502_v31 = vsel %vm1994_vm3, %v2395_v58, %v2391_v30  ;;  %v11207_v43 = vld [vmem:[#allocation58_spill] sm:$0xff] }
 0x5f8   :  { %v8472_v49 = vpop.xlane.xlu1 %1758  ;;  %v2188_v24 = vsel %vm1924_vm12, %v2187_v44, %v2183_v59  ;;  %v1552_v36 = vpop.xlane.xlu0 %1551  ;;  %v2498_v3 = vrot.slane %v11207_v43, %v11172_v17  ;;  %v2459_v59 = vrot.slane %v8366_v63, %v7924_v5  ;;  %v11211_v30 = vld [vmem:[#allocation62_spill] sm:$0xff]  ;;  %v11212_v63 = vld [vmem:[#allocation63_spill] sm:$0xff]  ;;  %v11285_v17 = vld [vmem:[#allocation9_spill] sm:$0xff] }
 0x5f9   :  { %v2197_v26 = vrot.slane %v1552_v36, %v11180_v50  ;;  %v2193_v62 = vsel %vm1931_vm0, %v2192_v56, %v2188_v24  ;;  %v11210_v24 = vld [vmem:[#allocation61_spill] sm:$0xff]  ;;  %v2455_v56 = vsel %vm1966_vm9, %v2454_v46, %v2450_v23  ;;  %v2508_v60 = vrot.slane %v11211_v30, %v7842_v55 }
 0x5fa   :  { %v2212_v36 = vrot.slane %v11210_v24, %v7906_v47  ;;  %v2217_v32 = vrot.slane %v11212_v63, %v7913_v51  ;;  %v2460_v43 = vsel %vm1973_vm14, %v2459_v59, %v2455_v56  ;;  %v2523_v59 = vrot.slane %v8409_v42, %v7875_v41 }
 0x5fb   :  { %v2198_v33 = vsel %vm1938_vm1, %v2197_v26, %v2193_v62  ;;  %v2513_v62 = vrot.slane %v11213_v10, %v11180_v50  ;;  %v2400_v42 = vrot.slane %v8424_v61, %v8039_v13  ;;  %v2533_v61 = vrot.slane %v8446_v28, %v7913_v51  ;;  %v11280_v50 = vld [vmem:[#allocation40_spill] sm:$0xff] }
 0x5fc   :  { %v1582_v29 = vpop.xlane.xlu1 %1581  ;;  %v1555_v7 = vpop.xlane.xlu0 %1554 }
 0x5fd   :  { %v2202_v44 = vrot.slane %v1555_v7, %v7864_v14  ;;  %v2222_v7 = vrot.slane %v11214_v54, %v7924_v5 }
 0x5ff   :  { %v2203_v8 = vsel %vm10699_vm10, %v2202_v44, %v2198_v33  ;;  %v2518_v44 = vrot.slane %v8383_v39, %v7864_v14  ;;  %v2232_v33 = vrot.slane %v8422_v4, %v7983_v38  ;;  %v2237_v39 = vrot.slane %v8437_v52, %v8013_v19 }
 0x600   :  { %v2208_v26 = vsel %vm1952_vm15, %v2207_v20, %v2203_v8  ;;  %v1762_v58 = vpop.xlane.xlu1 %1761  ;;  %v1732_v16 = vpop.xlane.xlu0 %1731  ;;  %v2464_v20 = vrot.slane %v8387_v48, %v7955_v6  ;;  %v2469_v48 = vrot.slane %v8416_v15, %v7983_v38  ;;  %v2242_v4 = vrot.slane %v8455_v1, %v8039_v13 }
 0x601   :  { %v2213_v18 = vsel %vm1959_vm6, %v2212_v36, %v2208_v26  ;;  %v2494_v46 = vrot.slane %v1732_v16, %v11171_v53  ;;  %v2247_v52 = vrot.slane %v1582_v29, %v8112_v40  ;;  %v2528_v15 = vrot.slane %v8429_v27, %v7906_v47 }
 0x602   :  { %v2218_v22 = vsel %vm1966_vm9, %v2217_v32, %v2213_v18  ;;  %v2405_v32 = vrot.slane %v8432_v45, %v8112_v40  ;;  %v2465_v10 = vsel %vm10703_vm5, %v2464_v20, %v2460_v43  ;;  %v2538_v27 = vrot.slane %v8472_v49, %v7924_v5  ;;  %v11216_v43 = vld [vmem:[#allocation41_spill] sm:$0xff] }
 0x603   :  { %v2223_v23 = vsel %vm1973_vm14, %v2222_v7, %v2218_v22  ;;  %v2499_v34 = vsel %vm1917_vm11, %v2498_v3, %v2494_v46  ;;  %v2470_v7 = vsel %vm10702_vm4, %v2469_v48, %v2465_v10  ;;  %v2543_v45 = vrot.slane %v1762_v58, %v7955_v6  ;;  %v11217_v22 = vld [vmem:[#allocation57_spill] sm:$0xff] }
 0x604   :  { %v2504_v0 = vsel %vm1924_vm12, %v2503_v57, %v2499_v34  ;;  %v2228_v24 = vsel %vm10703_vm5, %v2227_v35, %v2223_v23  ;;  %v1585_v36 = vpop.xlane.xlu0 %1584  ;;  %v1771_v56 = vpop.xlane.xlu1 %1770  ;;  %v2401_v46 = vsel %vm2001_vm7, %v2400_v42, %v8502_v31  ;;  %v2410_v20 = vrot.slane %v11217_v22, %v8116_v37 }
 0x605   :  { %v2509_v8 = vsel %vm1931_vm0, %v2508_v60, %v2504_v0  ;;  %v2233_v3 = vsel %vm10702_vm4, %v2232_v33, %v2228_v24  ;;  %v2252_v60 = vrot.slane %v1585_v36, %v8116_v37  ;;  %v2406_v58 = vsel %vm2008_vm13, %v2405_v32, %v2401_v46  ;;  %v11218_v0 = vld [vmem:[#allocation56_spill] sm:$0xff] }
 0x606   :  { %v2514_v57 = vsel %vm1938_vm1, %v2513_v62, %v2509_v8  ;;  %v2238_v30 = vsel %vm1994_vm3, %v2237_v39, %v2233_v3  ;;  %v2475_v31 = vsel %vm1994_vm3, %v2474_v12, %v2470_v7  ;;  %v2484_v34 = vrot.slane %v8441_v25, %v8112_v40  ;;  %v11226_v7 = vld [vmem:[#allocation42_spill] sm:$0xff] }
 0x607   :  { %v2519_v63 = vsel %vm10699_vm10, %v2518_v44, %v2514_v57  ;;  %v2243_v1 = vsel %vm2001_vm7, %v2242_v4, %v2238_v30  ;;  %vm11215_vm10 = vcmask 1048512   ;;  %v2479_v24 = vrot.slane %v11218_v0, %v8039_v13 }
 0x608   :  { %v2248_v29 = vsel %vm2008_vm13, %v2247_v52, %v2243_v1  ;;  %v2524_v26 = vsel %vm1952_vm15, %v2523_v59, %v2519_v63  ;;  %v1765_v16 = vpop.xlane.xlu0 %1764  ;;  %v1774_v33 = vpop.xlane.xlu1 %1773  ;;  %v2489_v36 = vrot.slane %v8448_v11, %v8116_v37  ;;  %v2558_v48 = vrot.slane %v1771_v56, %v8039_v13 }
 0x609   :  { %v2253_v62 = vsel %vm11215_vm10, %v2252_v60, %v2248_v29  ;;  %v2529_v54 = vsel %vm1959_vm6, %v2528_v15, %v2524_v26  ;;  %v2548_v35 = vrot.slane %v1765_v16, %v7983_v38  ;;  %vm10706_vm10 = vcmask 1045509  }
 0x60a   :  { %v2575_v28 = vsel %vm10701_vm2, %v2253_v62, %v8414_v21  ;;  %v2534_v18 = vsel %vm1966_vm9, %v2533_v61, %v2529_v54  ;;  %v2563_v9 = vrot.slane %v1774_v33, %v8112_v40  ;;  %v2480_v25 = vsel %vm2001_vm7, %v2479_v24, %v2475_v31 }
 0x60b   :  { %v2577_v44 = vsel %vm10700_vm8, %v11216_v43, %v2575_v28  ;;  %v2539_v49 = vsel %vm1973_vm14, %v2538_v27, %v2534_v18  ;;  %vm11219_vm8 = vcmask 1048512   ;;  %vm10705_vm2 = vcmask 1046534   ;;  %v11230_v28 = vld [vmem:[#allocation53_spill] sm:$0xff]  ;;  %v11232_v18 = vld [vmem:[#allocation54_spill] sm:$0xff] }
 0x60c   :  { %v2544_v21 = vsel %vm10703_vm5, %v2543_v45, %v2539_v49  ;;  %v1768_v23 = vpop.xlane.xlu0 %1767  ;;  %v2411_v4 = vsel %vm11219_vm8, %v2410_v20, %v2406_v58  ;;  %v2485_v52 = vsel %vm2008_vm13, %v2484_v34, %v2480_v25  ;;  %vm11220_vm5 = vmmov %vm11219_vm8  ;;  %v11221_v1 = vmov 0.0   ;;  %v2738_v10 = vpop.permute.xlu1 %2737  ;;  %v11228_v45 = vld [vmem:[#allocation55_spill] sm:$0xff] }
 0x60d   :  { %v2549_v59 = vsel %vm10702_vm4, %v2548_v35, %v2544_v21  ;;  %v2553_v39 = vrot.slane %v1768_v23, %v8013_v19  ;;  %v2579_v42 = vsel %vm10706_vm10, %v2411_v4, %v2577_v44  ;;  %vm10704_vm4 = vcmask 1047559   ;;  %v11272_v19 = vld [vmem:[#allocation39_spill] sm:$0xff] }
 0x60e   :  { %v2490_v56 = vsel %vm11219_vm8, %v2489_v36, %v2485_v52 }
 0x60f   :  { %v2554_v12 = vsel %vm1994_vm3, %v2553_v39, %v2549_v59  ;;  %v2581_v15 = vsel %vm10705_vm2, %v2490_v56, %v2579_v42 }
 0x610   :  { %v2559_v8 = vsel %vm2001_vm7, %v2558_v48, %v2554_v12  ;;  %v1777_v3 = vpop.xlane.xlu0 %1776  ;;  %v2742_v62 = vpop.permute.xlu1 %2741 }
 0x611   :  { %v2564_v11 = vsel %vm2008_vm13, %v2563_v9, %v2559_v8  ;;  %v2568_v57 = vrot.slane %v1777_v3, %v8116_v37 }
 0x613   :  { %v2569_v30 = vsel %vm11220_vm5, %v2568_v57, %v2564_v11  ;;  %vm11222_vm5 = vcmask 64512  }
 0x614   :  { %v2583_v63 = vsel %vm10704_vm4, %v2569_v30, %v2581_v15  ;;  %v2740_v27 = vpop.permute.xlu0 %2739  ;;  %vm11223_vm8 = vmmov %vm11222_vm5  ;;  %v2744_v54 = vpop.permute.xlu1 %2743 }
 0x615   :  { %2650 = vmatmul.mubr.f32.vlgmr.msra.gmra.mrb[10].mxu1 %v2583_v63  ;;  %2721 = vmatmul.mubr.f32.vlgmr.msra.gmra.mrb[18].mxu0 %v2583_v63  ;;  %vm11224_vm4 = vmmov %vm11222_vm5  ;;  %v2979_v63 = vld [vmem:[%s10496_s13] sm:$0xff] }
 0x616   :  { %2817 = vmatprep.mubr.f32.mxu1 %v11221_v1  ;;  %3083 = vmatprep.mubr.f32.mxu0 %v11221_v1  ;;  %vm11225_vm2 = vmmov %vm11224_vm4 }
 0x617   :  { %vm11229_vm10 = vmmov %vm11225_vm2 }
 0x618   :  { %v2951_v35 = vpop.permute.xlu1 %2950 }
 0x61c   :  { %v2946_v44 = vpop.permute.xlu0 %2945  ;;  %v2961_v9 = vpop.permute.xlu1 %2960 }
 0x620   :  { %v2956_v36 = vpop.permute.xlu0 %2955 }
 0x6e8   :  { %v2651_v60 = vpop.f32.mrb[10].mxu1  ;;  %v2722_v32 = vpop.f32.mrb[18].mxu0 }
 0x6e9   :  { %v2731_v61 = vsub.f32 %v2722_v32, %v2651_v60  ;;  %v2653_v29 = vpop.f32.mrb[11].mxu1  ;;  %v2724_v26 = vpop.f32.mrb[19].mxu0  ;;  %v2981_v32 = vld [vmem:[%s10496_s13 + $0x10] sm:$0xff] }
 0x6ea   :  { %v2732_v16 = vsub.f32 %v2724_v26, %v2653_v29 }
 0x6ec   :  { %2753 = vmatprep.subr.mxu1 %v2732_v16  ;;  %v2990_v16 = vpop.permute.xlu0 %2989 }
 0x6ed   :  { %2754 = vmatpush1.msra.mxu1 %v2731_v61  ;;  %v2982_v61 = vld [vmem:[%s10496_s13 + $0x18] sm:$0xff] }
 0x6ee   :  { %5636 = vmatmul.mubr.msk.f32.vlgmr.msra.gmra.mrb[12].mxu1 %vm11222_vm5, %v2738_v10  ;;  %2850 = vmatprep.subr.mxu1 %v2653_v29  ;;  %vm11227_vm5 = vmmov %vm11225_vm2 }
 0x6ef   :  { %2851 = vmatpush1.msra.mxu1 %v2651_v60  ;;  %2823 = vmatprep.mubr.f32.mxu1 %v11221_v1  ;;  %v2980_v60 = vld [vmem:[%s10496_s13 + $0x8] sm:$0xff]  ;;  %s6103_s13 = scalar_lea.vmem %s5422_s6, 32 }
 0x6f0   :  { %p6105_p2 = scmp.lt.s32.totalorder %s6103_s13, %s6099_s30 }
 0x6f2   :  { %5637 = vmatmul.mubr.msk.f32.gmra.mrb[14].mxu1 %vm11223_vm8, %v2740_v27  ;;  %vm11231_vm8 = vmmov %vm11225_vm2  ;;  %v2995_v27 = vpop.permute.xlu1 %2994  ;;  %p6106_p3 = por %p6105_p2, %p6104_p1 }
 0x6f3   :  { %2829 = vmatprep.mubr.f32.mxu1 %v11221_v1 }
 0x6f4   :  { %p6107_p4 = pnand %p6106_p3, %p6100_p0 }
 0x6f6   :  { %5638 = vmatmul.mubr.msk.f32.gmra.mrb[16].mxu1 %vm11224_vm4, %v2742_v62  ;;  %vm11233_vm4 = vmmov %vm11225_vm2 }
 0x6f7   :  { %2835 = vmatprep.mubr.f32.mxu1 %v11221_v1 }
 0x6fa   :  { %5639 = vmatmul.mubr.msk.f32.gmra.mrb[18].mxu1 %vm11225_vm2, %v2744_v54  ;;  %vm11234_vm2 = vcmask 261120  }
 0x6fb   :  { %2914 = vmatprep.mubr.f32.mxu1 %v11221_v1 }
 0x6fe   :  { %5640 = vmatmul.mubr.msk.f32.vlgmr.msra.gmra.mrb[12].mxu1 %vm11227_vm5, %v11226_v7  ;;  %vm11236_vm5 = vmmov %vm11234_vm2 }
 0x6ff   :  { %2920 = vmatprep.mubr.f32.mxu1 %v11221_v1 }
 0x702   :  { %5641 = vmatmul.mubr.msk.f32.gmra.mrb[14].mxu1 %vm11229_vm10, %v11228_v45  ;;  %vm11235_vm10 = vmmov %vm11234_vm2 }
 0x703   :  { %2926 = vmatprep.mubr.f32.mxu1 %v11221_v1 }
 0x706   :  { %5642 = vmatmul.mubr.msk.f32.gmra.mrb[16].mxu1 %vm11231_vm8, %v11230_v28  ;;  %vm11237_vm8 = vmmov %vm11234_vm2 }
 0x707   :  { %2932 = vmatprep.mubr.f32.mxu1 %v11221_v1 }
 0x70a   :  { %5643 = vmatmul.mubr.msk.f32.gmra.mrb[18].mxu1 %vm11233_vm4, %v11232_v18  ;;  %vm11238_vm4 = vmmov %vm11234_vm2 }
 0x7d1   :  { %v2916_v46 = vpop.f32.mrb[12].mxu1 }
 0x7d2   :  { %v2918_v43 = vpop.f32.mrb[13].mxu1  ;;  %v2963_v49 = vadd.f32 %v2946_v44, %v2916_v46 }
 0x7d3   :  { %v2964_v22 = vadd.f32 %v2946_v44, %v2918_v43 }
 0x7d4   :  { %v2971_v23 = vmax.f32 %v2963_v49, 0.0 }
 0x7d5   :  { %v2922_v20 = vpop.f32.mrb[14].mxu1  ;;  %v2972_v34 = vmax.f32 %v2964_v22, 0.0 }
 0x7d6   :  { %v2965_v58 = vadd.f32 %v2951_v35, %v2922_v20  ;;  %v2924_v33 = vpop.f32.mrb[15].mxu1  ;;  %v3000_v20 = vpop.permute.xlu0 %2999 }
 0x7d7   :  { %v2966_v21 = vadd.f32 %v2951_v35, %v2924_v33 }
 0x7d8   :  { %v2973_v31 = vmax.f32 %v2965_v58, 0.0 }
 0x7d9   :  { %v2974_v59 = vmax.f32 %v2966_v21, 0.0  ;;  %v2928_v39 = vpop.f32.mrb[16].mxu1  ;;  %v3005_v21 = vpop.permute.xlu1 %3004 }
 0x7da   :  { %v6001_v0 = vpack.c.bf16 %v2973_v31, %v2971_v23  ;;  %v2930_v24 = vpop.f32.mrb[17].mxu1  ;;  %v2967_v4 = vadd.f32 %v2956_v36, %v2928_v39 }
 0x7db   :  { %v5999_v48 = vpack.c.bf16 %v2974_v59, %v2972_v34  ;;  %v2968_v12 = vadd.f32 %v2956_v36, %v2930_v24 }
 0x7dc   :  { %v2975_v52 = vmax.f32 %v2967_v4, 0.0 }
 0x7dd   :  { %v2934_v25 = vpop.f32.mrb[18].mxu1  ;;  %6000 = vmatprep.subr.bf16.mxu0 %v5999_v48  ;;  %v2976_v57 = vmax.f32 %v2968_v12, 0.0  ;;  %v3116_v12 = vld [vmem:[%s10498_s15] sm:$0xff] }
 0x7de   :  { %v2969_v8 = vadd.f32 %v2961_v9, %v2934_v25  ;;  %v2936_v3 = vpop.f32.mrb[19].mxu1  ;;  %6002 = vmatpush1.bf16.msra.mxu0 %v6001_v0  ;;  %v3121_v25 = vpop.permute.xlu0 %3120 }
 0x7df   :  { %v2970_v42 = vadd.f32 %v2961_v9, %v2936_v3 }
 0x7e0   :  { %v2977_v11 = vmax.f32 %v2969_v8, 0.0 }
 0x7e1   :  { %v2978_v56 = vmax.f32 %v2970_v42, 0.0 }
 0x7e2   :  { %v6005_v30 = vpack.c.bf16 %v2977_v11, %v2975_v52 }
 0x7e3   :  { %v6003_v15 = vpack.c.bf16 %v2978_v56, %v2976_v57 }
 0x7e5   :  { %6004 = vmatprep.subr.bf16.mxu0 %v6003_v15  ;;  %v11239_v15 = vld [vmem:[#allocation12_spill] sm:$0xff] }
 0x7e6   :  { %6006 = vmatpush1.bf16.msra.mxu0 %v6005_v30 }
 0x7e9   :  { %5644 = vmatmul.mubr.msk.f32.vlgmr.msra.gmra.mrb[20].mxu0 %vm11234_vm2, %v2979_v63  ;;  %vm11476_vm2 = vcmask 392512  }
 0x7ea   :  { %3089 = vmatprep.mubr.f32.mxu0 %v11221_v1 }
 0x7ed   :  { %5645 = vmatmul.mubr.msk.f32.gmra.mrb[22].mxu0 %vm11235_vm10, %v2980_v60  ;;  %vm11496_vm10 = vmmov %vm11476_vm2 }
 0x7ee   :  { %3095 = vmatprep.mubr.f32.mxu0 %v11221_v1 }
 0x7f1   :  { %5646 = vmatmul.mubr.msk.f32.gmra.mrb[24].mxu0 %vm11236_vm5, %v2981_v32  ;;  %vm11501_vm5 = vcmask 720512  }
 0x7f2   :  { %3101 = vmatprep.mubr.f32.mxu0 %v11221_v1 }
 0x7f5   :  { %5647 = vmatmul.mubr.msk.f32.gmra.mrb[26].mxu0 %vm11237_vm8, %v2982_v61  ;;  %v11240_v61 = vld [vmem:[#allocation8_spill] sm:$0xff]  ;;  %vm11509_vm8 = vcmask 786112  }
 0x7f6   :  { %3190 = vmatprep.mubr.f32.mxu0 %v11221_v1 }
 0x8bc   :  { %v3085_v29 = vpop.f32.mrb[20].mxu0 }
 0x8bd   :  { %v3087_v26 = vpop.f32.mrb[21].mxu0  ;;  %v3086_v10 = vadd.f32 %v3085_v29, %v2990_v16 }
 0x8be   :  { %v3088_v62 = vadd.f32 %v3087_v26, %v2990_v16  ;;  %v11241_v26 = vld [vmem:[#allocation7_spill] sm:$0xff] }
 0x8bf   :  { %v3108_v18 = vmax.f32 %v3086_v10, 0.0 }
 0x8c0   :  { %v3091_v54 = vpop.f32.mrb[22].mxu0  ;;  %v3109_v43 = vmax.f32 %v3088_v62, 0.0 }
 0x8c1   :  { %v3092_v7 = vadd.f32 %v3091_v54, %v2995_v27  ;;  %v3093_v45 = vpop.f32.mrb[23].mxu0  ;;  %v11243_v54 = vld [vmem:[#allocation13_spill] sm:$0xff] }
 0x8c2   :  { %v3094_v28 = vadd.f32 %v3093_v45, %v2995_v27  ;;  %v11242_v27 = vld [vmem:[#allocation14_spill] sm:$0xff]  ;;  %v11244_v45 = vld [vmem:[#allocation16_spill] sm:$0xff] }
 0x8c3   :  { %v3110_v46 = vmax.f32 %v3092_v7, 0.0 }
 0x8c4   :  { %v3111_v44 = vmax.f32 %v3094_v28, 0.0  ;;  %v3097_v49 = vpop.f32.mrb[24].mxu0 }
 0x8c5   :  { %v6009_v35 = vpack.c.bf16 %v3110_v46, %v3108_v18  ;;  %v3099_v22 = vpop.f32.mrb[25].mxu0  ;;  %v3098_v33 = vadd.f32 %v3097_v49, %v3000_v20  ;;  %v11245_v18 = vld [vmem:[#allocation15_spill] sm:$0xff]  ;;  %v11246_v49 = vld [vmem:[#allocation18_spill] sm:$0xff] }
 0x8c6   :  { %v6007_v58 = vpack.c.bf16 %v3111_v44, %v3109_v43  ;;  %v3100_v23 = vadd.f32 %v3099_v22, %v3000_v20  ;;  %v11247_v22 = vld [vmem:[#allocation17_spill] sm:$0xff] }
 0x8c7   :  { %v3112_v0 = vmax.f32 %v3098_v33, 0.0 }
 0x8c8   :  { %v3103_v31 = vpop.f32.mrb[26].mxu0  ;;  %6008 = vmatprep.subr.bf16.mxu0 %v6007_v58  ;;  %v3113_v36 = vmax.f32 %v3100_v23, 0.0 }
 0x8c9   :  { %v3104_v34 = vadd.f32 %v3103_v31, %v3005_v21  ;;  %v3105_v59 = vpop.f32.mrb[27].mxu0  ;;  %6010 = vmatpush1.bf16.msra.mxu0 %v6009_v35  ;;  %v11249_v31 = vld [vmem:[#allocation19_spill] sm:$0xff] }
 0x8ca   :  { %v3106_v39 = vadd.f32 %v3105_v59, %v3005_v21  ;;  %v11248_v21 = vld [vmem:[#allocation20_spill] sm:$0xff] }
 0x8cb   :  { %v3114_v24 = vmax.f32 %v3104_v34, 0.0 }
 0x8cc   :  { %v3115_v48 = vmax.f32 %v3106_v39, 0.0  ;;  %v11250_v39 = vld [vmem:[#allocation22_spill] sm:$0xff] }
 0x8cd   :  { %v6013_v4 = vpack.c.bf16 %v3114_v24, %v3112_v0  ;;  %v11251_v24 = vld [vmem:[#allocation21_spill] sm:$0xff] }
 0x8ce   :  { %v6011_v9 = vpack.c.bf16 %v3115_v48, %v3113_v36 }
 0x8d0   :  { %6012 = vmatprep.subr.bf16.mxu0 %v6011_v9 }
 0x8d1   :  { %6014 = vmatpush1.bf16.msra.mxu0 %v6013_v4 }
 0x8d4   :  { %5648 = vmatmul.mubr.msk.f32.vlgmr.msra.gmra.mrb[28].mxu0 %vm11238_vm4, %v3116_v12  ;;  %vm11543_vm4 = vmmov %vm11501_vm5 }
 0x9a7   :  { %v3192_v8 = vpop.f32.mrb[28].mxu0 }
 0x9a8   :  { %v3193_v3 = vadd.f32 %v3192_v8, %v3121_v25  ;;  %v3194_v42 = vpop.f32.mrb[29].mxu0 }
 0x9a9   :  { %v3195_v52 = vadd.f32 %v3194_v42, %v3121_v25  ;;  %v11252_v42 = vld [vmem:[#allocation24_spill] sm:$0xff] }
 0x9aa   :  { %v3197_v11 = vmax.f32 %v3193_v3, 0.0 }
 0x9ab   :  { %v3198_v57 = vmax.f32 %v3195_v52, 0.0 }
 0x9ad   :  { %v3201_v56 = vcombine.low %v3197_v11, %v3198_v57  ;;  %v3202_v30 = vcombine.high %v3197_v11, %v3198_v57  ;;  %v11253_v11 = vld [vmem:[#allocation23_spill] sm:$0xff] }
 0x9af   :  { %v3209_v63 = vrot.slane %v3201_v56, %v11239_v15  ;;  %v3216_v32 = vrot.slane %v3202_v30, %v11239_v15  ;;  %v11254_v30 = vld [vmem:[#allocation26_spill] sm:$0xff] }
 0x9b1   :  { %v3225_v60 = vrot.slane %v3209_v63, %v11239_v15  ;;  %v3232_v10 = vrot.slane %v3216_v32, %v11239_v15 }
 0x9b3   :  { %v8667_v29 = vrot.slane %v3225_v60, %v11240_v61  ;;  %v8670_v16 = vrot.slane %v3225_v60, %v11241_v26  ;;  %v8682_v43 = vrot.slane %v3232_v10, %v11240_v61  ;;  %v8689_v58 = vrot.slane %v3232_v10, %v11241_v26 }
 0x9b5   :  { %v3333_v62 = vmul.f32 %v11242_v27, %v8667_v29  ;;  %v3334_v7 = vmul.f32 %v11243_v54, %v8670_v16  ;;  %v3331_v28 = vmul.f32 %v11244_v45, %v8667_v29  ;;  %v3332_v46 = vmul.f32 %v11245_v18, %v8670_v16 }
 0x9b6   :  { %v3335_v35 = vmul.f32 %v11246_v49, %v8667_v29  ;;  %v3336_v20 = vmul.f32 %v11247_v22, %v8670_v16  ;;  %v3339_v23 = vmul.f32 %v11248_v21, %v8667_v29  ;;  %v3340_v34 = vmul.f32 %v11249_v31, %v8670_v16 }
 0x9b7   :  { %v3590_v44 = vmax.f32 %v3333_v62, %v3334_v7  ;;  %v3587_v33 = vmax.f32 %v3331_v28, %v3332_v46  ;;  %v3337_v0 = vmul.f32 %v11250_v39, %v8667_v29  ;;  %v3338_v36 = vmul.f32 %v11251_v24, %v8670_v16  ;;  %v11255_v7 = vld [vmem:[#allocation25_spill] sm:$0xff] }
 0x9b8   :  { %v3593_v59 = vmax.f32 %v3335_v35, %v3336_v20  ;;  %v3599_v48 = vmax.f32 %v3339_v23, %v3340_v34  ;;  %v3459_v4 = vmul.f32 %v11244_v45, %v8682_v43  ;;  %v3460_v9 = vmul.f32 %v11245_v18, %v8689_v58 }
 0x9b9   :  { %3591 = vmax.xlane.f32.xlu0 %v3590_v44  ;;  %3588 = vmax.xlane.f32.xlu1 %v3587_v33  ;;  %v3596_v12 = vmax.f32 %v3337_v0, %v3338_v36  ;;  %v3461_v25 = vmul.f32 %v11242_v27, %v8682_v43  ;;  %v3462_v8 = vmul.f32 %v11243_v54, %v8689_v58  ;;  %v11256_v0 = vld [vmem:[#allocation28_spill] sm:$0xff] }
 0x9ba   :  { %v3779_v3 = vmax.f32 %v3459_v4, %v3460_v9  ;;  %v3341_v52 = vmul.f32 %v11252_v42, %v8667_v29  ;;  %v3342_v57 = vmul.f32 %v11253_v11, %v8670_v16  ;;  %v3343_v62 = vmul.f32 %v11254_v30, %v8667_v29 }
 0x9bb   :  { %v3782_v56 = vmax.f32 %v3461_v25, %v3462_v8  ;;  %v3344_v28 = vmul.f32 %v11255_v7, %v8670_v16  ;;  %v3463_v44 = vmul.f32 %v11246_v49, %v8682_v43  ;;  %v3464_v35 = vmul.f32 %v11247_v22, %v8689_v58  ;;  %v11259_v25 = vld [vmem:[#allocation30_spill] sm:$0xff] }
 0x9bc   :  { %v3602_v46 = vmax.f32 %v3341_v52, %v3342_v57  ;;  %v3217_v20 = vcombine.high %v3209_v63, %v3209_v63  ;;  %v3465_v23 = vmul.f32 %v11250_v39, %v8682_v43  ;;  %v3466_v34 = vmul.f32 %v11251_v24, %v8689_v58 }
 0x9bd   :  { %3594 = vmax.xlane.f32.xlu0 %v3593_v59  ;;  %3600 = vmax.xlane.f32.xlu1 %v3599_v48  ;;  %v3605_v33 = vmax.f32 %v3343_v62, %v3344_v28  ;;  %v3785_v59 = vmax.f32 %v3463_v44, %v3464_v35  ;;  %v3347_v36 = vmul.f32 %v11256_v0, %v8667_v29  ;;  %v11257_v48 = vld [vmem:[#allocation27_spill] sm:$0xff] }
 0x9be   :  { %v3348_v4 = vmul.f32 %v11257_v48, %v8670_v16  ;;  %v3218_v9 = vcombine.high %v3216_v32, %v3216_v32  ;;  %v3788_v63 = vmax.f32 %v3465_v23, %v3466_v34  ;;  %v3345_v8 = vmul.f32 %v11259_v25, %v8667_v29  ;;  %v11266_v34 = vld [vmem:[#allocation32_spill] sm:$0xff] }
 0x9bf   :  { %v3470_v62 = vmul.f32 %v11253_v11, %v8689_v58  ;;  %v3247_v28 = vcombine.high %v3225_v60, %v3225_v60  ;;  %v3467_v35 = vmul.f32 %v11248_v21, %v8682_v43  ;;  %v8782_v38 = vmul.f32 %v11272_v19, %v8667_v29 }
 0x9c0   :  { %v3611_v57 = vmax.f32 %v3347_v36, %v3348_v4  ;;  %v8739_v32 = vrot.slane %v3218_v9, %v11239_v15  ;;  %v11267_v36 = vld [vmem:[#allocation31_spill] sm:$0xff]  ;;  %v11268_v9 = vld [vmem:[#allocation34_spill] sm:$0xff]  ;;  %v3471_v41 = vmul.f32 %v11254_v30, %v8682_v43  ;;  %v3489_v5 = vmul.f32 %v11272_v19, %v8682_v43 }
 0x9c1   :  { %3597 = vmax.xlane.f32.xlu0 %v3596_v12  ;;  %3780 = vmax.xlane.f32.xlu1 %v3779_v3  ;;  %v8728_v12 = vrot.slane %v3217_v20, %v11239_v15  ;;  %v11260_v3 = vld [vmem:[#allocation29_spill] sm:$0xff]  ;;  %v3468_v20 = vmul.f32 %v11249_v31, %v8689_v58  ;;  %v11264_v15 = vld [vmem:[#allocation35_spill] sm:$0xff]  ;;  %v3350_v4 = vmul.f32 %v11267_v36, %v8670_v16 }
 0x9c2   :  { %v3346_v52 = vmul.f32 %v11260_v3, %v8670_v16  ;;  %11261 = vst [vmem:[#allocation67_spill] sm:$0xff] %v8739_v32  ;;  %v8755_v60 = vmul.f32 %v11264_v15, %v8670_v16  ;;  %v8776_v40 = vrot.slane %v3247_v28, %v11240_v61  ;;  %11273 = vst [vmem:[#allocation72_spill] sm:$0xff] %v8782_v38 }
 0x9c3   :  { %11258 = vst [vmem:[#allocation66_spill] sm:$0xff] %v8728_v12  ;;  %v8743_v44 = vrot.slane %v8728_v12, %v11240_v61  ;;  %v3791_v37 = vmax.f32 %v3467_v35, %v3468_v20  ;;  %v3488_v6 = vmul.f32 %v11264_v15, %v8689_v58  ;;  %v3472_v20 = vmul.f32 %v11255_v7, %v8689_v58 }
 0x9c4   :  { %11265 = vst [vmem:[#allocation69_spill] sm:$0xff] %v8755_v60  ;;  %v8810_v55 = vmul.f32 %v11280_v50, %v8682_v43  ;;  %v3351_v53 = vmul.f32 %v11284_v2, %v8667_v29  ;;  %v8825_v54 = vrot.slane %v3247_v28, %v11241_v26  ;;  %v8829_v27 = vrot.slane %v8739_v32, %v11240_v61 }
 0x9c5   :  { %3783 = vmax.xlane.f32.xlu0 %v3782_v56  ;;  %3603 = vmax.xlane.f32.xlu1 %v3602_v46  ;;  %v3469_v56 = vmul.f32 %v11252_v42, %v8682_v43  ;;  %v3248_v46 = vcombine.high %v3232_v10, %v3232_v10  ;;  %v3608_v10 = vmax.f32 %v3345_v8, %v3346_v52  ;;  %v11270_v8 = vld [vmem:[#allocation33_spill] sm:$0xff] }
 0x9c6   :  { %v8773_v52 = vmul.f32 %v11270_v8, %v8689_v58  ;;  %11281 = vst [vmem:[#allocation76_spill] sm:$0xff] %v8810_v55  ;;  %v3474_v60 = vmul.f32 %v11260_v3, %v8689_v58  ;;  %v3363_v38 = vmul.f32 %v11244_v45, %v8743_v44  ;;  %v3353_v55 = vmul.f32 %v11268_v9, %v8667_v29 }
 0x9c7   :  { %v3794_v1 = vmax.f32 %v3469_v56, %v3470_v62  ;;  %v11274_v56 = vld [vmem:[#allocation11_spill] sm:$0xff] }
 0x9c8   :  { %11271 = vst [vmem:[#allocation71_spill] sm:$0xff] %v8773_v52  ;;  %v8786_v62 = vmul.f32 %v11274_v56, %v8670_v16  ;;  %v3490_v14 = vmul.f32 %v11274_v56, %v8689_v58 }
 0x9c9   :  { %3606 = vmax.xlane.f32.xlu0 %v3605_v33  ;;  %3786 = vmax.xlane.f32.xlu1 %v3785_v59  ;;  %v11262_v33 = vld [vmem:[#allocation36_spill] sm:$0xff]  ;;  %v3349_v59 = vmul.f32 %v11266_v34, %v8667_v29 }
 0x9ca   :  { %v8751_v23 = vmul.f32 %v11262_v33, %v8667_v29  ;;  %v3487_v13 = vmul.f32 %v11262_v33, %v8682_v43  ;;  %11275 = vst [vmem:[#allocation73_spill] sm:$0xff] %v8786_v62  ;;  %v3352_v62 = vmul.f32 %v11285_v17, %v8670_v16  ;;  %v3824_v52 = vmax.f32 %v3489_v5, %v3490_v14 }
 0x9cb   :  { %v3614_v47 = vmax.f32 %v3349_v59, %v3350_v4  ;;  %v11282_v59 = vld [vmem:[#allocation10_spill] sm:$0xff]  ;;  %v8865_v14 = vmul.f32 %v11257_v48, %v8689_v58 }
 0x9cc   :  { %11263 = vst [vmem:[#allocation68_spill] sm:$0xff] %v8751_v23  ;;  %v8814_v4 = vmul.f32 %v11282_v59, %v8689_v58  ;;  %v3395_v23 = vmul.f32 %v11244_v45, %v8776_v40 }
 0x9cd   :  { %3789 = vmax.xlane.f32.xlu0 %v3788_v63  ;;  %3612 = vmax.xlane.f32.xlu1 %v3611_v57  ;;  %v8763_v63 = vmul.f32 %v11268_v9, %v8682_v43  ;;  %v8767_v57 = vrot.slane %v8728_v12, %v11241_v26  ;;  %v8911_v12 = vmul.f32 %v11267_v36, %v8689_v58 }
 0x9ce   :  { %11283 = vst [vmem:[#allocation77_spill] sm:$0xff] %v8814_v4  ;;  %v3617_v4 = vmax.f32 %v3351_v53, %v3352_v62  ;;  %v3399_v53 = vmul.f32 %v11246_v49, %v8776_v40  ;;  %v3400_v62 = vmul.f32 %v11247_v22, %v8825_v54 }
 0x9cf   :  { %11269 = vst [vmem:[#allocation70_spill] sm:$0xff] %v8763_v63  ;;  %v3473_v63 = vmul.f32 %v11259_v25, %v8682_v43  ;;  %v3364_v28 = vmul.f32 %v11245_v18, %v8767_v57 }
 0x9d1   :  { %3609 = vmax.xlane.f32.xlu0 %v3608_v10  ;;  %3795 = vmax.xlane.f32.xlu1 %v3794_v1  ;;  %v11276_v10 = vld [vmem:[#allocation38_spill] sm:$0xff]  ;;  %v11278_v1 = vld [vmem:[#allocation37_spill] sm:$0xff]  ;;  %v3635_v5 = vmax.f32 %v3363_v38, %v3364_v28  ;;  %v8885_v38 = vmul.f32 %v11268_v9, %v8743_v44  ;;  %v8897_v28 = vmul.f32 %v11248_v21, %v8776_v40 }
 0x9d2   :  { %v8794_v51 = vmul.f32 %v11276_v10, %v8682_v43  ;;  %v8802_v35 = vmul.f32 %v11278_v1, %v8689_v58 }
 0x9d3   :  { %11286 = vst [vmem:[#allocation78_spill] sm:$0xff] %v8897_v28 }
 0x9d4   :  { %11277 = vst [vmem:[#allocation74_spill] sm:$0xff] %v8794_v51  ;;  %11279 = vst [vmem:[#allocation75_spill] sm:$0xff] %v8802_v35  ;;  %v8843_v35 = vrot.slane %v8739_v32, %v11241_v26  ;;  %v3354_v51 = vmul.f32 %v11270_v8, %v8670_v16  ;;  %v8907_v32 = vmul.f32 %v11266_v34, %v8682_v43 }
 0x9d5   :  { %3792 = vmax.xlane.f32.xlu0 %v3791_v37  ;;  %3615 = vmax.xlane.f32.xlu1 %v3614_v47  ;;  %v3821_v37 = vmax.f32 %v3487_v13, %v3488_v6  ;;  %v8846_v47 = vrot.slane %v3248_v46, %v11240_v61  ;;  %v8849_v6 = vrot.slane %v3248_v46, %v11241_v26 }
 0x9d6   :  { %v3797_v13 = vmax.f32 %v3471_v41, %v3472_v20  ;;  %v3396_v61 = vmul.f32 %v11245_v18, %v8825_v54  ;;  %v8861_v46 = vmul.f32 %v11256_v0, %v8682_v43  ;;  %v3800_v41 = vmax.f32 %v3473_v63, %v3474_v60 }
 0x9d7   :  { %v8873_v20 = vmul.f32 %v11276_v10, %v8667_v29  ;;  %v8889_v60 = vmul.f32 %v11249_v31, %v8767_v57  ;;  %v8893_v63 = vmul.f32 %v11270_v8, %v8767_v57  ;;  %v8901_v26 = vmul.f32 %v11249_v31, %v8825_v54 }
 0x9d8   :  { %v3620_v22 = vmax.f32 %v3353_v55, %v3354_v51  ;;  %v3683_v49 = vmax.f32 %v3395_v23, %v3396_v61  ;;  %v8919_v55 = vmul.f32 %v11276_v10, %v8743_v44  ;;  %v3689_v51 = vmax.f32 %v3399_v53, %v3400_v62 }
 0x9d9   :  { %3822 = vmax.xlane.f32.xlu0 %v3821_v37  ;;  %3798 = vmax.xlane.f32.xlu1 %v3797_v13  ;;  %v8877_v37 = vmul.f32 %v11278_v1, %v8670_v16  ;;  %v8881_v13 = vmul.f32 %v11248_v21, %v8743_v44  ;;  %11287 = vst [vmem:[#allocation79_spill] sm:$0xff] %v8901_v26  ;;  %v11374_v26 = vld [vmem:[#allocation73_spill] sm:$0xff] }
 0x9da   :  { %11288 = vst [vmem:[#allocation80_spill] sm:$0xff] %v8919_v55  ;;  %v8923_v61 = vmul.f32 %v11278_v1, %v8767_v57  ;;  %v8927_v23 = vmul.f32 %v11254_v30, %v8743_v44  ;;  %v8939_v53 = vmul.f32 %v11252_v42, %v8743_v44  ;;  %v8943_v62 = vmul.f32 %v11253_v11, %v8767_v57 }
 0x9db   :  { %v8947_v31 = vmul.f32 %v11280_v50, %v8667_v29  ;;  %v8965_v29 = vmul.f32 %v11244_v45, %v8829_v27  ;;  %v8985_v21 = vmul.f32 %v11259_v25, %v8743_v44  ;;  %v9021_v55 = vmul.f32 %v11285_v17, %v8843_v35 }
 0x9dc   :  { %11289 = vst [vmem:[#allocation58_spill] sm:$0xff] %v8923_v61  ;;  %11290 = vst [vmem:[#allocation59_spill] sm:$0xff] %v8927_v23  ;;  %v8993_v23 = vmul.f32 %v11260_v3, %v8767_v57  ;;  %v8997_v61 = vmul.f32 %v11262_v33, %v8743_v44 }
 0x9dd   :  { %3825 = vmax.xlane.f32.xlu0 %v3824_v52  ;;  %3618 = vmax.xlane.f32.xlu1 %v3617_v4  ;;  %v3803_v52 = vmax.f32 %v8861_v46, %v8865_v14  ;;  %v8931_v4 = vmul.f32 %v11255_v7, %v8767_v57  ;;  %v3623_v46 = vmax.f32 %v8873_v20, %v8877_v37 }
 0x9de   :  { %v3647_v14 = vmax.f32 %v8881_v13, %v8889_v60  ;;  %v8955_v37 = vmul.f32 %v11280_v50, %v8743_v44  ;;  %v8969_v60 = vmul.f32 %v11282_v59, %v8767_v57  ;;  %v8973_v20 = vmul.f32 %v11245_v18, %v8843_v35  ;;  %11296 = vst [vmem:[#allocation65_spill] sm:$0xff] %v8985_v21 }
 0x9df   :  { %11291 = vst [vmem:[#allocation60_spill] sm:$0xff] %v8931_v4  ;;  %v3650_v13 = vmax.f32 %v8939_v53, %v8943_v62  ;;  %11297 = vst [vmem:[#allocation41_spill] sm:$0xff] %v8993_v23  ;;  %v9007_v53 = vmul.f32 %v11250_v39, %v8829_v27  ;;  %v9011_v62 = vmul.f32 %v11251_v24, %v8843_v35 }
 0x9e0   :  { %11292 = vst [vmem:[#allocation61_spill] sm:$0xff] %v8955_v37  ;;  %11293 = vst [vmem:[#allocation62_spill] sm:$0xff] %v8969_v60  ;;  %v9033_v4 = vmul.f32 %v11260_v3, %v8825_v54  ;;  %v9037_v23 = vmul.f32 %v11272_v19, %v8743_v44  ;;  %v9043_v37 = vmul.f32 %v11274_v56, %v8767_v57 }
 0x9e1   :  { %3636 = vmax.xlane.f32.xlu0 %v3635_v5  ;;  %3801 = vmax.xlane.f32.xlu1 %v3800_v41  ;;  %v8961_v41 = vmul.f32 %v11282_v59, %v8670_v16  ;;  %v8977_v5 = vmul.f32 %v11266_v34, %v8829_v27  ;;  %v8981_v16 = vmul.f32 %v11267_v36, %v8843_v35 }
 0x9e2   :  { %11298 = vst [vmem:[#allocation57_spill] sm:$0xff] %v8997_v61  ;;  %11300 = vst [vmem:[#allocation42_spill] sm:$0xff] %v9007_v53  ;;  %v9051_v60 = vmul.f32 %v11251_v24, %v8849_v6  ;;  %v9061_v21 = vmul.f32 %v11270_v8, %v8843_v35  ;;  %v9065_v53 = vmul.f32 %v11256_v0, %v8776_v40 }
 0x9e3   :  { %11294 = vst [vmem:[#allocation63_spill] sm:$0xff] %v8977_v5  ;;  %11295 = vst [vmem:[#allocation64_spill] sm:$0xff] %v8981_v16  ;;  %v9025_v16 = vmul.f32 %v11259_v25, %v8776_v40  ;;  %v9047_v5 = vmul.f32 %v11250_v39, %v8846_v47  ;;  %v9352_v61 = vmul.f32 %v11264_v15, %v8843_v35 }
 0x9e4   :  { %11301 = vst [vmem:[#allocation55_spill] sm:$0xff] %v9011_v62  ;;  %11303 = vst [vmem:[#allocation54_spill] sm:$0xff] %v9021_v55  ;;  %v9073_v62 = vmul.f32 %v11257_v48, %v8825_v54  ;;  %v11316_v55 = vld [vmem:[#allocation20_spill] sm:$0xff] }
 0x9e5   :  { %3684 = vmax.xlane.f32.xlu0 %v3683_v49  ;;  %3621 = vmax.xlane.f32.xlu1 %v3620_v22  ;;  %v9003_v49 = vmul.f32 %v11264_v15, %v8767_v57  ;;  %v9017_v22 = vmul.f32 %v11284_v2, %v8829_v27  ;;  %11304 = vst [vmem:[#allocation12_spill] sm:$0xff] %v9025_v16  ;;  %11305 = vst [vmem:[#allocation16_spill] sm:$0xff] %v9033_v4 }
 0x9e6   :  { %11306 = vst [vmem:[#allocation15_spill] sm:$0xff] %v9037_v23  ;;  %11307 = vst [vmem:[#allocation22_spill] sm:$0xff] %v9043_v37  ;;  %v9077_v4 = vmul.f32 %v11276_v10, %v8829_v27  ;;  %v9087_v37 = vmul.f32 %v11316_v55, %v8846_v47  ;;  %v9097_v23 = vmul.f32 %v11276_v10, %v8846_v47 }
 0x9e7   :  { %11299 = vst [vmem:[#allocation56_spill] sm:$0xff] %v9003_v49  ;;  %11302 = vst [vmem:[#allocation53_spill] sm:$0xff] %v9017_v22  ;;  %v9083_v22 = vmul.f32 %v11278_v1, %v8843_v35  ;;  %v9101_v16 = vmul.f32 %v11278_v1, %v8849_v6  ;;  %v9340_v49 = vmul.f32 %v11282_v59, %v8843_v35 }
 0x9e8   :  { %11308 = vst [vmem:[#allocation21_spill] sm:$0xff] %v9047_v5  ;;  %11309 = vst [vmem:[#allocation24_spill] sm:$0xff] %v9051_v60  ;;  %v9113_v5 = vmul.f32 %v11267_v36, %v8825_v54 }
 0x9e9   :  { %3690 = vmax.xlane.f32.xlu0 %v3689_v51  ;;  %3804 = vmax.xlane.f32.xlu1 %v3803_v52  ;;  %v9057_v51 = vmul.f32 %v11268_v9, %v8829_v27  ;;  %11311 = vst [vmem:[#allocation26_spill] sm:$0xff] %v9061_v21  ;;  %11312 = vst [vmem:[#allocation25_spill] sm:$0xff] %v9065_v53  ;;  %v11318_v52 = vld [vmem:[#allocation19_spill] sm:$0xff]  ;;  %v9105_v21 = vmul.f32 %v11266_v34, %v8776_v40 }
 0x9ea   :  { %11313 = vst [vmem:[#allocation30_spill] sm:$0xff] %v9073_v62  ;;  %11314 = vst [vmem:[#allocation29_spill] sm:$0xff] %v9077_v4  ;;  %v9091_v60 = vmul.f32 %v11318_v52, %v8849_v6  ;;  %v9117_v62 = vmul.f32 %v11280_v50, %v8846_v47  ;;  %v9141_v53 = vmul.f32 %v11274_v56, %v8843_v35 }
 0x9eb   :  { %11310 = vst [vmem:[#allocation23_spill] sm:$0xff] %v9057_v51  ;;  %11315 = vst [vmem:[#allocation36_spill] sm:$0xff] %v9083_v22  ;;  %v9127_v51 = vmul.f32 %v11252_v42, %v8846_v47  ;;  %v9166_v22 = vmul.f32 %v11254_v30, %v8846_v47  ;;  %v9292_v4 = vmul.f32 %v11272_v19, %v8776_v40 }
 0x9ec   :  { %11317 = vst [vmem:[#allocation35_spill] sm:$0xff] %v9087_v37  ;;  %11319 = vst [vmem:[#allocation32_spill] sm:$0xff] %v9091_v60  ;;  %v9137_v37 = vmul.f32 %v11272_v19, %v8829_v27  ;;  %v9170_v60 = vmul.f32 %v11255_v7, %v8849_v6 }
 0x9ed   :  { %3648 = vmax.xlane.f32.xlu0 %v3647_v14  ;;  %11320 = vst [vmem:[#allocation31_spill] sm:$0xff] %v9097_v23  ;;  %11321 = vst [vmem:[#allocation34_spill] sm:$0xff] %v9101_v16  ;;  %3624 = vmax.xlane.f32.xlu1 %v3623_v46  ;;  %v9123_v46 = vmul.f32 %v11282_v59, %v8849_v6  ;;  %v9131_v14 = vmul.f32 %v11253_v11, %v8849_v6 }
 0x9ee   :  { %11322 = vst [vmem:[#allocation33_spill] sm:$0xff] %v9105_v21  ;;  %11323 = vst [vmem:[#allocation39_spill] sm:$0xff] %v9113_v5  ;;  %v9145_v16 = vmul.f32 %v11284_v2, %v8776_v40  ;;  %v3479_v23 = vmul.f32 %v11284_v2, %v8682_v43  ;;  %v9155_v5 = vmul.f32 %v11285_v17, %v8825_v54 }
 0x9ef   :  { %11324 = vst [vmem:[#allocation11_spill] sm:$0xff] %v9117_v62  ;;  %11325 = vst [vmem:[#allocation38_spill] sm:$0xff] %v9123_v46  ;;  %v11332_v21 = vmax.f32 %v8907_v32, %v8911_v12  ;;  %v9180_v32 = vmul.f32 %v11268_v9, %v8776_v40  ;;  %v3626_v43 = vmax.f32 %v8947_v31, %v8961_v41 }
 0x9f0   :  { %11326 = vst [vmem:[#allocation37_spill] sm:$0xff] %v9127_v51  ;;  %11327 = vst [vmem:[#allocation40_spill] sm:$0xff] %v9131_v14  ;;  %v3827_v14 = vmax.f32 %v8965_v29, %v8973_v20  ;;  %v3480_v51 = vmul.f32 %v11285_v17, %v8689_v58  ;;  %v9190_v20 = vmul.f32 %v11270_v8, %v8825_v54 }
 0x9f1   :  { %11328 = vst [vmem:[#allocation10_spill] sm:$0xff] %v9137_v37  ;;  %11329 = vst [vmem:[#allocation43_spill] sm:$0xff] %v9141_v53  ;;  %3651 = vmax.xlane.f32.xlu0 %v3650_v13  ;;  %3807 = vmax.xlane.f32.xlu1 %v11332_v21  ;;  %v3405_v13 = vmul.f32 %v11252_v42, %v8776_v40  ;;  %v3406_v21 = vmul.f32 %v11253_v11, %v8825_v54  ;;  %v11356_v37 = vld [vmem:[#allocation69_spill] sm:$0xff] }
 0x9f2   :  { %11330 = vst [vmem:[#allocation9_spill] sm:$0xff] %v9145_v16  ;;  %11331 = vst [vmem:[#allocation20_spill] sm:$0xff] %v9155_v5  ;;  %v9194_v29 = vmul.f32 %v11259_v25, %v8846_v47  ;;  %v9198_v12 = vmul.f32 %v11260_v3, %v8849_v6  ;;  %v3523_v58 = vmul.f32 %v11244_v45, %v8846_v47  ;;  %v11353_v16 = vld [vmem:[#allocation8_spill] sm:$0xff] }
 0x9f3   :  { %11333 = vst [vmem:[#allocation19_spill] sm:$0xff] %v9166_v22  ;;  %11334 = vst [vmem:[#allocation87_spill] sm:$0xff] %v9170_v60  ;;  %v9206_v41 = vmul.f32 %v11276_v10, %v8776_v40  ;;  %v3524_v53 = vmul.f32 %v11245_v18, %v8849_v6  ;;  %v3809_v22 = vmax.f32 %v3479_v23, %v3480_v51  ;;  %v11345_v23 = vld [vmem:[#allocation67_spill] sm:$0xff] }
 0x9f4   :  { %11335 = vst [vmem:[#allocation88_spill] sm:$0xff] %v9180_v32  ;;  %11336 = vst [vmem:[#allocation89_spill] sm:$0xff] %v9190_v20  ;;  %v9218_v5 = vmul.f32 %v11256_v0, %v8846_v47  ;;  %v9222_v31 = vmul.f32 %v11257_v48, %v8849_v6  ;;  %v3250_v51 = vcombine.high %v11345_v23, %v11345_v23 }
 0x9f5   :  { %3828 = vmax.xlane.f32.xlu0 %v3827_v14  ;;  %11337 = vst [vmem:[#allocation90_spill] sm:$0xff] %v9194_v29  ;;  %11338 = vst [vmem:[#allocation91_spill] sm:$0xff] %v9198_v12  ;;  %3627 = vmax.xlane.f32.xlu1 %v3626_v43  ;;  %v3698_v14 = vmax.f32 %v3405_v13, %v3406_v21  ;;  %v9214_v43 = vmul.f32 %v11278_v1, %v8825_v54  ;;  %v11343_v13 = vld [vmem:[#allocation66_spill] sm:$0xff] }
 0x9f6   :  { %11339 = vst [vmem:[#allocation92_spill] sm:$0xff] %v9206_v41  ;;  %11341 = vst [vmem:[#allocation94_spill] sm:$0xff] %v9218_v5  ;;  %v3249_v21 = vcombine.high %v11343_v13, %v11343_v13  ;;  %v9230_v12 = vmul.f32 %v11280_v50, %v8776_v40  ;;  %v3407_v29 = vmul.f32 %v11254_v30, %v8776_v40 }
 0x9f7   :  { %11340 = vst [vmem:[#allocation93_spill] sm:$0xff] %v9214_v43  ;;  %11342 = vst [vmem:[#allocation95_spill] sm:$0xff] %v9222_v31  ;;  %v3875_v13 = vmax.f32 %v3523_v58, %v3524_v53  ;;  %v3408_v60 = vmul.f32 %v11255_v7, %v8825_v54  ;;  %v9246_v43 = vmul.f32 %v11266_v34, %v8846_v47  ;;  %v11350_v53 = vld [vmem:[#allocation18_spill] sm:$0xff]  ;;  %v11351_v31 = vld [vmem:[#allocation17_spill] sm:$0xff] }
 0x9f8   :  { %11344 = vst [vmem:[#allocation66_spill] sm:$0xff] %v9230_v12  ;;  %v9256_v20 = vmul.f32 %v11262_v33, %v8776_v40  ;;  %v3527_v58 = vmul.f32 %v11350_v53, %v8846_v47  ;;  %v3528_v5 = vmul.f32 %v11351_v31, %v8849_v6  ;;  %v9266_v32 = vmul.f32 %v11264_v15, %v8825_v54 }
 0x9f9   :  { %3699 = vmax.xlane.f32.xlu0 %v3698_v14  ;;  %3810 = vmax.xlane.f32.xlu1 %v3809_v22  ;;  %v9240_v14 = vmul.f32 %v11282_v59, %v8825_v54  ;;  %11347 = vst [vmem:[#allocation96_spill] sm:$0xff] %v9246_v43  ;;  %v9250_v22 = vmul.f32 %v11267_v36, %v8849_v6  ;;  %11360 = vst [vmem:[#allocation69_spill] sm:$0xff] %v9292_v4 }
 0x9fa   :  { %11349 = vst [vmem:[#allocation98_spill] sm:$0xff] %v9256_v20  ;;  %11352 = vst [vmem:[#allocation99_spill] sm:$0xff] %v9266_v32  ;;  %v9269_v23 = vrot.slane %v3249_v21, %v11353_v16  ;;  %v9279_v62 = vmul.f32 %v11284_v2, %v8846_v47  ;;  %v9283_v41 = vmul.f32 %v11285_v17, %v8849_v6  ;;  %v11365_v32 = vld [vmem:[#allocation71_spill] sm:$0xff] }
 0x9fb   :  { %11346 = vst [vmem:[#allocation67_spill] sm:$0xff] %v9240_v14  ;;  %11348 = vst [vmem:[#allocation97_spill] sm:$0xff] %v9250_v22  ;;  %v11354_v14 = vld [vmem:[#allocation7_spill] sm:$0xff]  ;;  %v9286_v22 = vrot.slane %v3250_v51, %v11353_v16  ;;  %v3701_v43 = vmax.f32 %v3407_v29, %v3408_v60  ;;  %v9303_v16 = vmul.f32 %v11274_v56, %v8825_v54 }
 0x9fc   :  { %v9272_v12 = vrot.slane %v3249_v21, %v11354_v14  ;;  %11358 = vst [vmem:[#allocation7_spill] sm:$0xff] %v9279_v62  ;;  %v3881_v60 = vmax.f32 %v3527_v58, %v3528_v5  ;;  %v3380_v29 = vmul.f32 %v11257_v48, %v8767_v57  ;;  %v9309_v21 = vmul.f32 %v11268_v9, %v8846_v47  ;;  %v11368_v62 = vld [vmem:[#allocation14_spill] sm:$0xff] }
 0x9fd   :  { %3876 = vmax.xlane.f32.xlu0 %v3875_v13  ;;  %v11355_v13 = vld [vmem:[#allocation68_spill] sm:$0xff]  ;;  %11361 = vst [vmem:[#allocation100_spill] sm:$0xff] %v9303_v16  ;;  %v3500_v5 = vmul.f32 %v11318_v52, %v8843_v35  ;;  %v9326_v58 = vmul.f32 %v11280_v50, %v8829_v27  ;;  %v9330_v20 = vmul.f32 %v11368_v62, %v8743_v44  ;;  %11370 = vst [vmem:[#allocation71_spill] sm:$0xff] %v9340_v49 }
 0x9fe   :  { %v11357_v46 = vmax.f32 %v11355_v13, %v11356_v37  ;;  %11359 = vst [vmem:[#allocation68_spill] sm:$0xff] %v9283_v41  ;;  %v9295_v37 = vrot.slane %v3250_v51, %v11354_v14  ;;  %11362 = vst [vmem:[#allocation101_spill] sm:$0xff] %v9309_v21  ;;  %v9313_v51 = vmul.f32 %v11270_v8, %v8849_v6  ;;  %v11364_v14 = vld [vmem:[#allocation70_spill] sm:$0xff] }
 0x9ff   :  { %v11366_v13 = vmax.f32 %v11364_v14, %v11365_v32  ;;  %v3499_v41 = vmul.f32 %v11316_v55, %v8829_v27  ;;  %11367 = vst [vmem:[#allocation70_spill] sm:$0xff] %v9326_v58  ;;  %v11369_v32 = vld [vmem:[#allocation13_spill] sm:$0xff]  ;;  %v3382_v16 = vmul.f32 %v11267_v36, %v8767_v57  ;;  %v9348_v4 = vmul.f32 %v11262_v33, %v8829_v27 }
 0xa00   :  { %3630 = vmax.xlane.f32.xlu1 %v11357_v46  ;;  %v3379_v46 = vmul.f32 %v11256_v0, %v8743_v44  ;;  %11363 = vst [vmem:[#allocation102_spill] sm:$0xff] %v9313_v51  ;;  %11372 = vst [vmem:[#allocation13_spill] sm:$0xff] %v9352_v61  ;;  %v9356_v14 = vmul.f32 %v11350_v53, %v8743_v44  ;;  %v9360_v51 = vmul.f32 %v11351_v31, %v8767_v57  ;;  %v11373_v0 = vld [vmem:[#allocation72_spill] sm:$0xff] }
 0xa01   :  { %3702 = vmax.xlane.f32.xlu0 %v3701_v43  ;;  %v3381_v43 = vmul.f32 %v11266_v34, %v8743_v44  ;;  %11371 = vst [vmem:[#allocation14_spill] sm:$0xff] %v9348_v4  ;;  %v9366_v48 = vmul.f32 %v11262_v33, %v8846_v47  ;;  %v11375_v28 = vmax.f32 %v11373_v0, %v11374_v26  ;;  %v11383_v4 = vld [vmem:[#allocation75_spill] sm:$0xff] }
 0xa02   :  { %v9377_v53 = vmul.f32 %v11253_v11, %v8843_v35  ;;  %v9383_v21 = vmul.f32 %v11264_v15, %v8849_v6  ;;  %v3659_v49 = vmax.f32 %v3379_v46, %v3380_v29  ;;  %v3839_v58 = vmax.f32 %v3499_v41, %v3500_v5 }
 0xa03   :  { %v9387_v26 = vmul.f32 %v11272_v19, %v8846_v47  ;;  %v9391_v0 = vmul.f32 %v11274_v56, %v8849_v6  ;;  %v9397_v31 = vmul.f32 %v11368_v62, %v8776_v40  ;;  %v9403_v41 = vmul.f32 %v11276_v10, %v9269_v23 }
 0xa04   :  { %3813 = vmax.xlane.f32.xlu1 %v11366_v13  ;;  %v9334_v13 = vmul.f32 %v11369_v32, %v8767_v57  ;;  %11376 = vst [vmem:[#allocation72_spill] sm:$0xff] %v9383_v21  ;;  %v3662_v46 = vmax.f32 %v3381_v43, %v3382_v16  ;;  %v9409_v5 = vmul.f32 %v11278_v1, %v9272_v12 }
 0xa05   :  { %3882 = vmax.xlane.f32.xlu0 %v3881_v60  ;;  %v9373_v60 = vmul.f32 %v11252_v42, %v8829_v27  ;;  %11377 = vst [vmem:[#allocation73_spill] sm:$0xff] %v9387_v26  ;;  %11378 = vst [vmem:[#allocation103_spill] sm:$0xff] %v9391_v0  ;;  %v3641_v21 = vmax.f32 %v9356_v14, %v9360_v51  ;;  %v9426_v43 = vmul.f32 %v11245_v18, %v9272_v12 }
 0xa06   :  { %11379 = vst [vmem:[#allocation104_spill] sm:$0xff] %v9403_v41  ;;  %11380 = vst [vmem:[#allocation105_spill] sm:$0xff] %v9409_v5  ;;  %v3384_v51 = vmul.f32 %v11285_v17, %v8767_v57  ;;  %v9458_v5 = vmul.f32 %v11253_v11, %v9272_v12  ;;  %v9462_v41 = vmul.f32 %v11266_v34, %v9286_v22 }
 0xa07   :  { %v3842_v16 = vmax.f32 %v9373_v60, %v9377_v53  ;;  %v9440_v53 = vmul.f32 %v11280_v50, %v9269_v23  ;;  %v9448_v60 = vmul.f32 %v11282_v59, %v9272_v12  ;;  %v9466_v14 = vmul.f32 %v11267_v36, %v9295_v37 }
 0xa08   :  { %3633 = vmax.xlane.f32.xlu1 %v11375_v28  ;;  %v3638_v28 = vmax.f32 %v9330_v20, %v9334_v13  ;;  %v9413_v20 = vmul.f32 %v11244_v45, %v9269_v23  ;;  %v11382_v13 = vld [vmem:[#allocation74_spill] sm:$0xff]  ;;  %v9475_v29 = vmul.f32 %v11244_v45, %v9286_v22  ;;  %v9495_v45 = vmul.f32 %v11272_v19, %v9269_v23 }
 0xa09   :  { %3660 = vmax.xlane.f32.xlu0 %v3659_v49  ;;  %v11384_v61 = vmax.f32 %v11382_v13, %v11383_v4  ;;  %v3383_v49 = vmul.f32 %v11284_v2, %v8743_v44  ;;  %11385 = vst [vmem:[#allocation74_spill] sm:$0xff] %v9426_v43  ;;  %v9432_v4 = vmul.f32 %v11316_v55, %v9269_v23  ;;  %11388 = vst [vmem:[#allocation108_spill] sm:$0xff] %v9466_v14  ;;  %v11389_v43 = vld [vmem:[#allocation76_spill] sm:$0xff] }
 0xa0a   :  { %11381 = vst [vmem:[#allocation106_spill] sm:$0xff] %v9413_v20  ;;  %v9452_v13 = vmul.f32 %v11252_v42, %v9269_v23  ;;  %v11390_v20 = vld [vmem:[#allocation77_spill] sm:$0xff]  ;;  %11392 = vst [vmem:[#allocation76_spill] sm:$0xff] %v9475_v29  ;;  %v9505_v26 = vmul.f32 %v11284_v2, %v9286_v22  ;;  %v9515_v14 = vmul.f32 %v11268_v9, %v9286_v22 }
 0xa0b   :  { %11386 = vst [vmem:[#allocation75_spill] sm:$0xff] %v9432_v4  ;;  %v11391_v0 = vmax.f32 %v11389_v43, %v11390_v20  ;;  %v9483_v4 = vmul.f32 %v11262_v33, %v9269_v23  ;;  %v9491_v20 = vmul.f32 %v11264_v15, %v9272_v12  ;;  %v9501_v43 = vmul.f32 %v11274_v56, %v9272_v12 }
 0xa0c   :  { %3816 = vmax.xlane.f32.xlu1 %v11384_v61  ;;  %v9436_v61 = vmul.f32 %v11318_v52, %v9272_v12 }
 0xa0d   :  { %3840 = vmax.xlane.f32.xlu0 %v3839_v58  ;;  %11394 = vst [vmem:[#allocation109_spill] sm:$0xff] %v9483_v4  ;;  %11395 = vst [vmem:[#allocation110_spill] sm:$0xff] %v9491_v20  ;;  %v9531_v58 = vmul.f32 %v11282_v59, %v9295_v37  ;;  %v9535_v20 = vmul.f32 %v11276_v10, %v9286_v22  ;;  %v3398_v59 = vmul.f32 %v11369_v32, %v8825_v54 }
 0xa0e   :  { %11387 = vst [vmem:[#allocation107_spill] sm:$0xff] %v9436_v61  ;;  %v9479_v61 = vmul.f32 %v11245_v18, %v9295_v37  ;;  %v9519_v18 = vmul.f32 %v11270_v8, %v9295_v37  ;;  %v9557_v4 = vmul.f32 %v11272_v19, %v9286_v22  ;;  %v3665_v10 = vmax.f32 %v3383_v49, %v3384_v51 }
 0xa0f   :  { %11398 = vst [vmem:[#allocation113_spill] sm:$0xff] %v9531_v58  ;;  %11399 = vst [vmem:[#allocation114_spill] sm:$0xff] %v9535_v20  ;;  %v3503_v19 = vmul.f32 %v11254_v30, %v8829_v27  ;;  %v3504_v58 = vmul.f32 %v11255_v7, %v8843_v35  ;;  %v3401_v49 = vmul.f32 %v11250_v39, %v8776_v40 }
 0xa10   :  { %3819 = vmax.xlane.f32.xlu1 %v11391_v0  ;;  %11393 = vst [vmem:[#allocation77_spill] sm:$0xff] %v9479_v61  ;;  %v9509_v0 = vmul.f32 %v11285_v17, %v9295_v37  ;;  %11396 = vst [vmem:[#allocation111_spill] sm:$0xff] %v9519_v18  ;;  %v9523_v61 = vmul.f32 %v11280_v50, %v9286_v22  ;;  %v9541_v50 = vmul.f32 %v11278_v1, %v9295_v37 }
 0xa11   :  { %3663 = vmax.xlane.f32.xlu0 %v3662_v46  ;;  %v9549_v46 = vmul.f32 %v11264_v15, %v9295_v37  ;;  %11403 = vst [vmem:[#allocation118_spill] sm:$0xff] %v9557_v4  ;;  %v9561_v1 = vmul.f32 %v11274_v56, %v9295_v37  ;;  %v3686_v56 = vmax.f32 %v9397_v31, %v3398_v59  ;;  %v11462_v4 = vld [vmem:[#allocation32_spill] sm:$0xff] }
 0xa12   :  { %11397 = vst [vmem:[#allocation112_spill] sm:$0xff] %v9523_v61  ;;  %11400 = vst [vmem:[#allocation115_spill] sm:$0xff] %v9541_v50  ;;  %v3402_v51 = vmul.f32 %v11251_v24, %v8825_v54  ;;  %v3505_v31 = vmul.f32 %v11259_v25, %v8829_v27  ;;  %v3493_v40 = vmul.f32 %v11368_v62, %v8829_v27 }
 0xa13   :  { %11402 = vst [vmem:[#allocation117_spill] sm:$0xff] %v9549_v46  ;;  %11404 = vst [vmem:[#allocation119_spill] sm:$0xff] %v9561_v1  ;;  %v3494_v54 = vmul.f32 %v11369_v32, %v8843_v35  ;;  %v11467_v46 = vld [vmem:[#allocation38_spill] sm:$0xff] }
 0xa14   :  { %3639 = vmax.xlane.f32.xlu1 %v3638_v28  ;;  %v9545_v28 = vmul.f32 %v11262_v33, %v9286_v22  ;;  %v3370_v33 = vmul.f32 %v11251_v24, %v8767_v57  ;;  %v3692_v59 = vmax.f32 %v3401_v49, %v3402_v51  ;;  %v11405_v57 = vmax.f32 %v8885_v38, %v8893_v63  ;;  %v11412_v49 = vld [vmem:[#allocation58_spill] sm:$0xff] }
 0xa15   :  { %3843 = vmax.xlane.f32.xlu0 %v3842_v16  ;;  %v3369_v16 = vmul.f32 %v11250_v39, %v8743_v44  ;;  %v3506_v44 = vmul.f32 %v11260_v3, %v8843_v35  ;;  %v3830_v63 = vmax.f32 %v3493_v40, %v3494_v54  ;;  %v3525_v40 = vmul.f32 %v11368_v62, %v8846_v47  ;;  %v11429_v47 = vld [vmem:[#allocation41_spill] sm:$0xff] }
 0xa16   :  { %11401 = vst [vmem:[#allocation116_spill] sm:$0xff] %v9545_v28  ;;  %v3526_v54 = vmul.f32 %v11369_v32, %v8849_v6  ;;  %v11431_v6 = vld [vmem:[#allocation53_spill] sm:$0xff] }
 0xa17   :  { %v3644_v15 = vmax.f32 %v3369_v16, %v3370_v33  ;;  %v11407_v33 = vld [vmem:[#allocation79_spill] sm:$0xff] }
 0xa18   :  { %3642 = vmax.xlane.f32.xlu1 %v3641_v21  ;;  %v3845_v21 = vmax.f32 %v3503_v19, %v3504_v58  ;;  %v3848_v58 = vmax.f32 %v3505_v31, %v3506_v44  ;;  %v11409_v19 = vld [vmem:[#allocation28_spill] sm:$0xff]  ;;  %v11410_v16 = vld [vmem:[#allocation27_spill] sm:$0xff]  ;;  %v11414_v44 = vld [vmem:[#allocation18_spill] sm:$0xff] }
 0xa19   :  { %3666 = vmax.xlane.f32.xlu0 %v3665_v10  ;;  %v11406_v10 = vld [vmem:[#allocation78_spill] sm:$0xff]  ;;  %v3508_v38 = vmul.f32 %v11410_v16, %v8843_v35 }
 0xa1c   :  { %3687 = vmax.xlane.f32.xlu1 %v3686_v56  ;;  %v3507_v56 = vmul.f32 %v11409_v19, %v8829_v27 }
 0xa1d   :  { %3846 = vmax.xlane.f32.xlu0 %v3845_v21  ;;  %v11411_v21 = vld [vmem:[#allocation80_spill] sm:$0xff] }
 0xa1e   :  { %v11413_v51 = vmax.f32 %v11411_v21, %v11412_v49  ;;  %v3851_v31 = vmax.f32 %v3507_v56, %v3508_v38  ;;  %v11420_v56 = vld [vmem:[#allocation62_spill] sm:$0xff]  ;;  %v11422_v21 = vld [vmem:[#allocation63_spill] sm:$0xff] }
 0xa20   :  { %3645 = vmax.xlane.f32.xlu1 %v3644_v15  ;;  %v11408_v15 = vmax.f32 %v11406_v10, %v11407_v33  ;;  %v11416_v10 = vld [vmem:[#allocation59_spill] sm:$0xff]  ;;  %v11417_v33 = vld [vmem:[#allocation60_spill] sm:$0xff] }
 0xa21   :  { %3669 = vmax.xlane.f32.xlu0 %v11405_v57  ;;  %v11415_v57 = vld [vmem:[#allocation17_spill] sm:$0xff] }
 0xa24   :  { %3693 = vmax.xlane.f32.xlu1 %v3692_v59  ;;  %v3495_v59 = vmul.f32 %v11414_v44, %v8829_v27  ;;  %v3878_v27 = vmax.f32 %v3525_v40, %v3526_v54  ;;  %v11437_v54 = vld [vmem:[#allocation15_spill] sm:$0xff] }
 0xa25   :  { %3849 = vmax.xlane.f32.xlu0 %v3848_v58  ;;  %v3496_v58 = vmul.f32 %v11415_v57, %v8843_v35  ;;  %v11423_v35 = vld [vmem:[#allocation64_spill] sm:$0xff] }
 0xa26   :  { %v11424_v49 = vmax.f32 %v11422_v21, %v11423_v35  ;;  %v11441_v21 = vld [vmem:[#allocation16_spill] sm:$0xff] }
 0xa27   :  { %v3833_v29 = vmax.f32 %v3495_v59, %v3496_v58  ;;  %v11428_v58 = vld [vmem:[#allocation65_spill] sm:$0xff] }
 0xa28   :  { %3696 = vmax.xlane.f32.xlu1 %v11408_v15  ;;  %v11418_v15 = vmax.f32 %v11416_v10, %v11417_v33  ;;  %v11430_v10 = vmax.f32 %v11428_v58, %v11429_v47  ;;  %v11432_v33 = vld [vmem:[#allocation54_spill] sm:$0xff]  ;;  %v11447_v58 = vld [vmem:[#allocation24_spill] sm:$0xff] }
 0xa29   :  { %3672 = vmax.xlane.f32.xlu0 %v11413_v51  ;;  %v11425_v51 = vld [vmem:[#allocation57_spill] sm:$0xff] }
 0xa2c   :  { %3831 = vmax.xlane.f32.xlu1 %v3830_v63  ;;  %v11419_v63 = vld [vmem:[#allocation61_spill] sm:$0xff] }
 0xa2d   :  { %3852 = vmax.xlane.f32.xlu0 %v3851_v31  ;;  %v11421_v38 = vmax.f32 %v11419_v63, %v11420_v56  ;;  %v11426_v31 = vld [vmem:[#allocation56_spill] sm:$0xff]  ;;  %v11434_v63 = vld [vmem:[#allocation42_spill] sm:$0xff] }
 0xa2e   :  { %v11427_v59 = vmax.f32 %v11425_v51, %v11426_v31  ;;  %v11438_v56 = vld [vmem:[#allocation22_spill] sm:$0xff] }
 0xa2f   :  { %v11444_v51 = vld [vmem:[#allocation26_spill] sm:$0xff] }
 0xa30   :  { %3654 = vmax.xlane.f32.xlu1 %v11418_v15  ;;  %v11433_v15 = vmax.f32 %v11431_v6, %v11432_v33  ;;  %v11449_v6 = vld [vmem:[#allocation44_spill] sm:$0xff] }
 0xa31   :  { %3675 = vmax.xlane.f32.xlu0 %v11421_v38  ;;  %v11439_v38 = vmax.f32 %v11437_v54, %v11438_v56  ;;  %v11452_v54 = vld [vmem:[#allocation36_spill] sm:$0xff] }
 0xa34   :  { %3834 = vmax.xlane.f32.xlu1 %v3833_v29  ;;  %v11435_v29 = vld [vmem:[#allocation55_spill] sm:$0xff] }
 0xa35   :  { %3855 = vmax.xlane.f32.xlu0 %v11424_v49  ;;  %v11436_v40 = vmax.f32 %v11434_v63, %v11435_v29  ;;  %v11443_v49 = vld [vmem:[#allocation23_spill] sm:$0xff]  ;;  %v11450_v63 = vld [vmem:[#allocation45_spill] sm:$0xff] }
 0xa36   :  { %v11445_v31 = vmax.f32 %v11443_v49, %v11444_v51  ;;  %v11457_v51 = vld [vmem:[#allocation46_spill] sm:$0xff] }
 0xa38   :  { %3879 = vmax.xlane.f32.xlu1 %v3878_v27  ;;  %v11440_v27 = vld [vmem:[#allocation12_spill] sm:$0xff] }
 0xa39   :  { %3678 = vmax.xlane.f32.xlu0 %v11427_v59  ;;  %v11442_v35 = vmax.f32 %v11440_v27, %v11441_v21  ;;  %v11446_v59 = vld [vmem:[#allocation21_spill] sm:$0xff]  ;;  %v11455_v21 = vld [vmem:[#allocation30_spill] sm:$0xff] }
 0xa3a   :  { %v11448_v47 = vmax.f32 %v11446_v59, %v11447_v58  ;;  %v11454_v27 = vld [vmem:[#allocation25_spill] sm:$0xff] }
 0xa3c   :  { %3657 = vmax.xlane.f32.xlu1 %v11430_v10 }
 0xa3d   :  { %3858 = vmax.xlane.f32.xlu0 %v11433_v15 }
 0xa40   :  { %3837 = vmax.xlane.f32.xlu1 %v11436_v40  ;;  %v11451_v40 = vld [vmem:[#allocation29_spill] sm:$0xff] }
 0xa41   :  { %3681 = vmax.xlane.f32.xlu0 %v11439_v38  ;;  %v11453_v56 = vmax.f32 %v11451_v40, %v11452_v54 }
 0xa44   :  { %3705 = vmax.xlane.f32.xlu1 %v11442_v35  ;;  %v11456_v35 = vmax.f32 %v11454_v27, %v11455_v21  ;;  %v11465_v27 = vld [vmem:[#allocation47_spill] sm:$0xff] }
 0xa45   :  { %3861 = vmax.xlane.f32.xlu0 %v11445_v31 }
 0xa46   :  { %v3592_v10 = vpop.xlane.xlu0 %3591  ;;  %v3589_v15 = vpop.xlane.xlu1 %3588 }
 0xa47   :  { %v4218_v33 = vrot.slane %v3592_v10, %v11449_v6  ;;  %v4214_v29 = vrot.slane %v3589_v15, %v11450_v63  ;;  %v11459_v10 = vld [vmem:[#allocation34_spill] sm:$0xff]  ;;  %v11461_v15 = vld [vmem:[#allocation35_spill] sm:$0xff] }
 0xa48   :  { %3885 = vmax.xlane.f32.xlu1 %v11448_v47  ;;  %v11458_v47 = vld [vmem:[#allocation31_spill] sm:$0xff]  ;;  %v11463_v40 = vmax.f32 %v11461_v15, %v11462_v4 }
 0xa49   :  { %3864 = vmax.xlane.f32.xlu0 %v11453_v56  ;;  %v4219_v38 = vsel %vm1917_vm11, %v4218_v33, %v4214_v29  ;;  %v11460_v1 = vmax.f32 %v11458_v47, %v11459_v10  ;;  %v11464_v33 = vld [vmem:[#allocation48_spill] sm:$0xff] }
 0xa4a   :  { %v3595_v49 = vpop.xlane.xlu0 %3594  ;;  %v3601_v59 = vpop.xlane.xlu1 %3600 }
 0xa4b   :  { %v4223_v31 = vrot.slane %v3595_v49, %v11457_v51  ;;  %v4233_v21 = vrot.slane %v3601_v59, %v11465_v27  ;;  %v11466_v49 = vld [vmem:[#allocation11_spill] sm:$0xff]  ;;  %v3429_v59 = vmul.f32 %v11368_v62, %v9269_v23 }
 0xa4c   :  { %3708 = vmax.xlane.f32.xlu1 %v11456_v35  ;;  %v11468_v28 = vmax.f32 %v11466_v49, %v11467_v46  ;;  %v11472_v46 = vld [vmem:[#allocation49_spill] sm:$0xff]  ;;  %v11474_v49 = vld [vmem:[#allocation43_spill] sm:$0xff] }
 0xa4d   :  { %v4224_v58 = vsel %vm1924_vm12, %v4223_v31, %v4219_v38  ;;  %3912 = vmax.xlane.f32.xlu0 %v11460_v1  ;;  %v11469_v38 = vld [vmem:[#allocation33_spill] sm:$0xff]  ;;  %v11470_v31 = vld [vmem:[#allocation39_spill] sm:$0xff] }
 0xa4e   :  { %v3598_v54 = vpop.xlane.xlu0 %3597  ;;  %v3781_v56 = vpop.xlane.xlu1 %3780  ;;  %v11471_v47 = vmax.f32 %v11469_v38, %v11470_v31 }
 0xa4f   :  { %v4228_v29 = vrot.slane %v3598_v54, %v11464_v33  ;;  %v4530_v10 = vrot.slane %v3781_v56, %v11450_v63  ;;  %v11477_v56 = vld [vmem:[#allocation37_spill] sm:$0xff] }
 0xa50   :  { %3888 = vmax.xlane.f32.xlu1 %v11463_v40 }
 0xa51   :  { %v4229_v35 = vsel %vm1931_vm0, %v4228_v29, %v4224_v58  ;;  %3915 = vmax.xlane.f32.xlu0 %v11468_v28  ;;  %v3430_v58 = vmul.f32 %v11369_v32, %v9272_v12  ;;  %v11473_v29 = vld [vmem:[#allocation10_spill] sm:$0xff] }
 0xa52   :  { %v3784_v1 = vpop.xlane.xlu0 %3783  ;;  %v4234_v4 = vsel %vm1938_vm1, %v4233_v21, %v4229_v35  ;;  %v3604_v40 = vpop.xlane.xlu1 %3603  ;;  %v11475_v38 = vmax.f32 %v11473_v29, %v11474_v49  ;;  %v11478_v35 = vld [vmem:[#allocation40_spill] sm:$0xff] }
 0xa53   :  { %v4534_v15 = vrot.slane %v3784_v1, %v11449_v6  ;;  %v4238_v28 = vrot.slane %v3604_v40, %v11472_v46  ;;  %v11479_v31 = vmax.f32 %v11477_v56, %v11478_v35  ;;  %v11480_v1 = vld [vmem:[#allocation52_spill] sm:$0xff]  ;;  %v3734_v61 = vmax.f32 %v3429_v59, %v3430_v58 }
 0xa54   :  { %3711 = vmax.xlane.f32.xlu1 %v11471_v47  ;;  %v3431_v40 = vmul.f32 %v11414_v44, %v9269_v23  ;;  %v11482_v49 = vld [vmem:[#allocation20_spill] sm:$0xff] }
 0xa55   :  { %v4535_v54 = vsel %vm1917_vm11, %v4534_v15, %v4530_v10  ;;  %3873 = vmax.xlane.f32.xlu0 %v11475_v38  ;;  %v4239_v21 = vsel %vm11476_vm2, %v4238_v28, %v4234_v4  ;;  %v3432_v10 = vmul.f32 %v11415_v57, %v9272_v12  ;;  %v11481_v28 = vld [vmem:[#allocation9_spill] sm:$0xff]  ;;  %vm11544_vm2 = vmmov %vm11509_vm8 }
 0xa56   :  { %v3607_v47 = vpop.xlane.xlu0 %3606  ;;  %v3787_v20 = vpop.xlane.xlu1 %3786  ;;  %v11483_v38 = vmax.f32 %v11481_v28, %v11482_v49 }
 0xa57   :  { %v4243_v50 = vrot.slane %v3607_v47, %v11480_v1  ;;  %v4539_v15 = vrot.slane %v3787_v20, %v11457_v51  ;;  %v3737_v35 = vmax.f32 %v3431_v40, %v3432_v10  ;;  %v3434_v20 = vmul.f32 %v11251_v24, %v9272_v12 }
 0xa58   :  { %3891 = vmax.xlane.f32.xlu1 %v11479_v31  ;;  %v3433_v31 = vmul.f32 %v11250_v39, %v9269_v23  ;;  %v3557_v40 = vmul.f32 %v11368_v62, %v9286_v22  ;;  %v3558_v10 = vmul.f32 %v11369_v32, %v9295_v37  ;;  %v3439_v62 = vmul.f32 %v11254_v30, %v9269_v23 }
 0xa59   :  { %v4244_v29 = vsel %vm1952_vm15, %v4243_v50, %v4239_v21  ;;  %3735 = vmax.xlane.f32.xlu0 %v3734_v61  ;;  %v4540_v4 = vsel %vm1924_vm12, %v4539_v15, %v4535_v54  ;;  %v11484_v61 = vld [vmem:[#allocation19_spill] sm:$0xff]  ;;  %v11487_v15 = vld [vmem:[#allocation6_spill] sm:$0xff]  ;;  %v3440_v32 = vmul.f32 %v11255_v7, %v9272_v12 }
 0xa5a   :  { %v3790_v56 = vpop.xlane.xlu0 %3789  ;;  %v3613_v58 = vpop.xlane.xlu1 %3612  ;;  %v11485_v54 = vld [vmem:[#allocation87_spill] sm:$0xff] }
 0xa5b   :  { %v4544_v59 = vrot.slane %v3790_v56, %v11464_v33  ;;  %v11486_v21 = vmax.f32 %v11484_v61, %v11485_v54  ;;  %v11488_v56 = vld [vmem:[#allocation81_spill] sm:$0xff] }
 0xa5c   :  { %3714 = vmax.xlane.f32.xlu1 %v11483_v38  ;;  %v3740_v38 = vmax.f32 %v3433_v31, %v3434_v20  ;;  %v4253_v18 = vrot.slane %v3613_v58, %v11488_v56  ;;  %v11492_v58 = vld [vmem:[#allocation82_spill] sm:$0xff] }
 0xa5d   :  { %v4545_v50 = vsel %vm1931_vm0, %v4544_v59, %v4540_v4  ;;  %3738 = vmax.xlane.f32.xlu0 %v3737_v35  ;;  %v11489_v59 = vld [vmem:[#allocation88_spill] sm:$0xff]  ;;  %v11490_v35 = vld [vmem:[#allocation89_spill] sm:$0xff] }
 0xa5e   :  { %v3610_v47 = vpop.xlane.xlu0 %3609  ;;  %v3796_v49 = vpop.xlane.xlu1 %3795  ;;  %v11491_v61 = vmax.f32 %v11489_v59, %v11490_v35 }
 0xa5f   :  { %v4248_v28 = vrot.slane %v3610_v47, %v11487_v15  ;;  %v3926_v47 = vmax.f32 %v3557_v40, %v3558_v10 }
 0xa60   :  { %3894 = vmax.xlane.f32.xlu1 %v11486_v21 }
 0xa61   :  { %v4249_v4 = vsel %vm1959_vm6, %v4248_v28, %v4244_v29  ;;  %3741 = vmax.xlane.f32.xlu0 %v3740_v38  ;;  %v4554_v29 = vrot.slane %v3796_v49, %v11472_v46  ;;  %v3559_v49 = vmul.f32 %v11414_v44, %v9286_v22  ;;  %v3442_v44 = vmul.f32 %v11260_v3, %v9272_v12 }
 0xa62   :  { %v3793_v54 = vpop.xlane.xlu0 %3792  ;;  %v4254_v21 = vsel %vm1966_vm9, %v4253_v18, %v4249_v4  ;;  %v3616_v20 = vpop.xlane.xlu1 %3615  ;;  %v11493_v18 = vld [vmem:[#allocation90_spill] sm:$0xff]  ;;  %v11494_v4 = vld [vmem:[#allocation91_spill] sm:$0xff] }
 0xa63   :  { %v4549_v31 = vrot.slane %v3793_v54, %v11465_v27  ;;  %v4258_v28 = vrot.slane %v3616_v20, %v11492_v58  ;;  %v11495_v35 = vmax.f32 %v11493_v18, %v11494_v4  ;;  %v3749_v54 = vmax.f32 %v3439_v62, %v3440_v32 }
 0xa64   :  { %3717 = vmax.xlane.f32.xlu1 %v11491_v61  ;;  %v3560_v20 = vmul.f32 %v11415_v57, %v9295_v37  ;;  %v3441_v62 = vmul.f32 %v11259_v25, %v9269_v23  ;;  %v11500_v57 = vld [vmem:[#allocation83_spill] sm:$0xff] }
 0xa65   :  { %v4550_v38 = vsel %vm1938_vm1, %v4549_v31, %v4545_v50  ;;  %3927 = vmax.xlane.f32.xlu0 %v3926_v47  ;;  %v4259_v59 = vsel %vm1973_vm14, %v4258_v28, %v4254_v21  ;;  %v11497_v31 = vld [vmem:[#allocation92_spill] sm:$0xff]  ;;  %v11498_v47 = vld [vmem:[#allocation93_spill] sm:$0xff] }
 0xa66   :  { %v9729_v40 = vpop.xlane.xlu0 %3822  ;;  %v4555_v10 = vsel %vm11496_vm10, %v4554_v29, %v4550_v38  ;;  %v3799_v61 = vpop.xlane.xlu1 %3798  ;;  %v11499_v28 = vmax.f32 %v11497_v31, %v11498_v47  ;;  %v3929_v38 = vmax.f32 %v3559_v49, %v3560_v20  ;;  %v3752_v31 = vmax.f32 %v3441_v62, %v3442_v44 }
 0xa67   :  { %v4559_v50 = vrot.slane %v3799_v61, %v11480_v1  ;;  %v3561_v49 = vmul.f32 %v11250_v39, %v9286_v22  ;;  %v3562_v20 = vmul.f32 %v11251_v24, %v9295_v37  ;;  %v3443_v62 = vmul.f32 %v11409_v19, %v9269_v23  ;;  %v11508_v24 = vld [vmem:[#allocation84_spill] sm:$0xff] }
 0xa68   :  { %3897 = vmax.xlane.f32.xlu1 %v11495_v35  ;;  %v11502_v35 = vld [vmem:[#allocation94_spill] sm:$0xff]  ;;  %v3444_v39 = vmul.f32 %v11410_v16, %v9272_v12  ;;  %vm11551_vm10 = vcmask 1048512  }
 0xa69   :  { %3750 = vmax.xlane.f32.xlu0 %v3749_v54  ;;  %v4560_v21 = vsel %vm1952_vm15, %v4559_v50, %v4555_v10  ;;  %v11503_v10 = vld [vmem:[#allocation95_spill] sm:$0xff] }
 0xa6a   :  { %v9741_v18 = vpop.xlane.xlu0 %3825  ;;  %v3619_v29 = vpop.xlane.xlu1 %3618  ;;  %v11504_v61 = vmax.f32 %v11502_v35, %v11503_v10  ;;  %v3932_v10 = vmax.f32 %v3561_v49, %v3562_v20  ;;  %v3563_v49 = vmul.f32 %v11316_v55, %v9286_v22  ;;  %v3564_v20 = vmul.f32 %v11318_v52, %v9295_v37  ;;  %v11516_v52 = vld [vmem:[#allocation85_spill] sm:$0xff] }
 0xa6b   :  { %v4263_v32 = vrot.slane %v3619_v29, %v11500_v57  ;;  %v11506_v29 = vld [vmem:[#allocation67_spill] sm:$0xff]  ;;  %v3446_v55 = vmul.f32 %v11267_v36, %v9272_v12  ;;  %v3566_v36 = vmul.f32 %v11253_v11, %v9295_v37  ;;  %v3448_v11 = vmul.f32 %v11285_v17, %v9272_v12 }
 0xa6c   :  { %3720 = vmax.xlane.f32.xlu1 %v11499_v28 }
 0xa6d   :  { %3930 = vmax.xlane.f32.xlu0 %v3929_v38  ;;  %v4264_v4 = vsel %vm11501_vm5, %v4263_v32, %v4259_v59  ;;  %v11505_v59 = vld [vmem:[#allocation66_spill] sm:$0xff]  ;;  %vm11566_vm5 = vcmask 392512  }
 0xa6e   :  { %v9752_v54 = vpop.xlane.xlu0 %3636  ;;  %v3802_v50 = vpop.xlane.xlu1 %3801  ;;  %v11507_v38 = vmax.f32 %v11505_v59, %v11506_v29  ;;  %v3755_v29 = vmax.f32 %v3443_v62, %v3444_v39  ;;  %v3445_v62 = vmul.f32 %v11266_v34, %v9269_v23  ;;  %v3565_v34 = vmul.f32 %v11252_v42, %v9286_v22 }
 0xa6f   :  { %v4564_v47 = vrot.slane %v3802_v50, %v11487_v15  ;;  %v11511_v50 = vld [vmem:[#allocation97_spill] sm:$0xff]  ;;  %v3447_v42 = vmul.f32 %v11284_v2, %v9269_v23  ;;  %v11526_v2 = vld [vmem:[#allocation70_spill] sm:$0xff] }
 0xa70   :  { %3900 = vmax.xlane.f32.xlu1 %v11504_v61 }
 0xa71   :  { %3753 = vmax.xlane.f32.xlu0 %v3752_v31  ;;  %v4565_v28 = vsel %vm1959_vm6, %v4564_v47, %v4560_v21  ;;  %v11510_v21 = vld [vmem:[#allocation96_spill] sm:$0xff] }
 0xa72   :  { %v9763_v32 = vpop.xlane.xlu0 %3684  ;;  %v3622_v35 = vpop.xlane.xlu1 %3621  ;;  %v11512_v31 = vmax.f32 %v11510_v21, %v11511_v50 }
 0xa73   :  { %v4268_v44 = vrot.slane %v3622_v35, %v11508_v24 }
 0xa74   :  { %3723 = vmax.xlane.f32.xlu1 %v11507_v38 }
 0xa75   :  { %3933 = vmax.xlane.f32.xlu0 %v3932_v10  ;;  %v4269_v61 = vsel %vm11509_vm8, %v4268_v44, %v4264_v4  ;;  %v11513_v4 = vld [vmem:[#allocation98_spill] sm:$0xff]  ;;  %v11514_v10 = vld [vmem:[#allocation99_spill] sm:$0xff]  ;;  %vm11579_vm8 = vmmov %vm11551_vm10 }
 0xa76   :  { %v9774_v47 = vpop.xlane.xlu0 %3690  ;;  %v3805_v59 = vpop.xlane.xlu1 %3804  ;;  %v11515_v44 = vmax.f32 %v11513_v4, %v11514_v10 }
 0xa77   :  { %v4569_v38 = vrot.slane %v3805_v59, %v11488_v56 }
 0xa78   :  { %3903 = vmax.xlane.f32.xlu1 %v11512_v31  ;;  %v3935_v31 = vmax.f32 %v3563_v49, %v3564_v20  ;;  %v3758_v49 = vmax.f32 %v3445_v62, %v3446_v55  ;;  %v3938_v62 = vmax.f32 %v3565_v34, %v3566_v36  ;;  %v11523_v55 = vld [vmem:[#allocation101_spill] sm:$0xff]  ;;  %v3568_v34 = vmul.f32 %v11255_v7, %v9295_v37  ;;  %v11527_v36 = vld [vmem:[#allocation71_spill] sm:$0xff] }
 0xa79   :  { %3756 = vmax.xlane.f32.xlu0 %v3755_v29  ;;  %v4570_v35 = vsel %vm1966_vm9, %v4569_v38, %v4565_v28  ;;  %v11517_v28 = vld [vmem:[#allocation7_spill] sm:$0xff]  ;;  %v11518_v29 = vld [vmem:[#allocation68_spill] sm:$0xff] }
 0xa7a   :  { %v9785_v21 = vpop.xlane.xlu0 %3648  ;;  %v3625_v50 = vpop.xlane.xlu1 %3624  ;;  %v11519_v38 = vmax.f32 %v11517_v28, %v11518_v29  ;;  %v11524_v29 = vld [vmem:[#allocation102_spill] sm:$0xff] }
 0xa7b   :  { %v4273_v39 = vrot.slane %v3625_v50, %v11516_v52  ;;  %v11521_v50 = vld [vmem:[#allocation100_spill] sm:$0xff] }
 0xa7c   :  { %3726 = vmax.xlane.f32.xlu1 %v11515_v44  ;;  %v11520_v44 = vld [vmem:[#allocation69_spill] sm:$0xff] }
 0xa7d   :  { %3936 = vmax.xlane.f32.xlu0 %v3935_v31  ;;  %v9793_v59 = vsel %vm1994_vm3, %v4273_v39, %v4269_v61  ;;  %v11522_v31 = vmax.f32 %v11520_v44, %v11521_v50  ;;  %v11528_v44 = vmax.f32 %v11526_v2, %v11527_v36  ;;  %v11534_v2 = vld [vmem:[#allocation73_spill] sm:$0xff]  ;;  %v11535_v36 = vld [vmem:[#allocation103_spill] sm:$0xff] }
 0xa7e   :  { %v9798_v4 = vpop.xlane.xlu0 %3651  ;;  %v3808_v10 = vpop.xlane.xlu1 %3807 }
 0xa7f   :  { %v4574_v20 = vrot.slane %v3808_v10, %v11492_v58 }
 0xa80   :  { %3906 = vmax.xlane.f32.xlu1 %v11519_v38  ;;  %v11525_v38 = vmax.f32 %v11523_v55, %v11524_v29 }
 0xa81   :  { %3759 = vmax.xlane.f32.xlu0 %v3758_v49  ;;  %v4575_v61 = vsel %vm1973_vm14, %v4574_v20, %v4570_v35  ;;  %v3761_v49 = vmax.f32 %v3447_v42, %v3448_v11  ;;  %v3567_v20 = vmul.f32 %v11254_v30, %v9286_v22  ;;  %v3450_v42 = vmul.f32 %v11270_v8, %v9272_v12  ;;  %v11529_v30 = vld [vmem:[#allocation14_spill] sm:$0xff]  ;;  %v11530_v11 = vld [vmem:[#allocation13_spill] sm:$0xff] }
 0xa82   :  { %v9809_v39 = vpop.xlane.xlu0 %3828  ;;  %v9811_v28 = vpop.xlane.xlu1 %3627  ;;  %v11531_v7 = vmax.f32 %v11529_v30, %v11530_v11  ;;  %v11537_v11 = vld [vmem:[#allocation104_spill] sm:$0xff] }
 0xa84   :  { %3729 = vmax.xlane.f32.xlu1 %v11522_v31  ;;  %v3941_v31 = vmax.f32 %v3567_v20, %v3568_v34  ;;  %v3570_v20 = vmul.f32 %v11260_v3, %v9295_v37 }
 0xa85   :  { %3939 = vmax.xlane.f32.xlu0 %v3938_v62  ;;  %v3449_v62 = vmul.f32 %v11268_v9, %v9269_v23  ;;  %v11532_v9 = vld [vmem:[#allocation72_spill] sm:$0xff] }
 0xa86   :  { %v9820_v35 = vpop.xlane.xlu0 %3699  ;;  %v3811_v10 = vpop.xlane.xlu1 %3810  ;;  %v11533_v23 = vmax.f32 %v9366_v48, %v11532_v9  ;;  %v3572_v48 = vmul.f32 %v11410_v16, %v9295_v37  ;;  %v11545_v16 = vld [vmem:[#allocation86_spill] sm:$0xff] }
 0xa88   :  { %3909 = vmax.xlane.f32.xlu1 %v11525_v38  ;;  %v3764_v38 = vmax.f32 %v3449_v62, %v3450_v42  ;;  %v3571_v62 = vmul.f32 %v11409_v19, %v9286_v22 }
 0xa89   :  { %3762 = vmax.xlane.f32.xlu0 %v3761_v49  ;;  %v3569_v49 = vmul.f32 %v11259_v25, %v9286_v22  ;;  %v4579_v25 = vrot.slane %v3811_v10, %v11500_v57 }
 0xa8a   :  { %v9829_v17 = vpop.xlane.xlu0 %3876  ;;  %v3947_v19 = vmax.f32 %v3571_v62, %v3572_v48 }
 0xa8b   :  { %v3944_v34 = vmax.f32 %v3569_v49, %v3570_v20  ;;  %v11540_v49 = vld [vmem:[#allocation106_spill] sm:$0xff] }
 0xa8c   :  { %3867 = vmax.xlane.f32.xlu1 %v11528_v44  ;;  %v11536_v44 = vmax.f32 %v11534_v2, %v11535_v36  ;;  %v11541_v20 = vld [vmem:[#allocation74_spill] sm:$0xff] }
 0xa8d   :  { %v9831_v50 = vpop.xlane.xlu1 %3630  ;;  %3942 = vmax.xlane.f32.xlu0 %v3941_v31  ;;  %v11542_v9 = vmax.f32 %v11540_v49, %v11541_v20  ;;  %v11554_v20 = vld [vmem:[#allocation108_spill] sm:$0xff] }
 0xa8e   :  { %v9840_v55 = vpop.xlane.xlu0 %3702 }
 0xa90   :  { %3870 = vmax.xlane.f32.xlu1 %v11531_v7  ;;  %v11538_v7 = vld [vmem:[#allocation105_spill] sm:$0xff] }
 0xa91   :  { %v3814_v29 = vpop.xlane.xlu1 %3813  ;;  %3765 = vmax.xlane.f32.xlu0 %v3764_v38  ;;  %v11539_v38 = vmax.f32 %v11537_v11, %v11538_v7  ;;  %v11548_v7 = vld [vmem:[#allocation75_spill] sm:$0xff] }
 0xa92   :  { %v9849_v8 = vpop.xlane.xlu0 %3882  ;;  %v4584_v42 = vrot.slane %v3814_v29, %v11508_v24 }
 0xa94   :  { %3918 = vmax.xlane.f32.xlu1 %v11533_v23  ;;  %v4580_v23 = vsel %vm11543_vm4, %v4579_v25, %v4575_v61  ;;  %vm11580_vm4 = vcmask 64512  }
 0xa95   :  { %v9851_v12 = vpop.xlane.xlu1 %3633  ;;  %3945 = vmax.xlane.f32.xlu0 %v3944_v34  ;;  %v4585_v37 = vsel %vm11544_vm2, %v4584_v42, %v4580_v23  ;;  %v11546_v34 = vld [vmem:[#allocation50_spill] sm:$0xff]  ;;  %v11556_v23 = vld [vmem:[#allocation76_spill] sm:$0xff]  ;;  %vm11581_vm2 = vmmov %vm11566_vm5 }
 0xa96   :  { %v9856_v31 = vpop.xlane.xlu0 %3660  ;;  %v4599_v2 = vrot.slane %v9729_v40, %v11546_v34  ;;  %v11552_v40 = vmax.f32 %v9440_v53, %v9448_v60  ;;  %v4372_v53 = vrot.slane %v9763_v32, %v11450_v63  ;;  %v11562_v32 = vmax.f32 %v9495_v45, %v9501_v43 }
 0xa97   :  { %v4317_v45 = vrot.slane %v9798_v4, %v11472_v46 }
 0xa98   :  { %3921 = vmax.xlane.f32.xlu1 %v11536_v44  ;;  %v11547_v44 = vld [vmem:[#allocation51_spill] sm:$0xff] }
 0xa99   :  { %v3817_v3 = vpop.xlane.xlu1 %3816  ;;  %3768 = vmax.xlane.f32.xlu0 %v11539_v38  ;;  %v11549_v38 = vld [vmem:[#allocation107_spill] sm:$0xff] }
 0xa9a   :  { %v4589_v30 = vrot.slane %v3817_v3, %v11516_v52  ;;  %v9871_v10 = vpop.xlane.xlu0 %3840  ;;  %v4604_v3 = vrot.slane %v9741_v18, %v11547_v44  ;;  %v11550_v61 = vmax.f32 %v11548_v7, %v11549_v38  ;;  %v11553_v18 = vmax.f32 %v9452_v13, %v9458_v5 }
 0xa9b   :  { %v4381_v13 = vrot.slane %v9774_v47, %v11457_v51 }
 0xa9c   :  { %3732 = vmax.xlane.f32.xlu1 %v11542_v9  ;;  %v4590_v36 = vsel %vm1994_vm3, %v4589_v30, %v4585_v37  ;;  %v11555_v9 = vmax.f32 %v9462_v41, %v11554_v20 }
 0xa9d   :  { %v3820_v22 = vpop.xlane.xlu1 %3819  ;;  %3948 = vmax.xlane.f32.xlu0 %v3947_v19 }
 0xa9e   :  { %v4594_v29 = vrot.slane %v3820_v22, %v11545_v16  ;;  %v9885_v25 = vpop.xlane.xlu0 %3663  ;;  %v11557_v22 = vld [vmem:[#allocation77_spill] sm:$0xff] }
 0xa9f   :  { %v11558_v19 = vmax.f32 %v11556_v23, %v11557_v22 }
 0xaa0   :  { %v4595_v11 = vsel %vm2001_vm7, %v4594_v29, %v4590_v36  ;;  %3744 = vmax.xlane.f32.xlu1 %v11550_v61  ;;  %v11560_v36 = vld [vmem:[#allocation110_spill] sm:$0xff] }
 0xaa1   :  { %v4600_v62 = vsel %vm2008_vm13, %v4599_v2, %v4595_v11  ;;  %v3640_v48 = vpop.xlane.xlu1 %3639  ;;  %3771 = vmax.xlane.f32.xlu0 %v11552_v40  ;;  %v11559_v2 = vld [vmem:[#allocation109_spill] sm:$0xff]  ;;  %v4293_v11 = vrot.slane %v9752_v54, %v11450_v63  ;;  %v4312_v40 = vrot.slane %v9785_v21, %v11465_v27 }
 0xaa2   :  { %v9889_v42 = vsel %vm11551_vm10, %v4604_v3, %v4600_v62  ;;  %v9897_v30 = vpop.xlane.xlu0 %3843  ;;  %v4297_v5 = vrot.slane %v3640_v48, %v11449_v6  ;;  %v11561_v3 = vmax.f32 %v11559_v2, %v11560_v36  ;;  %v11576_v2 = vld [vmem:[#allocation118_spill] sm:$0xff]  ;;  %v11577_v36 = vld [vmem:[#allocation119_spill] sm:$0xff]  ;;  %vm11582_vm10 = vcmask 720512  }
 0xaa4   :  { %3747 = vmax.xlane.f32.xlu1 %v11553_v18  ;;  %v4298_v62 = vsel %vm1917_vm11, %v4297_v5, %v4293_v11  ;;  %v11563_v18 = vmax.f32 %v9505_v26, %v9509_v0  ;;  %v11570_v0 = vld [vmem:[#allocation114_spill] sm:$0xff] }
 0xaa5   :  { %v3643_v49 = vpop.xlane.xlu1 %3642  ;;  %3951 = vmax.xlane.f32.xlu0 %v11555_v9 }
 0xaa6   :  { %v9905_v37 = vpop.xlane.xlu0 %3666  ;;  %v4302_v41 = vrot.slane %v3643_v49, %v11457_v51  ;;  %v11564_v49 = vld [vmem:[#allocation111_spill] sm:$0xff] }
 0xaa7   :  { %v11565_v20 = vmax.f32 %v9515_v14, %v11564_v49  ;;  %v11573_v14 = vld [vmem:[#allocation116_spill] sm:$0xff]  ;;  %v3988_v49 = vld [vmem:[%s10501_s18 + $0x8] sm:$0xff] }
 0xaa8   :  { %3924 = vmax.xlane.f32.xlu1 %v11558_v19  ;;  %v4303_v54 = vsel %vm1924_vm12, %v4302_v41, %v4298_v62  ;;  %v11567_v19 = vld [vmem:[#allocation112_spill] sm:$0xff] }
 0xaa9   :  { %v3688_v29 = vpop.xlane.xlu1 %3687  ;;  %3774 = vmax.xlane.f32.xlu0 %v11561_v3  ;;  %v11578_v3 = vmax.f32 %v11576_v2, %v11577_v36  ;;  %v4633_v2 = vrot.slane %v9897_v30, %v11472_v46  ;;  %v4342_v36 = vrot.slane %v9905_v37, %v11500_v57 }
 0xaaa   :  { %v4376_v60 = vrot.slane %v3688_v29, %v11449_v6  ;;  %v9923_v38 = vpop.xlane.xlu0 %3846  ;;  %v11568_v29 = vld [vmem:[#allocation113_spill] sm:$0xff] }
 0xaab   :  { %v11569_v26 = vmax.f32 %v11567_v19, %v11568_v29 }
 0xaac   :  { %v4377_v7 = vsel %vm1917_vm11, %v4376_v60, %v4372_v53  ;;  %3777 = vmax.xlane.f32.xlu1 %v11562_v32  ;;  %v11571_v53 = vld [vmem:[#allocation115_spill] sm:$0xff] }
 0xaad   :  { %v3646_v61 = vpop.xlane.xlu1 %3645  ;;  %v4382_v47 = vsel %vm1924_vm12, %v4381_v13, %v4377_v7  ;;  %3954 = vmax.xlane.f32.xlu0 %v11563_v18  ;;  %v11572_v4 = vmax.f32 %v11570_v0, %v11571_v53  ;;  %v11574_v13 = vld [vmem:[#allocation117_spill] sm:$0xff]  ;;  %v4401_v0 = vrot.slane %v9840_v55, %v11480_v1  ;;  %v4332_v53 = vrot.slane %v9856_v31, %v11488_v56 }
 0xaae   :  { %v4307_v48 = vrot.slane %v3646_v61, %v11464_v33  ;;  %v9940_v9 = vpop.xlane.xlu0 %3669  ;;  %v11575_v41 = vmax.f32 %v11573_v14, %v11574_v13  ;;  %v3987_v55 = vld [vmem:[%s10501_s18] sm:$0xff]  ;;  %v4337_v14 = vrot.slane %v9885_v25, %v11492_v58 }
 0xab0   :  { %v4308_v43 = vsel %vm1931_vm0, %v4307_v48, %v4303_v54  ;;  %3957 = vmax.xlane.f32.xlu1 %v11565_v20  ;;  %v4283_v54 = vrot.slane %v9831_v50, %v11546_v34 }
 0xab1   :  { %v4313_v23 = vsel %vm1938_vm1, %v4312_v40, %v4308_v43  ;;  %v3694_v21 = vpop.xlane.xlu1 %3693  ;;  %3963 = vmax.xlane.f32.xlu0 %v11569_v26  ;;  %v4278_v40 = vrot.slane %v9811_v28, %v11545_v16  ;;  %v4396_v26 = vrot.slane %v9820_v35, %v11472_v46  ;;  %v3989_v35 = vld [vmem:[%s10501_s18 + $0x10] sm:$0xff] }
 0xab2   :  { %v4318_v22 = vsel %vm11566_vm5, %v4317_v45, %v4313_v23  ;;  %v9950_v5 = vpop.xlane.xlu0 %3849  ;;  %v4288_v45 = vrot.slane %v9851_v12, %v11547_v44  ;;  %v4386_v23 = vrot.slane %v3694_v21, %v11464_v33  ;;  %v4609_v12 = vrot.slane %v9809_v39, %v11450_v63 }
 0xab3   :  { %v4279_v20 = vsel %vm2001_vm7, %v4278_v40, %v9793_v59  ;;  %v4643_v30 = vrot.slane %v9950_v5, %v11487_v15  ;;  %vm11583_vm5 = vcmask 786112  }
 0xab4   :  { %3960 = vmax.xlane.f32.xlu1 %v11572_v4  ;;  %v4284_v50 = vsel %vm2008_vm13, %v4283_v54, %v4279_v20  ;;  %v4628_v4 = vrot.slane %v9871_v10, %v11465_v27  ;;  %v4387_v31 = vsel %vm1931_vm0, %v4386_v23, %v4382_v47  ;;  %v4638_v47 = vrot.slane %v9923_v38, %v11480_v1  ;;  %v3991_v38 = vld [vmem:[%s10501_s18 + $0x20] sm:$0xff] }
 0xab5   :  { %v3697_v60 = vpop.xlane.xlu1 %3696  ;;  %3966 = vmax.xlane.f32.xlu0 %v11575_v41  ;;  %v9990_v59 = vsel %vm11579_vm8, %v4288_v45, %v4284_v50  ;;  %v3971_v41 = vld [vmem:[%s10500_s17] sm:$0xff]  ;;  %vm11584_vm8 = vmmov %vm11581_vm2 }
 0xab6   :  { %v9958_v11 = vpop.xlane.xlu0 %3672  ;;  %v4391_v19 = vrot.slane %v3697_v60, %v11465_v27  ;;  %5740 = vmatprep.mubr.msk.f32.mxu0 %vm11580_vm4, %v3971_v41  ;;  %vm11585_vm4 = vcmask 1048512  }
 0xab8   :  { %3969 = vmax.xlane.f32.xlu1 %v11578_v3  ;;  %v4392_v3 = vsel %vm1938_vm1, %v4391_v19, %v4387_v31 }
 0xab9   :  { %v3832_v7 = vpop.xlane.xlu1 %3831  ;;  %v4397_v45 = vsel %vm11581_vm2, %v4396_v26, %v4392_v3  ;;  %vm11586_vm2 = vcmask 1041409  }
 0xaba   :  { %v9960_v32 = vpop.xlane.xlu0 %3852  ;;  %v4613_v60 = vrot.slane %v3832_v7, %v11449_v6 }
 0xabc   :  { %v4614_v37 = vsel %vm1917_vm11, %v4613_v60, %v4609_v12 }
 0xabd   :  { %v3655_v61 = vpop.xlane.xlu1 %3654 }
 0xabe   :  { %v9962_v62 = vpop.xlane.xlu0 %3675  ;;  %v4322_v28 = vrot.slane %v3655_v61, %v11480_v1 }
 0xabf   :  { %v4357_v23 = vrot.slane %v9962_v62, %v11545_v16 }
 0xac0   :  { %v4323_v13 = vsel %vm1952_vm15, %v4322_v28, %v4318_v22  ;;  %v4347_v22 = vrot.slane %v9940_v9, %v11508_v24  ;;  %v3990_v9 = vld [vmem:[%s10501_s18 + $0x18] sm:$0xff] }
 0xac1   :  { %v3835_v48 = vpop.xlane.xlu1 %3834 }
 0xac2   :  { %v9968_v18 = vpop.xlane.xlu0 %3855  ;;  %v4618_v10 = vrot.slane %v3835_v48, %v11457_v51 }
 0xac4   :  { %v4619_v5 = vsel %vm1924_vm12, %v4618_v10, %v4614_v37  ;;  %v4688_v37 = vrot.slane %v9829_v17, %v11450_v63 }
 0xac5   :  { %v9972_v43 = vpop.xlane.xlu1 %3879 }
 0xac6   :  { %v3679_v29 = vpop.xlane.xlu0 %3678 }
 0xac7   :  { %v4362_v50 = vrot.slane %v3679_v29, %v11546_v34 }
 0xac9   :  { %v3658_v21 = vpop.xlane.xlu1 %3657  ;;  %4010 = vperm.xlu1 %6098, %v3988_v49   ;;  %v4352_v49 = vrot.slane %v9958_v11, %v11516_v52 }
 0xaca   :  { %v4327_v39 = vrot.slane %v3658_v21, %v11487_v15  ;;  %v3859_v7 = vpop.xlane.xlu0 %3858 }
 0xacb   :  { %4005 = vperm.xlu0 %6097, %v3987_v55   ;;  %v4648_v55 = vrot.slane %v9960_v32, %v11488_v56  ;;  %v4658_v10 = vrot.slane %v3859_v7, %v11500_v57  ;;  %v3995_v7 = vld [vmem:[%s10501_s18 + $0x40] sm:$0xff] }
 0xacc   :  { %v4328_v25 = vsel %vm1959_vm6, %v4327_v39, %v4323_v13  ;;  %v4402_v39 = vsel %vm1952_vm15, %v4401_v0, %v4397_v45 }
 0xacd   :  { %v4333_v61 = vsel %vm1966_vm9, %v4332_v53, %v4328_v25  ;;  %v3838_v48 = vpop.xlane.xlu1 %3837  ;;  %4015 = vperm.xlu1 %6098, %v3989_v35   ;;  %v3993_v35 = vld [vmem:[%s10501_s18 + $0x30] sm:$0xff] }
 0xace   :  { %v4338_v40 = vsel %vm1973_vm14, %v4337_v14, %v4333_v61  ;;  %v4623_v54 = vrot.slane %v3838_v48, %v11464_v33  ;;  %v3682_v12 = vpop.xlane.xlu0 %3681  ;;  %v4653_v14 = vrot.slane %v9968_v18, %v11492_v58  ;;  %v4692_v61 = vrot.slane %v9972_v43, %v11449_v6  ;;  %v3996_v43 = vld [vmem:[%s10501_s18 + $0x48] sm:$0xff] }
 0xacf   :  { %v4343_v20 = vsel %vm11582_vm10, %v4342_v36, %v4338_v40  ;;  %v4367_v11 = vrot.slane %v3682_v12, %v11547_v44  ;;  %4020 = vperm.xlu0 %6097, %v3990_v9   ;;  %v3997_v9 = vld [vmem:[%s10501_s18 + $0x50] sm:$0xff]  ;;  %v3999_v12 = vld [vmem:[%s10501_s18 + $0x60] sm:$0xff] }
 0xad0   :  { %v4348_v28 = vsel %vm11583_vm5, %v4347_v22, %v4343_v20  ;;  %v4624_v19 = vsel %vm1931_vm0, %v4623_v54, %v4619_v5  ;;  %v3994_v22 = vld [vmem:[%s10501_s18 + $0x38] sm:$0xff]  ;;  %v4693_v45 = vsel %vm1917_vm11, %v4692_v61, %v4688_v37  ;;  %v4697_v5 = vrot.slane %v9849_v8, %v11457_v51  ;;  %v5082_v37 = vld [vmem:[%s10503_s20 + $0x30] sm:$0xff] }
 0xad1   :  { %v4353_v21 = vsel %vm1994_vm3, %v4352_v49, %v4348_v28  ;;  %v4629_v26 = vsel %vm1938_vm1, %v4628_v4, %v4624_v19  ;;  %v3706_v53 = vpop.xlane.xlu1 %3705  ;;  %4025 = vperm.xlu1 %6098, %v3991_v38   ;;  %v3992_v4 = vld [vmem:[%s10501_s18 + $0x28] sm:$0xff] }
 0xad2   :  { %v4358_v60 = vsel %vm2001_vm7, %v4357_v23, %v4353_v21  ;;  %v4634_v62 = vsel %vm11584_vm8, %v4633_v2, %v4629_v26  ;;  %v4406_v29 = vrot.slane %v3706_v53, %v11487_v15  ;;  %v3862_v36 = vpop.xlane.xlu0 %3861  ;;  %v3998_v21 = vld [vmem:[%s10501_s18 + $0x58] sm:$0xff] }
 0xad3   :  { %v4363_v31 = vsel %vm2008_vm13, %v4362_v50, %v4358_v60  ;;  %v4639_v0 = vsel %vm1952_vm15, %v4638_v47, %v4634_v62  ;;  %v4663_v25 = vrot.slane %v3862_v36, %v11508_v24  ;;  %4030 = vperm.xlu0 %6097, %v3992_v4   ;;  %v4698_v50 = vsel %vm1924_vm12, %v4697_v5, %v4693_v45  ;;  %v4001_v62 = vld [vmem:[%s10501_s18 + $0x70] sm:$0xff]  ;;  %v5077_v36 = vld [vmem:[%s10503_s20 + $0x8] sm:$0xff]  ;;  %v5084_v45 = vld [vmem:[%s10503_s20 + $0x40] sm:$0xff] }
 0xad4   :  { %v4644_v13 = vsel %vm1959_vm6, %v4643_v30, %v4639_v0  ;;  %v4407_v41 = vsel %vm1959_vm6, %v4406_v29, %v4402_v39  ;;  %v4368_v2 = vsel %vm11585_vm4, %v4367_v11, %v4363_v31  ;;  %v4000_v39 = vld [vmem:[%s10501_s18 + $0x68] sm:$0xff]  ;;  %v4002_v31 = vld [vmem:[%s10501_s18 + $0x78] sm:$0xff]  ;;  %vm11587_vm4 = vmmov %vm11582_vm10 }
 0xad5   :  { %v4649_v3 = vsel %vm1966_vm9, %v4648_v55, %v4644_v13  ;;  %v10071_v32 = vsel %vm11586_vm2, %v4368_v2, %v9990_v59  ;;  %v3886_v18 = vpop.xlane.xlu1 %3885  ;;  %4035 = vperm.xlu1 %6098, %v3993_v35   ;;  %v5078_v2 = vld [vmem:[%s10503_s20 + $0x10] sm:$0xff]  ;;  %vm11588_vm2 = vmmov %vm11583_vm5 }
 0xad6   :  { %v4654_v47 = vsel %vm1973_vm14, %v4653_v14, %v4649_v3  ;;  %v3865_v30 = vpop.xlane.xlu0 %3864  ;;  %v4702_v49 = vrot.slane %v3886_v18, %v11464_v33  ;;  %v5076_v14 = vld [vmem:[%s10503_s20] sm:$0xff] }
 0xad7   :  { %v4659_v59 = vsel %vm11582_vm10, %v4658_v10, %v4654_v47  ;;  %v4668_v54 = vrot.slane %v3865_v30, %v11516_v52  ;;  %4040 = vperm.xlu0 %6097, %v3994_v22   ;;  %v5079_v22 = vld [vmem:[%s10503_s20 + $0x18] sm:$0xff]  ;;  %vm11589_vm10 = vcmask 1048512  }
 0xad8   :  { %v4664_v48 = vsel %vm11583_vm5, %v4663_v25, %v4659_v59  ;;  %v4703_v8 = vsel %vm1931_vm0, %v4702_v49, %v4698_v50  ;;  %v5083_v49 = vld [vmem:[%s10503_s20 + $0x38] sm:$0xff]  ;;  %vm11590_vm5 = vcmask 1042434  }
 0xad9   :  { %v3709_v40 = vpop.xlane.xlu1 %3708  ;;  %4045 = vperm.xlu1 %6098, %v3995_v7   ;;  %v10098_v17 = vsel %vm1994_vm3, %v4668_v54, %v4664_v48  ;;  %v5080_v7 = vld [vmem:[%s10503_s20 + $0x20] sm:$0xff] }
 0xada   :  { %v4411_v38 = vrot.slane %v3709_v40, %v11488_v56  ;;  %v10103_v23 = vpop.xlane.xlu0 %3912  ;;  %v5081_v40 = vld [vmem:[%s10503_s20 + $0x28] sm:$0xff] }
 0xadb   :  { %4050 = vperm.xlu0 %6097, %v3996_v43  }
 0xadc   :  { %v4412_v20 = vsel %vm1966_vm9, %v4411_v38, %v4407_v41 }
 0xadd   :  { %v3889_v28 = vpop.xlane.xlu1 %3888  ;;  %4055 = vperm.xlu1 %6098, %v3997_v9  }
 0xade   :  { %v4707_v19 = vrot.slane %v3889_v28, %v11465_v27  ;;  %v10115_v53 = vpop.xlane.xlu0 %3915 }
 0xadf   :  { %4060 = vperm.xlu0 %6097, %v3998_v21  }
 0xae0   :  { %v4708_v26 = vsel %vm1938_vm1, %v4707_v19, %v4703_v8  ;;  %v5086_v19 = vld [vmem:[%s10503_s20 + $0x50] sm:$0xff] }
 0xae1   :  { %v3712_v11 = vpop.xlane.xlu1 %3711  ;;  %4065 = vperm.xlu1 %6098, %v3999_v12   ;;  %v5085_v12 = vld [vmem:[%s10503_s20 + $0x48] sm:$0xff] }
 0xae2   :  { %v4416_v60 = vrot.slane %v3712_v11, %v11492_v58  ;;  %v10125_v35 = vpop.xlane.xlu0 %3873 }
 0xae3   :  { %4070 = vperm.xlu0 %6097, %v4000_v39  }
 0xae4   :  { %v4417_v29 = vsel %vm1973_vm14, %v4416_v60, %v4412_v20  ;;  %v5088_v60 = vld [vmem:[%s10503_s20 + $0x60] sm:$0xff] }
 0xae5   :  { %v3892_v4 = vpop.xlane.xlu1 %3891  ;;  %4075 = vperm.xlu1 %6098, %v4001_v62   ;;  %v5087_v62 = vld [vmem:[%s10503_s20 + $0x58] sm:$0xff] }
 0xae6   :  { %v4712_v55 = vrot.slane %v3892_v4, %v11472_v46  ;;  %v10135_v13 = vpop.xlane.xlu0 %3735 }
 0xae7   :  { %4080 = vperm.xlu0 %6097, %v4002_v31  }
 0xae8   :  { %v4713_v0 = vsel %vm11584_vm8, %v4712_v55, %v4708_v26  ;;  %v5090_v55 = vld [vmem:[%s10503_s20 + $0x70] sm:$0xff]  ;;  %vm11591_vm8 = vmmov %vm11587_vm4 }
 0xae9   :  { %v3715_v10 = vpop.xlane.xlu1 %3714  ;;  %5094 = vperm.xlu1 %6098, %v5076_v14   ;;  %v5089_v14 = vld [vmem:[%s10503_s20 + $0x68] sm:$0xff] }
 0xaea   :  { %v4421_v41 = vrot.slane %v3715_v10, %v11500_v57  ;;  %v10145_v18 = vpop.xlane.xlu0 %3738  ;;  %v5334_v10 = vld [vmem:[#allocation2] sm:$0x1] }
 0xaeb   :  { %5099 = vperm.xlu0 %6097, %v5077_v36  }
 0xaec   :  { %v4422_v3 = vsel %vm11587_vm4, %v4421_v41, %v4417_v29  ;;  %v5091_v41 = vld [vmem:[%s10503_s20 + $0x78] sm:$0xff]  ;;  %vm11592_vm4 = vmmov %vm11588_vm2 }
 0xaed   :  { %v3895_v25 = vpop.xlane.xlu1 %3894  ;;  %5104 = vperm.xlu1 %6098, %v5078_v2  }
 0xaee   :  { %v4717_v47 = vrot.slane %v3895_v25, %v11480_v1  ;;  %v10155_v59 = vpop.xlane.xlu0 %3741 }
 0xaef   :  { %5109 = vperm.xlu0 %6097, %v5079_v22  }
 0xaf0   :  { %v4718_v61 = vsel %vm1952_vm15, %v4717_v47, %v4713_v0 }
 0xaf1   :  { %v3718_v48 = vpop.xlane.xlu1 %3717  ;;  %5114 = vperm.xlu1 %6098, %v5080_v7  }
 0xaf2   :  { %v4426_v30 = vrot.slane %v3718_v48, %v11508_v24  ;;  %v10165_v38 = vpop.xlane.xlu0 %3927 }
 0xaf3   :  { %5119 = vperm.xlu0 %6097, %v5081_v40  }
 0xaf4   :  { %v4427_v54 = vsel %vm11588_vm2, %v4426_v30, %v4422_v3  ;;  %vm11593_vm2 = vmmov %vm11589_vm10 }
 0xaf5   :  { %v3898_v9 = vpop.xlane.xlu1 %3897  ;;  %5124 = vperm.xlu1 %6098, %v5082_v37  }
 0xaf6   :  { %v4722_v43 = vrot.slane %v3898_v9, %v11487_v15  ;;  %v10175_v20 = vpop.xlane.xlu0 %3750 }
 0xaf7   :  { %5129 = vperm.xlu0 %6097, %v5083_v49  }
 0xaf8   :  { %v4723_v5 = vsel %vm1959_vm6, %v4722_v43, %v4718_v61 }
 0xaf9   :  { %v3721_v28 = vpop.xlane.xlu1 %3720  ;;  %5134 = vperm.xlu1 %6098, %v5084_v45  }
 0xafa   :  { %v4431_v50 = vrot.slane %v3721_v28, %v11516_v52  ;;  %v10185_v8 = vpop.xlane.xlu0 %3930 }
 0xafb   :  { %5139 = vperm.xlu0 %6097, %v5085_v12   ;;  %v4752_v12 = vrot.slane %v10115_v53, %v11545_v16 }
 0xafc   :  { %v4432_v21 = vsel %vm1994_vm3, %v4431_v50, %v4427_v54  ;;  %v4747_v50 = vrot.slane %v10103_v23, %v11516_v52 }
 0xafd   :  { %v3901_v26 = vpop.xlane.xlu1 %3900  ;;  %5144 = vperm.xlu1 %6098, %v5086_v19  }
 0xafe   :  { %v4727_v11 = vrot.slane %v3901_v26, %v11488_v56  ;;  %v10195_v29 = vpop.xlane.xlu0 %3753 }
 0xaff   :  { %5149 = vperm.xlu0 %6097, %v5087_v62  }
 0xb00   :  { %v4728_v39 = vsel %vm1966_vm9, %v4727_v11, %v4723_v5 }
 0xb01   :  { %v3724_v4 = vpop.xlane.xlu1 %3723  ;;  %5154 = vperm.xlu1 %6098, %v5088_v60  }
 0xb02   :  { %v10203_v31 = vpop.xlane.xlu0 %3933  ;;  %v4436_v47 = vrot.slane %v3724_v4, %v11545_v16 }
 0xb03   :  { %5159 = vperm.xlu0 %6097, %v5089_v14  }
 0xb04   :  { %v4437_v48 = vsel %vm2001_vm7, %v4436_v47, %v4432_v21 }
 0xb05   :  { %v3904_v0 = vpop.xlane.xlu1 %3903  ;;  %5164 = vperm.xlu1 %6098, %v5090_v55   ;;  %v4683_v55 = vrot.slane %v10125_v35, %v11547_v44  ;;  %v4455_v35 = vrot.slane %v10135_v13, %v11449_v6 }
 0xb06   :  { %v10208_v2 = vpop.xlane.xlu0 %3756  ;;  %v4732_v30 = vrot.slane %v3904_v0, %v11492_v58 }
 0xb07   :  { %5169 = vperm.xlu0 %6097, %v5091_v41  }
 0xb08   :  { %v4733_v5 = vsel %vm1973_vm14, %v4732_v30, %v4728_v39 }
 0xb09   :  { %v3727_v36 = vpop.xlane.xlu1 %3726  ;;  %5337 = vperm.xlu1 %6098, %v5334_v10  }
 0xb0a   :  { %v10210_v3 = vpop.xlane.xlu0 %3936  ;;  %v4441_v7 = vrot.slane %v3727_v36, %v11546_v34 }
 0xb0c   :  { %v4442_v40 = vsel %vm2008_vm13, %v4441_v7, %v4437_v48  ;;  %v4465_v48 = vrot.slane %v10155_v59, %v11464_v33  ;;  %v4485_v59 = vrot.slane %v10195_v29, %v11487_v15 }
 0xb0d   :  { %v3907_v25 = vpop.xlane.xlu1 %3906 }
 0xb0e   :  { %v10214_v22 = vpop.xlane.xlu0 %3759  ;;  %v4737_v54 = vrot.slane %v3907_v25, %v11500_v57 }
 0xb10   :  { %v4738_v19 = vsel %vm11591_vm8, %v4737_v54, %v4733_v5 }
 0xb11   :  { %v3730_v61 = vpop.xlane.xlu1 %3729 }
 0xb12   :  { %v4446_v37 = vrot.slane %v3730_v61, %v11547_v44  ;;  %v10222_v43 = vpop.xlane.xlu0 %3939 }
 0xb14   :  { %v4447_v9 = vsel %vm11589_vm10, %v4446_v37, %v4442_v40  ;;  %vm11594_vm10 = vcmask 392512  }
 0xb15   :  { %v10226_v45 = vsel %vm11590_vm5, %v4447_v9, %v10071_v32  ;;  %v3910_v49 = vpop.xlane.xlu1 %3909  ;;  %vm11595_vm5 = vmmov %vm11591_vm8 }
 0xb16   :  { %v4742_v28 = vrot.slane %v3910_v49, %v11508_v24  ;;  %v3763_v26 = vpop.xlane.xlu0 %3762  ;;  %vm11596_vm8 = vmmov %vm11592_vm4 }
 0xb18   :  { %v4743_v21 = vsel %vm11592_vm4, %v4742_v28, %v4738_v19  ;;  %vm11602_vm4 = vmmov %vm11595_vm5 }
 0xb19   :  { %v4748_v11 = vsel %vm1994_vm3, %v4747_v50, %v4743_v21  ;;  %v3868_v32 = vpop.xlane.xlu1 %3867  ;;  %v4771_v21 = vrot.slane %v10165_v38, %v11449_v6  ;;  %v4786_v6 = vrot.slane %v10210_v3, %v11465_v27  ;;  %v4500_v38 = vrot.slane %v3763_v26, %v11500_v57 }
 0xb1a   :  { %v10238_v60 = vsel %vm2001_vm7, %v4752_v12, %v4748_v11  ;;  %v4673_v62 = vrot.slane %v3868_v32, %v11545_v16  ;;  %v10241_v39 = vpop.xlane.xlu0 %3942  ;;  %v4490_v11 = vrot.slane %v10208_v2, %v11488_v56 }
 0xb1b   :  { %v4796_v26 = vrot.slane %v10241_v39, %v11480_v1 }
 0xb1c   :  { %v4674_v53 = vsel %vm2001_vm7, %v4673_v62, %v10098_v17  ;;  %v4460_v17 = vrot.slane %v10145_v18, %v11457_v51  ;;  %v4480_v18 = vrot.slane %v10175_v20, %v11480_v1  ;;  %v4776_v20 = vrot.slane %v10185_v8, %v11457_v51 }
 0xb1d   :  { %v3871_v4 = vpop.xlane.xlu1 %3870  ;;  %v4791_v51 = vrot.slane %v10222_v43, %v11472_v46 }
 0xb1e   :  { %v4678_v23 = vrot.slane %v3871_v4, %v11546_v34  ;;  %v3766_v0 = vpop.xlane.xlu0 %3765  ;;  %v4495_v4 = vrot.slane %v10214_v22, %v11492_v58 }
 0xb1f   :  { %v4505_v8 = vrot.slane %v3766_v0, %v11508_v24 }
 0xb20   :  { %v4679_v14 = vsel %vm2008_vm13, %v4678_v23, %v4674_v53 }
 0xb21   :  { %v10250_v10 = vsel %vm11593_vm2, %v4683_v55, %v4679_v14  ;;  %v10252_v41 = vpop.xlane.xlu1 %3918  ;;  %v4781_v55 = vrot.slane %v10203_v31, %v11464_v33 }
 0xb22   :  { %v10254_v36 = vpop.xlane.xlu0 %3945 }
 0xb25   :  { %v10256_v25 = vpop.xlane.xlu1 %3921 }
 0xb26   :  { %v3769_v47 = vpop.xlane.xlu0 %3768 }
 0xb27   :  { %v4510_v14 = vrot.slane %v3769_v47, %v11516_v52  ;;  %v4801_v47 = vrot.slane %v10254_v36, %v11487_v15 }
 0xb29   :  { %v3733_v7 = vpop.xlane.xlu1 %3732 }
 0xb2a   :  { %v4451_v61 = vrot.slane %v3733_v7, %v11450_v63  ;;  %v3949_v37 = vpop.xlane.xlu0 %3948  ;;  %v4757_v7 = vrot.slane %v10252_v41, %v11546_v34 }
 0xb2c   :  { %v4456_v30 = vsel %vm1917_vm11, %v4455_v35, %v4451_v61 }
 0xb2d   :  { %v4461_v40 = vsel %vm1924_vm12, %v4460_v17, %v4456_v30  ;;  %v3745_v54 = vpop.xlane.xlu1 %3744  ;;  %v4762_v17 = vrot.slane %v10256_v25, %v11547_v44 }
 0xb2e   :  { %v4466_v9 = vsel %vm1931_vm0, %v4465_v48, %v4461_v40  ;;  %v4470_v49 = vrot.slane %v3745_v54, %v11465_v27  ;;  %v3772_v5 = vpop.xlane.xlu0 %3771  ;;  %v4806_v40 = vrot.slane %v3949_v37, %v11488_v56  ;;  %v4758_v56 = vsel %vm2008_vm13, %v4757_v7, %v10238_v60 }
 0xb30   :  { %v4471_v50 = vsel %vm1938_vm1, %v4470_v49, %v4466_v9 }
 0xb31   :  { %v3748_v13 = vpop.xlane.xlu1 %3747 }
 0xb32   :  { %v4475_v28 = vrot.slane %v3748_v13, %v11472_v46  ;;  %v3952_v12 = vpop.xlane.xlu0 %3951  ;;  %v4515_v46 = vrot.slane %v3772_v5, %v11545_v16 }
 0xb33   :  { %v4811_v9 = vrot.slane %v3952_v12, %v11492_v58 }
 0xb34   :  { %v4476_v19 = vsel %vm11594_vm10, %v4475_v28, %v4471_v50 }
 0xb35   :  { %v4481_v32 = vsel %vm1952_vm15, %v4480_v18, %v4476_v19  ;;  %v3925_v62 = vpop.xlane.xlu1 %3924 }
 0xb36   :  { %v4486_v29 = vsel %vm1959_vm6, %v4485_v59, %v4481_v32  ;;  %v4767_v23 = vrot.slane %v3925_v62, %v11450_v63  ;;  %v3775_v63 = vpop.xlane.xlu0 %3774 }
 0xb37   :  { %v4491_v2 = vsel %vm1966_vm9, %v4490_v11, %v4486_v29  ;;  %v4520_v31 = vrot.slane %v3775_v63, %v11546_v34  ;;  %v3975_v29 = vld [vmem:[%s10500_s17 + $0x20] sm:$0xff]  ;;  %v3985_v63 = vld [vmem:[%s10500_s17 + $0x70] sm:$0xff] }
 0xb38   :  { %v4496_v22 = vsel %vm1973_vm14, %v4495_v4, %v4491_v2  ;;  %v4772_v53 = vsel %vm1917_vm11, %v4771_v21, %v4767_v23  ;;  %vm11597_vm11 = vmmov %vm11594_vm10  ;;  %vm11606_vm10 = vcmask 1047559   ;;  %v3976_v23 = vld [vmem:[%s10500_s17 + $0x28] sm:$0xff] }
 0xb39   :  { %v4777_v33 = vsel %vm1924_vm12, %v4776_v20, %v4772_v53  ;;  %v4501_v27 = vsel %vm11595_vm5, %v4500_v38, %v4496_v22  ;;  %v3778_v3 = vpop.xlane.xlu1 %3777  ;;  %vm11598_vm12 = vmmov %vm11593_vm2  ;;  %v3979_v38 = vld [vmem:[%s10500_s17 + $0x40] sm:$0xff]  ;;  %v3980_v2 = vld [vmem:[%s10500_s17 + $0x48] sm:$0xff] }
 0xb3a   :  { %v4782_v43 = vsel %vm1931_vm0, %v4781_v55, %v4777_v33  ;;  %v4506_v0 = vsel %vm11596_vm8, %v4505_v8, %v4501_v27  ;;  %v4525_v48 = vrot.slane %v3778_v3, %v11547_v44  ;;  %v3955_v30 = vpop.xlane.xlu0 %3954  ;;  %vm11599_vm0 = vcmask 1043459   ;;  %v3977_v55 = vld [vmem:[%s10500_s17 + $0x30] sm:$0xff]  ;;  %v3982_v8 = vld [vmem:[%s10500_s17 + $0x58] sm:$0xff]  ;;  %v3983_v22 = vld [vmem:[%s10500_s17 + $0x60] sm:$0xff] }
 0xb3b   :  { %v4787_v35 = vsel %vm1938_vm1, %v4786_v6, %v4782_v43  ;;  %v4511_v61 = vsel %vm1994_vm3, %v4510_v14, %v4506_v0  ;;  %v4816_v36 = vrot.slane %v3955_v30, %v11500_v57  ;;  %vm11600_vm1 = vcmask 1044484   ;;  %v3978_v6 = vld [vmem:[%s10500_s17 + $0x38] sm:$0xff]  ;;  %v3984_v53 = vld [vmem:[%s10500_s17 + $0x68] sm:$0xff]  ;;  %v5060_v27 = vld [vmem:[%s10502_s19] sm:$0xff] }
 0xb3c   :  { %v4792_v1 = vsel %vm11597_vm11, %v4791_v51, %v4787_v35  ;;  %v4516_v39 = vsel %vm2001_vm7, %v4515_v46, %v4511_v61  ;;  %v3981_v51 = vld [vmem:[%s10500_s17 + $0x50] sm:$0xff]  ;;  %v3986_v14 = vld [vmem:[%s10500_s17 + $0x78] sm:$0xff]  ;;  %v11622_v33 = vmov 0.0   ;;  %5796 = vmatprep.mubr.f32.mxu1 %v5060_v27 }
 0xb3d   :  { %v4521_v41 = vsel %vm2008_vm13, %v4520_v31, %v4516_v39  ;;  %v4797_v15 = vsel %vm1952_vm15, %v4796_v26, %v4792_v1  ;;  %v3958_v54 = vpop.xlane.xlu1 %3957  ;;  %vm11601_vm15 = vmmov %vm11593_vm2 }
 0xb3e   :  { %v4526_v25 = vsel %vm11598_vm12, %v4525_v48, %v4521_v41  ;;  %v4802_v49 = vsel %vm1959_vm6, %v4801_v47, %v4797_v15  ;;  %v4821_v28 = vrot.slane %v3958_v54, %v11508_v24  ;;  %v3964_v57 = vpop.xlane.xlu0 %3963  ;;  %v4763_v18 = vsel %vm11601_vm15, %v4762_v17, %v4758_v56 }
 0xb3f   :  { %v4845_v5 = vsel %vm11599_vm0, %v4526_v25, %v10226_v45  ;;  %v4807_v13 = vsel %vm1966_vm9, %v4806_v40, %v4802_v49  ;;  %vm11603_vm6 = vcmask 1045509   ;;  %vm11604_vm9 = vmmov %vm11596_vm8  ;;  %v4831_v60 = vrot.slane %v3964_v57, %v11545_v16 }
 0xb40   :  { %v4812_v37 = vsel %vm1973_vm14, %v4811_v9, %v4807_v13  ;;  %v4846_v58 = vsel %vm11600_vm1, %v9889_v42, %v4845_v5  ;;  %vm11605_vm14 = vcmask 1046534  }
 0xb41   :  { %v4817_v50 = vsel %vm11602_vm4, %v4816_v36, %v4812_v37  ;;  %v3961_v59 = vpop.xlane.xlu1 %3960  ;;  %v4847_v45 = vsel %vm11603_vm6, %v10250_v10, %v4846_v58 }
 0xb42   :  { %v4822_v19 = vsel %vm11604_vm9, %v4821_v28, %v4817_v50  ;;  %v4826_v12 = vrot.slane %v3961_v59, %v11516_v52  ;;  %v4848_v24 = vsel %vm11605_vm14, %v4763_v18, %v4847_v45  ;;  %v3967_v11 = vpop.xlane.xlu0 %3966  ;;  %v3972_v52 = vld [vmem:[%s10500_s17 + $0x8] sm:$0xff] }
 0xb43   :  { %v4836_v42 = vrot.slane %v3967_v11, %v11546_v34  ;;  %v3973_v34 = vld [vmem:[%s10500_s17 + $0x10] sm:$0xff] }
 0xb44   :  { %v4827_v21 = vsel %vm1994_vm3, %v4826_v12, %v4822_v19  ;;  %vm11607_vm3 = vcmask 64512  }
 0xb45   :  { %v3970_v32 = vpop.xlane.xlu1 %3969  ;;  %v4832_v62 = vsel %vm2001_vm7, %v4831_v60, %v4827_v21  ;;  %vm11608_vm7 = vmmov %vm11607_vm3 }
 0xb46   :  { %v4841_v20 = vrot.slane %v3970_v32, %v11547_v44  ;;  %v4837_v10 = vsel %vm2008_vm13, %v4836_v42, %v4832_v62  ;;  %v3974_v44 = vld [vmem:[%s10500_s17 + $0x18] sm:$0xff]  ;;  %vm11609_vm13 = vmmov %vm11607_vm3 }
 0xb47   :  { %vm11610_vm5 = vmmov %vm11607_vm3 }
 0xb48   :  { %v4842_v4 = vsel %vm11593_vm2, %v4841_v20, %v4837_v10  ;;  %vm11611_vm8 = vmmov %vm11607_vm3 }
 0xb49   :  { %v4849_v16 = vsel %vm11606_vm10, %v4842_v4, %v4848_v24  ;;  %vm11612_vm11 = vmmov %vm11607_vm3  ;;  %vm11623_vm10 = vmmov 0   ;;  %v4011_v3 = vpop.permute.xlu1 %4010 }
 0xb4a   :  { %5738 = vmatprep.subr.mxu0 %v4849_v16  ;;  %vm11613_vm12 = vmmov %vm11607_vm3  ;;  %v4006_v31 = vpop.permute.xlu0 %4005 }
 0xb4b   :  { %5739 = vmatpush3.msra.mxu0 %v4849_v16  ;;  %vm11614_vm0 = vmmov %vm11607_vm3 }
 0xb4c   :  { %5741 = vmatmul.mubr.msk.f32.vlgmr.msra.gmra.mrb[30].mxu0 %vm11607_vm3, %v3972_v52  ;;  %vm11615_vm1 = vmmov %vm11614_vm0 }
 0xb4d   :  { %5743 = vmatprep.mubr.msk.f32.mxu0 %vm11608_vm7, %v3973_v34  ;;  %vm11616_vm15 = vmmov %vm11614_vm0  ;;  %v4016_v46 = vpop.permute.xlu1 %4015 }
 0xb4e   :  { %vm11617_vm4 = vmmov %vm11614_vm0  ;;  %v4021_v26 = vpop.permute.xlu0 %4020 }
 0xb4f   :  { %vm11618_vm6 = vmmov %vm11614_vm0 }
 0xb50   :  { %5744 = vmatmul.mubr.msk.f32.gmra.mrb[32].mxu0 %vm11609_vm13, %v3974_v44  ;;  %vm11619_vm9 = vmmov %vm11614_vm0 }
 0xb51   :  { %5746 = vmatprep.mubr.msk.f32.mxu0 %vm11610_vm5, %v3975_v29  ;;  %vm11620_vm14 = vmmov %vm11614_vm0  ;;  %v4026_v0 = vpop.permute.xlu1 %4025 }
 0xb52   :  { %vm11621_vm2 = vmmov %vm11614_vm0  ;;  %v4031_v43 = vpop.permute.xlu0 %4030 }
 0xb54   :  { %5747 = vmatmul.mubr.msk.f32.gmra.mrb[34].mxu0 %vm11611_vm8, %v3976_v23 }
 0xb55   :  { %5749 = vmatprep.mubr.msk.f32.mxu0 %vm11612_vm11, %v3977_v55  ;;  %v4036_v30 = vpop.permute.xlu1 %4035 }
 0xb56   :  { %v4041_v1 = vpop.permute.xlu0 %4040 }
 0xb58   :  { %5750 = vmatmul.mubr.msk.f32.gmra.mrb[36].mxu0 %vm11613_vm12, %v3978_v6 }
 0xb59   :  { %5752 = vmatprep.mubr.msk.f32.mxu0 %vm11614_vm0, %v3979_v38  ;;  %v4046_v28 = vpop.permute.xlu1 %4045 }
 0xb5a   :  { %v4051_v13 = vpop.permute.xlu0 %4050 }
 0xb5c   :  { %5753 = vmatmul.mubr.msk.f32.gmra.mrb[38].mxu0 %vm11615_vm1, %v3980_v2 }
 0xb5d   :  { %5755 = vmatprep.mubr.msk.f32.mxu0 %vm11616_vm15, %v3981_v51  ;;  %v4056_v11 = vpop.permute.xlu1 %4055 }
 0xb5e   :  { %v4061_v12 = vpop.permute.xlu0 %4060 }
 0xb60   :  { %5756 = vmatmul.mubr.msk.f32.gmra.mrb[40].mxu0 %vm11617_vm4, %v3982_v8 }
 0xb61   :  { %5758 = vmatprep.mubr.msk.f32.mxu0 %vm11618_vm6, %v3983_v22  ;;  %v4066_v55 = vpop.permute.xlu1 %4065 }
 0xb62   :  { %v4071_v44 = vpop.permute.xlu0 %4070 }
 0xb64   :  { %5759 = vmatmul.mubr.msk.f32.gmra.mrb[42].mxu0 %vm11619_vm9, %v3984_v53 }
 0xb65   :  { %5761 = vmatprep.mubr.msk.f32.mxu0 %vm11620_vm14, %v3985_v63 }
 0xb68   :  { %5762 = vmatmul.mubr.msk.f32.gmra.mrb[44].mxu0 %vm11621_vm2, %v3986_v14  ;;  %v4081_v14 = vpop.permute.xlu0 %4080 }
 0xb69   :  { %5852 = vmatprep.mubr.msk.f32.mxu0 %vm11623_vm10, %v11622_v33 }
 0xc1f   :  { %v5742_v7 = vpop.f32.mrb[30].mxu0 }
 0xc20   :  { %v4971_v47 = vadd.f32 %v5742_v7, %v4011_v3  ;;  %v4965_v35 = vpop.f32.mrb[31].mxu0 }
 0xc21   :  { %v4966_v61 = vadd.f32 %v4965_v35, %v4006_v31  ;;  %v4076_v31 = vpop.permute.xlu1 %4075  ;;  %v5061_v35 = vld [vmem:[%s10502_s19 + $0x8] sm:$0xff] }
 0xc22   :  { %v5045_v17 = vmax.f32 %v4971_v47, 0.0 }
 0xc23   :  { %v5044_v39 = vmax.f32 %v4966_v61, 0.0  ;;  %v5745_v48 = vpop.f32.mrb[32].mxu0  ;;  %v5062_v61 = vld [vmem:[%s10502_s19 + $0x10] sm:$0xff] }
 0xc24   :  { %v4981_v40 = vadd.f32 %v5745_v48, %v4021_v26  ;;  %v4975_v41 = vpop.f32.mrb[33].mxu0  ;;  %v5066_v48 = vld [vmem:[%s10502_s19 + $0x30] sm:$0xff] }
 0xc25   :  { %v6015_v15 = vpack.c.bf16 %v5045_v17, %v5044_v39  ;;  %v4976_v36 = vadd.f32 %v4975_v41, %v4016_v46  ;;  %v5063_v17 = vld [vmem:[%s10502_s19 + $0x18] sm:$0xff]  ;;  %v5065_v39 = vld [vmem:[%s10502_s19 + $0x28] sm:$0xff] }
 0xc26   :  { %v5047_v54 = vmax.f32 %v4981_v40, 0.0  ;;  %v5068_v40 = vld [vmem:[%s10502_s19 + $0x40] sm:$0xff]  ;;  %v5069_v41 = vld [vmem:[%s10502_s19 + $0x48] sm:$0xff] }
 0xc27   :  { %v5046_v9 = vmax.f32 %v4976_v36, 0.0  ;;  %v5748_v25 = vpop.f32.mrb[34].mxu0  ;;  %6016 = vmatprep.subr.bf16.mxu1 %v6015_v15  ;;  %v5071_v36 = vld [vmem:[%s10502_s19 + $0x58] sm:$0xff] }
 0xc28   :  { %v4991_v49 = vadd.f32 %v5748_v25, %v4031_v43  ;;  %v4985_v5 = vpop.f32.mrb[35].mxu0  ;;  %6018 = vmatpush3.bf16.msra.mxu1 %v6015_v15  ;;  %v5070_v15 = vld [vmem:[%s10502_s19 + $0x50] sm:$0xff] }
 0xc29   :  { %v6019_v56 = vpack.c.bf16 %v5047_v54, %v5046_v9  ;;  %v4986_v37 = vadd.f32 %v4985_v5, %v4026_v0  ;;  %v5072_v54 = vld [vmem:[%s10502_s19 + $0x60] sm:$0xff]  ;;  %v5073_v9 = vld [vmem:[%s10502_s19 + $0x68] sm:$0xff]  ;;  %v5074_v25 = vld [vmem:[%s10502_s19 + $0x70] sm:$0xff]  ;;  %v6129_v5 = vmov 0.0|0.0  }
 0xc2a   :  { %v5049_v57 = vmax.f32 %v4991_v49, 0.0  ;;  %v5075_v49 = vld [vmem:[%s10502_s19 + $0x78] sm:$0xff]  ;;  %6047 = vmatprep.subr.bf16.mxu0 %v6129_v5 }
 0xc2b   :  { %v5048_v58 = vmax.f32 %v4986_v37, 0.0  ;;  %v5751_v18 = vpop.f32.mrb[36].mxu0  ;;  %6020 = vmatprep.subr.bf16.mxu1 %v6019_v56 }
 0xc2c   :  { %v5001_v50 = vadd.f32 %v5751_v18, %v4041_v1  ;;  %v4995_v59 = vpop.f32.mrb[37].mxu0  ;;  %6022 = vmatpush3.bf16.msra.mxu1 %v6019_v56  ;;  %v5064_v1 = vld [vmem:[%s10502_s19 + $0x20] sm:$0xff]  ;;  %v5095_v56 = vpop.permute.xlu1 %5094 }
 0xc2d   :  { %v6023_v45 = vpack.c.bf16 %v5049_v57, %v5048_v58  ;;  %v4996_v19 = vadd.f32 %v4995_v59, %v4036_v30  ;;  %v5067_v30 = vld [vmem:[%s10502_s19 + $0x38] sm:$0xff] }
 0xc2e   :  { %v5051_v60 = vmax.f32 %v5001_v50, 0.0 }
 0xc2f   :  { %v5050_v24 = vmax.f32 %v4996_v19, 0.0  ;;  %v5754_v21 = vpop.f32.mrb[38].mxu0  ;;  %6024 = vmatprep.subr.bf16.mxu1 %v6023_v45 }
 0xc30   :  { %v5011_v42 = vadd.f32 %v5754_v21, %v4051_v13  ;;  %v5005_v32 = vpop.f32.mrb[39].mxu0  ;;  %6026 = vmatpush3.bf16.msra.mxu1 %v6023_v45  ;;  %v5100_v13 = vpop.permute.xlu0 %5099 }
 0xc31   :  { %v6027_v62 = vpack.c.bf16 %v5051_v60, %v5050_v24  ;;  %v5006_v20 = vadd.f32 %v5005_v32, %v4046_v28  ;;  %v5105_v28 = vpop.permute.xlu1 %5104 }
 0xc32   :  { %v5053_v10 = vmax.f32 %v5011_v42, 0.0 }
 0xc33   :  { %v5052_v4 = vmax.f32 %v5006_v20, 0.0  ;;  %v5757_v16 = vpop.f32.mrb[40].mxu0  ;;  %6028 = vmatprep.subr.bf16.mxu1 %v6027_v62 }
 0xc34   :  { %v5021_v52 = vadd.f32 %v5757_v16, %v4061_v12  ;;  %v5015_v34 = vpop.f32.mrb[41].mxu0  ;;  %6030 = vmatpush3.bf16.msra.mxu1 %v6027_v62  ;;  %v5110_v37 = vpop.permute.xlu0 %5109 }
 0xc35   :  { %v6031_v29 = vpack.c.bf16 %v5053_v10, %v5052_v4  ;;  %v5016_v23 = vadd.f32 %v5015_v34, %v4056_v11  ;;  %v5115_v58 = vpop.permute.xlu1 %5114 }
 0xc36   :  { %v5055_v6 = vmax.f32 %v5021_v52, 0.0 }
 0xc37   :  { %v5054_v38 = vmax.f32 %v5016_v23, 0.0  ;;  %v5760_v2 = vpop.f32.mrb[42].mxu0  ;;  %6032 = vmatprep.subr.bf16.mxu1 %v6031_v29 }
 0xc38   :  { %v5031_v51 = vadd.f32 %v5760_v2, %v4071_v44  ;;  %v5025_v8 = vpop.f32.mrb[43].mxu0  ;;  %6034 = vmatpush3.bf16.msra.mxu1 %v6031_v29  ;;  %v5120_v57 = vpop.permute.xlu0 %5119 }
 0xc39   :  { %v6035_v22 = vpack.c.bf16 %v5055_v6, %v5054_v38  ;;  %v5026_v53 = vadd.f32 %v5025_v8, %v4066_v55  ;;  %v5125_v21 = vpop.permute.xlu1 %5124 }
 0xc3a   :  { %v5057_v63 = vmax.f32 %v5031_v51, 0.0 }
 0xc3b   :  { %v5056_v33 = vmax.f32 %v5026_v53, 0.0  ;;  %v5763_v27 = vpop.f32.mrb[44].mxu0  ;;  %6036 = vmatprep.subr.bf16.mxu1 %v6035_v22 }
 0xc3c   :  { %v5041_v3 = vadd.f32 %v5763_v27, %v4081_v14  ;;  %v5035_v26 = vpop.f32.mrb[45].mxu0  ;;  %6038 = vmatpush3.bf16.msra.mxu1 %v6035_v22  ;;  %v5130_v60 = vpop.permute.xlu0 %5129 }
 0xc3d   :  { %v6039_v46 = vpack.c.bf16 %v5057_v63, %v5056_v33  ;;  %v5036_v43 = vadd.f32 %v5035_v26, %v4076_v31  ;;  %v5135_v23 = vpop.permute.xlu1 %5134 }
 0xc3e   :  { %v5059_v0 = vmax.f32 %v5041_v3, 0.0 }
 0xc3f   :  { %v5058_v7 = vmax.f32 %v5036_v43, 0.0  ;;  %6040 = vmatprep.subr.bf16.mxu1 %v6039_v46 }
 0xc40   :  { %6042 = vmatpush3.bf16.msra.mxu1 %v6039_v46  ;;  %v5140_v34 = vpop.permute.xlu0 %5139 }
 0xc41   :  { %v6043_v47 = vpack.c.bf16 %v5059_v0, %v5058_v7  ;;  %v5145_v27 = vpop.permute.xlu1 %5144 }
 0xc43   :  { %6044 = vmatprep.subr.bf16.mxu1 %v6043_v47 }
 0xc44   :  { %6046 = vmatpush3.bf16.msra.mxu1 %v6043_v47  ;;  %v5150_v63 = vpop.permute.xlu0 %5149 }
 0xc47   :  { %5797 = vmatmul.mubr.f32.vlgmr.msra.gmra.mrb[20].mxu1 %v5061_v35 }
 0xc48   :  { %5799 = vmatprep.mubr.f32.mxu1 %v5062_v61  ;;  %v5160_v61 = vpop.permute.xlu0 %5159 }
 0xc4b   :  { %5800 = vmatmul.mubr.f32.gmra.mrb[22].mxu1 %v5063_v17 }
 0xc4c   :  { %5802 = vmatprep.mubr.f32.mxu1 %v5064_v1 }
 0xc4f   :  { %5803 = vmatmul.mubr.f32.gmra.mrb[24].mxu1 %v5065_v39  ;;  %v5155_v39 = vpop.permute.xlu1 %5154 }
 0xc50   :  { %5805 = vmatprep.mubr.f32.mxu1 %v5066_v48 }
 0xc53   :  { %5806 = vmatmul.mubr.f32.gmra.mrb[26].mxu1 %v5067_v30 }
 0xc54   :  { %5808 = vmatprep.mubr.f32.mxu1 %v5068_v40 }
 0xc57   :  { %5809 = vmatmul.mubr.f32.gmra.mrb[28].mxu1 %v5069_v41 }
 0xc58   :  { %5811 = vmatprep.mubr.f32.mxu1 %v5070_v15 }
 0xc5b   :  { %5812 = vmatmul.mubr.f32.gmra.mrb[30].mxu1 %v5071_v36 }
 0xc5c   :  { %5814 = vmatprep.mubr.f32.mxu1 %v5072_v54 }
 0xc5f   :  { %5815 = vmatmul.mubr.f32.gmra.mrb[32].mxu1 %v5073_v9 }
 0xc60   :  { %5817 = vmatprep.mubr.f32.mxu1 %v5074_v25  ;;  %v5170_v25 = vpop.permute.xlu0 %5169 }
 0xc63   :  { %5818 = vmatmul.mubr.f32.gmra.mrb[34].mxu1 %v5075_v49 }
 0xd1a   :  { %v5798_v18 = vpop.f32.mrb[20].mxu1 }
 0xd1b   :  { %v5244_v50 = vadd.f32 %v5798_v18, %v5100_v13  ;;  %v5238_v59 = vpop.f32.mrb[21].mxu1 }
 0xd1c   :  { %v5239_v45 = vadd.f32 %v5238_v59, %v5095_v56  ;;  %v5165_v56 = vpop.permute.xlu1 %5164 }
 0xd1d   :  { %v5318_v19 = vmax.f32 %v5244_v50, 0.0 }
 0xd1e   :  { %v5317_v12 = vmax.f32 %v5239_v45, 0.0  ;;  %v5801_v24 = vpop.f32.mrb[22].mxu1  ;;  %v5333_v45 = vld [vmem:[%s10504_s21] sm:$0x1] }
 0xd1f   :  { %v5254_v11 = vadd.f32 %v5801_v24, %v5110_v37  ;;  %v5248_v42 = vpop.f32.mrb[23].mxu1 }
 0xd20   :  { %v6048_v32 = vpack.c.bf16 %v5318_v19, %v5317_v12  ;;  %v5249_v62 = vadd.f32 %v5248_v42, %v5105_v28  ;;  %v5338_v19 = vpop.permute.xlu1 %5337 }
 0xd21   :  { %v5320_v20 = vmax.f32 %v5254_v11, 0.0 }
 0xd22   :  { %v5319_v10 = vmax.f32 %v5249_v62, 0.0  ;;  %v5804_v4 = vpop.f32.mrb[24].mxu1  ;;  %6049 = vmatpush3.bf16.msra.mxu0 %v6048_v32 }
 0xd23   :  { %v5264_v16 = vadd.f32 %v5804_v4, %v5120_v57  ;;  %v5258_v52 = vpop.f32.mrb[25].mxu1  ;;  %6050 = vmatprep.subr.bf16.mxu0 %v6129_v5 }
 0xd24   :  { %v6051_v44 = vpack.c.bf16 %v5320_v20, %v5319_v10  ;;  %v5259_v29 = vadd.f32 %v5258_v52, %v5115_v58 }
 0xd25   :  { %v5322_v55 = vmax.f32 %v5264_v16, 0.0 }
 0xd26   :  { %v5321_v6 = vmax.f32 %v5259_v29, 0.0  ;;  %v5807_v38 = vpop.f32.mrb[26].mxu1  ;;  %6052 = vmatpush3.bf16.msra.mxu0 %v6051_v44 }
 0xd27   :  { %v5274_v2 = vadd.f32 %v5807_v38, %v5130_v60  ;;  %v5268_v51 = vpop.f32.mrb[27].mxu1  ;;  %6053 = vmatprep.subr.bf16.mxu0 %v6129_v5  ;;  %v11624_v60 = vld [vmem:[#allocation8_spill] sm:$0xff] }
 0xd28   :  { %v6054_v8 = vpack.c.bf16 %v5322_v55, %v5321_v6  ;;  %v5269_v22 = vadd.f32 %v5268_v51, %v5125_v21  ;;  %v5343_v12 = vrot.slane %v5338_v19, %v11624_v60 }
 0xd29   :  { %v5324_v53 = vmax.f32 %v5274_v2, 0.0 }
 0xd2a   :  { %v5323_v14 = vmax.f32 %v5269_v22, 0.0  ;;  %v5810_v33 = vpop.f32.mrb[28].mxu1  ;;  %6055 = vmatpush3.bf16.msra.mxu0 %v6054_v8 }
 0xd2b   :  { %v5284_v31 = vadd.f32 %v5810_v33, %v5140_v34  ;;  %v5278_v3 = vpop.f32.mrb[29].mxu1  ;;  %6056 = vmatprep.subr.bf16.mxu0 %v6129_v5 }
 0xd2c   :  { %v6057_v26 = vpack.c.bf16 %v5324_v53, %v5323_v14  ;;  %v5279_v46 = vadd.f32 %v5278_v3, %v5135_v23 }
 0xd2d   :  { %v5326_v43 = vmax.f32 %v5284_v31, 0.0 }
 0xd2e   :  { %v5325_v0 = vmax.f32 %v5279_v46, 0.0  ;;  %v5813_v7 = vpop.f32.mrb[30].mxu1  ;;  %6058 = vmatpush3.bf16.msra.mxu0 %v6057_v26 }
 0xd2f   :  { %v5294_v47 = vadd.f32 %v5813_v7, %v5150_v63  ;;  %v5288_v35 = vpop.f32.mrb[31].mxu1  ;;  %6059 = vmatprep.subr.bf16.mxu0 %v6129_v5 }
 0xd30   :  { %v6060_v17 = vpack.c.bf16 %v5326_v43, %v5325_v0  ;;  %v5289_v1 = vadd.f32 %v5288_v35, %v5145_v27 }
 0xd31   :  { %v5328_v48 = vmax.f32 %v5294_v47, 0.0 }
 0xd32   :  { %v5327_v30 = vmax.f32 %v5289_v1, 0.0  ;;  %v5816_v40 = vpop.f32.mrb[32].mxu1  ;;  %6061 = vmatpush3.bf16.msra.mxu0 %v6060_v17 }
 0xd33   :  { %v5304_v41 = vadd.f32 %v5816_v40, %v5160_v61  ;;  %v5298_v15 = vpop.f32.mrb[33].mxu1  ;;  %6062 = vmatprep.subr.bf16.mxu0 %v6129_v5 }
 0xd34   :  { %v6063_v36 = vpack.c.bf16 %v5328_v48, %v5327_v30  ;;  %v5299_v54 = vadd.f32 %v5298_v15, %v5155_v39 }
 0xd35   :  { %v5330_v9 = vmax.f32 %v5304_v41, 0.0 }
 0xd36   :  { %v5329_v49 = vmax.f32 %v5299_v54, 0.0  ;;  %v5819_v13 = vpop.f32.mrb[34].mxu1  ;;  %6064 = vmatpush3.bf16.msra.mxu0 %v6063_v36 }
 0xd37   :  { %v5314_v37 = vadd.f32 %v5819_v13, %v5170_v25  ;;  %v5308_v28 = vpop.f32.mrb[35].mxu1  ;;  %6065 = vmatprep.subr.bf16.mxu0 %v6129_v5 }
 0xd38   :  { %v6066_v57 = vpack.c.bf16 %v5330_v9, %v5329_v49  ;;  %v5309_v58 = vadd.f32 %v5308_v28, %v5165_v56 }
 0xd39   :  { %v5332_v18 = vmax.f32 %v5314_v37, 0.0 }
 0xd3a   :  { %v5331_v50 = vmax.f32 %v5309_v58, 0.0  ;;  %6067 = vmatpush3.bf16.msra.mxu0 %v6066_v57 }
 0xd3b   :  { %6068 = vmatprep.subr.bf16.mxu0 %v6129_v5 }
 0xd3c   :  { %v6069_v59 = vpack.c.bf16 %v5332_v18, %v5331_v50 }
 0xd3e   :  { %6070 = vmatpush3.bf16.msra.mxu0 %v6069_v59 }
 0xd41   :  { %5853 = vmatmul.mubr.f32.vlgmr.msra.gmra.mrb[46].mxu0 %v5333_v45 }
 0xe14   :  { %v5410_v24 = vpop.f32.mrb[46].mxu0 }
 0xe15   :  { %v5411_v21 = vadd.f32 %v5410_v24, %v5343_v12  ;;  %v5854_v11 = vpop.f32.mrb[47].mxu0 }
 0xe17   :  { %5414 = vst [vmem:[#allocation3] sm:$0x1] %v5411_v21 }
 0xe18   :  { %6110 = shalt.err (!%p6107_p4)
}
 0xe19   :  { %s6111_s15 = scalar_lea.hbm %s10506_s23, 16 }
 0xe1a   :  { %p6112_p5 = scmp.ne.s32.totalorder %s10506_s23, %s6111_s15  ;;  %p6115_p6 = scmp.lt.u32.totalorder %s6111_s15, %s10506_s23 }
 0xe1c   :  { %p6117_p7 = pnand %p6115_p6, %p6112_p5 }
 0xe1e   :  { %6120 = shalt.err (!%p6117_p7)
}
 0xe1f   :  { %5424 = dma.vmem_to_hbm [thread:$0]  %s5422_s6, 16, %s10506_s23, [#allocation4]  }
 0xe20   :  { %6121 = dma.done.wait [#allocation4], 16  }
 0xe21   :  { %6122 = vsyncadd [#allocation4], 4294967280 }
 0xe22   :  { %5428 = vsyncpa [#allocation4], 1 }

</bundles_post_ra>
